<compile_context>
chip_gen: v5e
topology: v5e:2x2
jax: 0.10.0
libtpu: 0.0.40
codegen_flags: <defaults>
</compile_context>

<pallas_src>
import functools
import math

import jax
import jax.numpy as jnp
from jax import lax
from jax.experimental import pallas as pl
from jax.experimental.pallas import tpu as pltpu  # noqa: F401  (TPU backend)


# --------------------------- in-kernel helpers ------------------------------

def _layernorm(x, g, b):
    # x: (N, D) f32; g, b: (1, D)
    mu = jnp.mean(x, axis=-1, keepdims=True)
    var = jnp.mean(jnp.square(x - mu), axis=-1, keepdims=True)
    return (x - mu) * lax.rsqrt(var + 1e-5) * g + b


def _attention(q, kv, wq_t, wk_t, wv_t, wo_t, bq, bk, bv, bo,
               head_mask, attn_add, num_heads):
    """Multi-head attention with batch folded into rows.

    q, kv      : (N, D)    rows are (batch*seq) flattened as b*L + l
    w*_t       : (D, D)    pre-transposed (y = x @ w_t + b, PyTorch Linear)
    head_mask  : (H*N, D)  1.0 where lane d belongs to the head of stacked row g
    attn_add   : (H*N, N)  0.0 for (same batch & key<=query), else -1e30
    """
    N, D = q.shape
    H = num_heads
    scale = 1.0 / math.sqrt(D // H)

    Q = jnp.dot(q, wq_t, preferred_element_type=jnp.float32) + bq
    K = jnp.dot(kv, wk_t, preferred_element_type=jnp.float32) + bk
    V = jnp.dot(kv, wv_t, preferred_element_type=jnp.float32) + bv

    # Stack H copies of the queries along sublanes and lane-mask each copy to
    # its head: one big contraction replaces H tiny per-head matmuls and all
    # lane slicing / concatenation.
    Qs = jnp.concatenate([Q] * H, axis=0) * head_mask              # (H*N, D)
    S = jnp.einsum('gd,nd->gn', Qs, K,
                   preferred_element_type=jnp.float32) * scale     # (H*N, N)
    S = S + attn_add                                               # batch+causal
    S = S - jnp.max(S, axis=-1, keepdims=True)
    P = jnp.exp(S)
    P = P / jnp.sum(P, axis=-1, keepdims=True)

    Os = jnp.dot(P, V, preferred_element_type=jnp.float32) * head_mask  # (H*N, D)
    out = Os[0:N]
    for h in range(1, H):                     # static, sublane-aligned slices
        out = out + Os[h * N:(h + 1) * N]
    return jnp.dot(out, wo_t, preferred_element_type=jnp.float32) + bo


# ------------------------------ fused kernels -------------------------------

def encoder_block_kernel(x_ref, hm_ref, am_ref,
                         g1_ref, b1_ref,
                         wq_ref, wk_ref, wv_ref, wo_ref,
                         bq_ref, bk_ref, bv_ref, bo_ref,
                         g2_ref, b2_ref,
                         w1_ref, f1_ref, w2_ref, f2_ref,
                         o_ref, *, num_heads):
    x = x_ref[...].astype(jnp.float32)         # (N, D), N = B*L
    hm = hm_ref[...]
    am = am_ref[...]

    h1 = _layernorm(x, g1_ref[...], b1_ref[...])            # skip = post-LN1
    a = _attention(h1, h1,
                   wq_ref[...], wk_ref[...], wv_ref[...], wo_ref[...],
                   bq_ref[...], bk_ref[...], bv_ref[...], bo_ref[...],
                   hm, am, num_heads)
    x2 = a + h1                                             # dropout -> identity

    h2 = _layernorm(x2, g2_ref[...], b2_ref[...])           # skip = post-LN2
    f = jnp.maximum(jnp.dot(h2, w1_ref[...],
                            preferred_element_type=jnp.float32) + f1_ref[...], 0.0)
    f = jnp.dot(f, w2_ref[...], preferred_element_type=jnp.float32) + f2_ref[...]
    o_ref[...] = (f + h2).astype(o_ref.dtype)


def decoder_block_kernel(y_ref, enc_ref, hm_ref, am_ref,
                         g1_ref, b1_ref,
                         wq1_ref, wk1_ref, wv1_ref, wo1_ref,
                         bq1_ref, bk1_ref, bv1_ref, bo1_ref,
                         g2_ref, b2_ref,
                         wq2_ref, wk2_ref, wv2_ref, wo2_ref,
                         bq2_ref, bk2_ref, bv2_ref, bo2_ref,
                         g3_ref, b3_ref,
                         w1_ref, f1_ref, w2_ref, f2_ref,
                         wh_ref, bh_ref,
                         o_ref, p_ref, *, num_heads):
    y = y_ref[...].astype(jnp.float32)          # (N, D)
    enc = enc_ref[...].astype(jnp.float32)      # (N, D)
    hm = hm_ref[...]
    am = am_ref[...]

    h1 = _layernorm(y, g1_ref[...], b1_ref[...])
    a1 = _attention(h1, h1,                                     # masked self-attn
                    wq1_ref[...], wk1_ref[...], wv1_ref[...], wo1_ref[...],
                    bq1_ref[...], bk1_ref[...], bv1_ref[...], bo1_ref[...],
                    hm, am, num_heads)
    x2 = a1 + h1

    enc_ln = _layernorm(enc, g2_ref[...], b2_ref[...])
    a2 = _attention(x2, enc_ln,                                 # masked cross-attn
                    wq2_ref[...], wk2_ref[...], wv2_ref[...], wo2_ref[...],
                    bq2_ref[...], bk2_ref[...], bv2_ref[...], bo2_ref[...],
                    hm, am, num_heads)
    x3 = a2 + x2

    h3 = _layernorm(x3, g3_ref[...], b3_ref[...])
    f = jnp.maximum(jnp.dot(h3, w1_ref[...],
                            preferred_element_type=jnp.float32) + f1_ref[...], 0.0)
    f = jnp.dot(f, w2_ref[...], preferred_element_type=jnp.float32) + f2_ref[...]
    out = f + h3
    o_ref[...] = out.astype(o_ref.dtype)

    # Fused Linear(D -> 1) + sigmoid head, written lane-dense as (1, N).
    logits = jnp.einsum('od,nd->on', wh_ref[...], out,
                        preferred_element_type=jnp.float32) + bh_ref[...]
    p_ref[...] = jax.nn.sigmoid(logits).astype(p_ref.dtype)


# ------------------------------ wrappers ------------------------------------

def build_masks(B, L, D, H):
    """Head-lane mask (H*B*L, D) and additive batch+causal mask (H*B*L, B*L)."""
    dh = D // H
    N = B * L
    g = jnp.arange(H * N)
    head_of_row = g // N
    batch_of_row = (g % N) // L
    pos_of_row = g % L

    lane_head = jnp.arange(D) // dh
    head_mask = (head_of_row[:, None] == lane_head[None, :]).astype(jnp.float32)

    m = jnp.arange(N)
    batch_of_col = m // L
    pos_of_col = m % L
    valid = (batch_of_row[:, None] == batch_of_col[None, :]) & \
            (pos_of_col[None, :] <= pos_of_row[:, None])          # ut_mask: no future
    attn_add = jnp.where(valid, 0.0, -1e30).astype(jnp.float32)
    return head_mask, attn_add


def _mha_weights(p, D):
    # PyTorch nn.MultiheadAttention packed in_proj -> pre-transposed per-matrix.
    w_in, b_in = p["in_proj_w"], p["in_proj_b"]
    return (w_in[:D].T, w_in[D:2 * D].T, w_in[2 * D:].T, p["out_w"].T,
            b_in[:D].reshape(1, D), b_in[D:2 * D].reshape(1, D),
            b_in[2 * D:].reshape(1, D), p["out_b"].reshape(1, D))


def encoder_block_forward(x2d, head_mask, attn_add, p, num_heads):
    N, D = x2d.shape
    wq_t, wk_t, wv_t, wo_t, bq, bk, bv, bo = _mha_weights(p["attn"], D)
    args = (x2d, head_mask, attn_add,
            p["ln1"]["g"].reshape(1, D), p["ln1"]["b"].reshape(1, D),
            wq_t, wk_t, wv_t, wo_t, bq, bk, bv, bo,
            p["ln2"]["g"].reshape(1, D), p["ln2"]["b"].reshape(1, D),
            p["ffn"]["w1"].T, p["ffn"]["b1"].reshape(1, D),
            p["ffn"]["w2"].T, p["ffn"]["b2"].reshape(1, D))
    return pl.pallas_call(
        functools.partial(encoder_block_kernel, num_heads=num_heads),
        out_shape=jax.ShapeDtypeStruct((N, D), x2d.dtype),
    )(*args)


def decoder_block_forward(y2d, enc2d, head_mask, attn_add, p, out_w, out_b,
                          num_heads):
    N, D = y2d.shape
    wq1, wk1, wv1, wo1, bq1, bk1, bv1, bo1 = _mha_weights(p["attn1"], D)
    wq2, wk2, wv2, wo2, bq2, bk2, bv2, bo2 = _mha_weights(p["attn2"], D)
    args = (y2d, enc2d, head_mask, attn_add,
            p["ln1"]["g"].reshape(1, D), p["ln1"]["b"].reshape(1, D),
            wq1, wk1, wv1, wo1, bq1, bk1, bv1, bo1,
            p["ln2"]["g"].reshape(1, D), p["ln2"]["b"].reshape(1, D),
            wq2, wk2, wv2, wo2, bq2, bk2, bv2, bo2,
            p["ln3"]["g"].reshape(1, D), p["ln3"]["b"].reshape(1, D),
            p["ffn"]["w1"].T, p["ffn"]["b1"].reshape(1, D),
            p["ffn"]["w2"].T, p["ffn"]["b2"].reshape(1, D),
            out_w.reshape(1, D), out_b.reshape(1, 1))
    return pl.pallas_call(
        functools.partial(decoder_block_kernel, num_heads=num_heads),
        out_shape=(jax.ShapeDtypeStruct((N, D), y2d.dtype),
                   jax.ShapeDtypeStruct((1, N), y2d.dtype)),
    )(*args)


# ------------------------------ SAINT forward -------------------------------

def saint_forward(params, ex_in, cat_in, res_in, *, num_heads, n_blocks=1):
    B, L = ex_in.shape
    D = params["emb_pos"].shape[-1]
    N = B * L
    head_mask, attn_add = build_masks(B, L, D, num_heads)

    in_pos = params["emb_pos"][jnp.arange(L)][None, :, :]          # (1, L, D)

    # Encoder stack (embeddings + pos add are cheap plain-JAX glue).
    x = params["enc"]["emb_ex"][ex_in] + params["enc"]["emb_cat"][cat_in] + in_pos
    x2d = x.reshape(N, D)
    for _ in range(n_blocks):
        x2d = encoder_block_forward(x2d, head_mask, attn_add,
                                    params["enc"], num_heads)

    # Decoder stack.
    start_token = jnp.full((B, 1), 2, dtype=res_in.dtype)
    res = jnp.concatenate([start_token, res_in], axis=-1)          # (B, L)
    y = params["dec"]["emb_res"][res] + in_pos
    y2d = y.reshape(N, D)
    probs = None
    for _ in range(n_blocks):
        y2d, probs = decoder_block_forward(y2d, x2d, head_mask, attn_add,
                                           params["dec"], params["out_w"],
                                           params["out_b"], num_heads)
    return probs.reshape(B, L)


# ------------------------------ parameter init ------------------------------

def make_params(key, *, num_q, num_c, seq_len, emb_size):
    D = emb_size
    keys = list(jax.random.split(key, 64))
    it = iter(keys)

    def w(shape, scale=0.1):
        return scale * jax.random.normal(next(it), shape, dtype=jnp.float32)

    def mha_params():
        return dict(in_proj_w=w((3 * D, D)), in_proj_b=w((3 * D,)),
                    out_w=w((D, D)), out_b=w((D,)))

    def ffn_params():
        return dict(w1=w((D, D)), b1=w((D,)), w2=w((D, D)), b2=w((D,)))

    def ln_params():
        return dict(g=jnp.ones((D,), jnp.float32), b=jnp.zeros((D,), jnp.float32))

    return dict(
        emb_pos=w((seq_len, D)),
        enc=dict(emb_ex=w((num_q, D)), emb_cat=w((num_c, D)),
                 attn=mha_params(), ffn=ffn_params(),
                 ln1=ln_params(), ln2=ln_params()),
        dec=dict(emb_res=w((2 + 1, D)),                 # total_res=2 -> 3 rows
                 attn1=mha_params(), attn2=mha_params(), ffn=ffn_params(),
                 ln1=ln_params(), ln2=ln_params(), ln3=ln_params()),
        out_w=w((1, D)), out_b=w((1,)),
    )


# ----------------------------------- main ------------------------------------

if __name__ == "__main__":
    B, L, D, H = 2, 8, 32, 4            # batch, seq_len, emb_size, attn heads
    num_q, num_c = 50, 20
    n_blocks = 1

    key = jax.random.PRNGKey(0)
    kp, ke, kc, kr = jax.random.split(key, 4)
    params = make_params(kp, num_q=num_q, num_c=num_c, seq_len=L, emb_size=D)

    ex_in = jax.random.randint(ke, (B, L), 0, num_q, dtype=jnp.int32)
    cat_in = jax.random.randint(kc, (B, L), 0, num_c, dtype=jnp.int32)
    res_in = jax.random.randint(kr, (B, L - 1), 0, 2, dtype=jnp.int32)

    fwd = jax.jit(functools.partial(saint_forward, num_heads=H, n_blocks=n_blocks))
    out = jax.block_until_ready(fwd(params, ex_in, cat_in, res_in))
    assert out.shape == (B, L)
    assert bool(jnp.all(jnp.isfinite(out)))
    print("KERNEL_OK")
</pallas_src>

<mosaic_0001>
module attributes {stable_mosaic.version = 11 : i64} {
  func.func @decoder_block_kernel(%arg0: memref<16x32xf32, #tpu.memory_space<vmem>>, %arg1: memref<16x32xf32, #tpu.memory_space<vmem>>, %arg2: memref<64x32xf32, #tpu.memory_space<vmem>>, %arg3: memref<64x16xf32, #tpu.memory_space<vmem>>, %arg4: memref<1x32xf32, #tpu.memory_space<vmem>>, %arg5: memref<1x32xf32, #tpu.memory_space<vmem>>, %arg6: memref<32x32xf32, #tpu.memory_space<vmem>>, %arg7: memref<32x32xf32, #tpu.memory_space<vmem>>, %arg8: memref<32x32xf32, #tpu.memory_space<vmem>>, %arg9: memref<32x32xf32, #tpu.memory_space<vmem>>, %arg10: memref<1x32xf32, #tpu.memory_space<vmem>>, %arg11: memref<1x32xf32, #tpu.memory_space<vmem>>, %arg12: memref<1x32xf32, #tpu.memory_space<vmem>>, %arg13: memref<1x32xf32, #tpu.memory_space<vmem>>, %arg14: memref<1x32xf32, #tpu.memory_space<vmem>>, %arg15: memref<1x32xf32, #tpu.memory_space<vmem>>, %arg16: memref<32x32xf32, #tpu.memory_space<vmem>>, %arg17: memref<32x32xf32, #tpu.memory_space<vmem>>, %arg18: memref<32x32xf32, #tpu.memory_space<vmem>>, %arg19: memref<32x32xf32, #tpu.memory_space<vmem>>, %arg20: memref<1x32xf32, #tpu.memory_space<vmem>>, %arg21: memref<1x32xf32, #tpu.memory_space<vmem>>, %arg22: memref<1x32xf32, #tpu.memory_space<vmem>>, %arg23: memref<1x32xf32, #tpu.memory_space<vmem>>, %arg24: memref<1x32xf32, #tpu.memory_space<vmem>>, %arg25: memref<1x32xf32, #tpu.memory_space<vmem>>, %arg26: memref<32x32xf32, #tpu.memory_space<vmem>>, %arg27: memref<1x32xf32, #tpu.memory_space<vmem>>, %arg28: memref<32x32xf32, #tpu.memory_space<vmem>>, %arg29: memref<1x32xf32, #tpu.memory_space<vmem>>, %arg30: memref<1x32xf32, #tpu.memory_space<vmem>>, %arg31: memref<1x1xf32, #tpu.memory_space<vmem>>, %arg32: memref<16x32xf32, #tpu.memory_space<vmem>>, %arg33: memref<1x16xf32, #tpu.memory_space<vmem>>) attributes {dimension_semantics = [], scalar_prefetch = 0 : i64, scratch_operands = 0 : i64, tpu.core_type = #tpu.core_type<tc>} {
    %c0 = arith.constant 0 : index
    %c0_0 = arith.constant 0 : index
    %0 = vector.load %arg0[%c0, %c0_0] : memref<16x32xf32, #tpu.memory_space<vmem>>, vector<16x32xf32>
    %c0_1 = arith.constant 0 : index
    %c0_2 = arith.constant 0 : index
    %1 = vector.load %arg1[%c0_1, %c0_2] : memref<16x32xf32, #tpu.memory_space<vmem>>, vector<16x32xf32>
    %c0_3 = arith.constant 0 : index
    %c0_4 = arith.constant 0 : index
    %2 = vector.load %arg2[%c0_3, %c0_4] : memref<64x32xf32, #tpu.memory_space<vmem>>, vector<64x32xf32>
    %c0_5 = arith.constant 0 : index
    %c0_6 = arith.constant 0 : index
    %3 = vector.load %arg3[%c0_5, %c0_6] : memref<64x16xf32, #tpu.memory_space<vmem>>, vector<64x16xf32>
    %c0_7 = arith.constant 0 : index
    %c0_8 = arith.constant 0 : index
    %4 = vector.load %arg4[%c0_7, %c0_8] : memref<1x32xf32, #tpu.memory_space<vmem>>, vector<1x32xf32>
    %c0_9 = arith.constant 0 : index
    %c0_10 = arith.constant 0 : index
    %5 = vector.load %arg5[%c0_9, %c0_10] : memref<1x32xf32, #tpu.memory_space<vmem>>, vector<1x32xf32>
    %cst = arith.constant dense<0.000000e+00> : vector<16xf32>
    %6 = vector.multi_reduction <add>, %0, %cst [1] : vector<16x32xf32> to vector<16xf32>
    %7 = vector.shape_cast %6 : vector<16xf32> to vector<16x1xf32>
    %cst_11 = arith.constant 3.200000e+01 : f32
    %8 = vector.broadcast %cst_11 : f32 to vector<16x1xf32>
    %9 = arith.divf %7, %8 : vector<16x1xf32>
    %10 = vector.broadcast %9 : vector<16x1xf32> to vector<16x32xf32>
    %11 = arith.subf %0, %10 : vector<16x32xf32>
    %12 = arith.mulf %11, %11 : vector<16x32xf32>
    %cst_12 = arith.constant dense<0.000000e+00> : vector<16xf32>
    %13 = vector.multi_reduction <add>, %12, %cst_12 [1] : vector<16x32xf32> to vector<16xf32>
    %14 = vector.shape_cast %13 : vector<16xf32> to vector<16x1xf32>
    %cst_13 = arith.constant 3.200000e+01 : f32
    %15 = vector.broadcast %cst_13 : f32 to vector<16x1xf32>
    %16 = arith.divf %14, %15 : vector<16x1xf32>
    %17 = vector.broadcast %9 : vector<16x1xf32> to vector<16x32xf32>
    %18 = arith.subf %0, %17 : vector<16x32xf32>
    %cst_14 = arith.constant 9.99999974E-6 : f32
    %19 = vector.broadcast %cst_14 : f32 to vector<16x1xf32>
    %20 = arith.addf %16, %19 : vector<16x1xf32>
    %21 = math.rsqrt %20 : vector<16x1xf32>
    %22 = vector.broadcast %21 : vector<16x1xf32> to vector<16x32xf32>
    %23 = arith.mulf %18, %22 : vector<16x32xf32>
    %24 = vector.broadcast %4 : vector<1x32xf32> to vector<16x32xf32>
    %25 = arith.mulf %23, %24 : vector<16x32xf32>
    %26 = vector.broadcast %5 : vector<1x32xf32> to vector<16x32xf32>
    %27 = arith.addf %25, %26 : vector<16x32xf32>
    %c0_15 = arith.constant 0 : index
    %c0_16 = arith.constant 0 : index
    %28 = vector.load %arg6[%c0_15, %c0_16] : memref<32x32xf32, #tpu.memory_space<vmem>>, vector<32x32xf32>
    %c0_17 = arith.constant 0 : index
    %c0_18 = arith.constant 0 : index
    %29 = vector.load %arg7[%c0_17, %c0_18] : memref<32x32xf32, #tpu.memory_space<vmem>>, vector<32x32xf32>
    %c0_19 = arith.constant 0 : index
    %c0_20 = arith.constant 0 : index
    %30 = vector.load %arg8[%c0_19, %c0_20] : memref<32x32xf32, #tpu.memory_space<vmem>>, vector<32x32xf32>
    %c0_21 = arith.constant 0 : index
    %c0_22 = arith.constant 0 : index
    %31 = vector.load %arg9[%c0_21, %c0_22] : memref<32x32xf32, #tpu.memory_space<vmem>>, vector<32x32xf32>
    %c0_23 = arith.constant 0 : index
    %c0_24 = arith.constant 0 : index
    %32 = vector.load %arg10[%c0_23, %c0_24] : memref<1x32xf32, #tpu.memory_space<vmem>>, vector<1x32xf32>
    %c0_25 = arith.constant 0 : index
    %c0_26 = arith.constant 0 : index
    %33 = vector.load %arg11[%c0_25, %c0_26] : memref<1x32xf32, #tpu.memory_space<vmem>>, vector<1x32xf32>
    %c0_27 = arith.constant 0 : index
    %c0_28 = arith.constant 0 : index
    %34 = vector.load %arg12[%c0_27, %c0_28] : memref<1x32xf32, #tpu.memory_space<vmem>>, vector<1x32xf32>
    %c0_29 = arith.constant 0 : index
    %c0_30 = arith.constant 0 : index
    %35 = vector.load %arg13[%c0_29, %c0_30] : memref<1x32xf32, #tpu.memory_space<vmem>>, vector<1x32xf32>
    %cst_31 = arith.constant dense<0.000000e+00> : vector<16x32xf32>
    %36 = tpu.matmul %27, %28, %cst_31 {dimension_numbers = #tpu.dot_dimension_numbers<[1], [0], [0], [1], [0, 0, 1, 1], [], []>} : vector<16x32xf32>, vector<32x32xf32>, vector<16x32xf32> -> vector<16x32xf32>
    %37 = vector.broadcast %32 : vector<1x32xf32> to vector<16x32xf32>
    %38 = arith.addf %36, %37 : vector<16x32xf32>
    %cst_32 = arith.constant dense<0.000000e+00> : vector<16x32xf32>
    %39 = tpu.matmul %27, %29, %cst_32 {dimension_numbers = #tpu.dot_dimension_numbers<[1], [0], [0], [1], [0, 0, 1, 1], [], []>} : vector<16x32xf32>, vector<32x32xf32>, vector<16x32xf32> -> vector<16x32xf32>
    %40 = vector.broadcast %33 : vector<1x32xf32> to vector<16x32xf32>
    %41 = arith.addf %39, %40 : vector<16x32xf32>
    %cst_33 = arith.constant dense<0.000000e+00> : vector<16x32xf32>
    %42 = tpu.matmul %27, %30, %cst_33 {dimension_numbers = #tpu.dot_dimension_numbers<[1], [0], [0], [1], [0, 0, 1, 1], [], []>} : vector<16x32xf32>, vector<32x32xf32>, vector<16x32xf32> -> vector<16x32xf32>
    %43 = vector.broadcast %34 : vector<1x32xf32> to vector<16x32xf32>
    %44 = arith.addf %42, %43 : vector<16x32xf32>
    %45 = tpu.concatenate %38, %38, %38, %38 in 0 : vector<16x32xf32>, vector<16x32xf32>, vector<16x32xf32>, vector<16x32xf32> -> vector<64x32xf32>
    %46 = arith.mulf %45, %2 : vector<64x32xf32>
    "tpu.trace_start"() <{level = 10 : i32, message = "gd,nd->gn"}> : () -> ()
    %cst_34 = arith.constant dense<0.000000e+00> : vector<64x16xf32>
    %47 = tpu.matmul %46, %41, %cst_34 {dimension_numbers = #tpu.dot_dimension_numbers<[1], [1], [0], [0], [0, 0, 1, 0], [], []>} : vector<64x32xf32>, vector<16x32xf32>, vector<64x16xf32> -> vector<64x16xf32>
    "tpu.trace_stop"() : () -> ()
    %cst_35 = arith.constant 0.353553385 : f32
    %48 = vector.broadcast %cst_35 : f32 to vector<64x16xf32>
    %49 = arith.mulf %47, %48 : vector<64x16xf32>
    %50 = arith.addf %49, %3 : vector<64x16xf32>
    %cst_36 = arith.constant dense<0xFF800000> : vector<64xf32>
    %51 = vector.multi_reduction <maximumf>, %50, %cst_36 [1] : vector<64x16xf32> to vector<64xf32>
    %52 = vector.shape_cast %51 : vector<64xf32> to vector<64x1xf32>
    %53 = vector.broadcast %52 : vector<64x1xf32> to vector<64x16xf32>
    %54 = arith.subf %50, %53 : vector<64x16xf32>
    %55 = math.exp %54 : vector<64x16xf32>
    %cst_37 = arith.constant dense<0.000000e+00> : vector<64xf32>
    %56 = vector.multi_reduction <add>, %55, %cst_37 [1] : vector<64x16xf32> to vector<64xf32>
    %57 = vector.shape_cast %56 : vector<64xf32> to vector<64x1xf32>
    %58 = vector.broadcast %57 : vector<64x1xf32> to vector<64x16xf32>
    %59 = arith.divf %55, %58 : vector<64x16xf32>
    %cst_38 = arith.constant dense<0.000000e+00> : vector<64x32xf32>
    %60 = tpu.matmul %59, %44, %cst_38 {dimension_numbers = #tpu.dot_dimension_numbers<[1], [0], [0], [1], [0, 0, 1, 1], [], []>} : vector<64x16xf32>, vector<16x32xf32>, vector<64x32xf32> -> vector<64x32xf32>
    %61 = arith.mulf %60, %2 : vector<64x32xf32>
    %62 = vector.extract_strided_slice %61 {offsets = [0, 0], sizes = [16, 32], strides = [1, 1]} : vector<64x32xf32> to vector<16x32xf32>
    %63 = vector.extract_strided_slice %61 {offsets = [16, 0], sizes = [16, 32], strides = [1, 1]} : vector<64x32xf32> to vector<16x32xf32>
    %64 = arith.addf %62, %63 : vector<16x32xf32>
    %65 = vector.extract_strided_slice %61 {offsets = [32, 0], sizes = [16, 32], strides = [1, 1]} : vector<64x32xf32> to vector<16x32xf32>
    %66 = arith.addf %64, %65 : vector<16x32xf32>
    %67 = vector.extract_strided_slice %61 {offsets = [48, 0], sizes = [16, 32], strides = [1, 1]} : vector<64x32xf32> to vector<16x32xf32>
    %68 = arith.addf %66, %67 : vector<16x32xf32>
    %cst_39 = arith.constant dense<0.000000e+00> : vector<16x32xf32>
    %69 = tpu.matmul %68, %31, %cst_39 {dimension_numbers = #tpu.dot_dimension_numbers<[1], [0], [0], [1], [0, 0, 1, 1], [], []>} : vector<16x32xf32>, vector<32x32xf32>, vector<16x32xf32> -> vector<16x32xf32>
    %70 = vector.broadcast %35 : vector<1x32xf32> to vector<16x32xf32>
    %71 = arith.addf %69, %70 : vector<16x32xf32>
    %72 = arith.addf %71, %27 : vector<16x32xf32>
    %c0_40 = arith.constant 0 : index
    %c0_41 = arith.constant 0 : index
    %73 = vector.load %arg14[%c0_40, %c0_41] : memref<1x32xf32, #tpu.memory_space<vmem>>, vector<1x32xf32>
    %c0_42 = arith.constant 0 : index
    %c0_43 = arith.constant 0 : index
    %74 = vector.load %arg15[%c0_42, %c0_43] : memref<1x32xf32, #tpu.memory_space<vmem>>, vector<1x32xf32>
    %cst_44 = arith.constant dense<0.000000e+00> : vector<16xf32>
    %75 = vector.multi_reduction <add>, %1, %cst_44 [1] : vector<16x32xf32> to vector<16xf32>
    %76 = vector.shape_cast %75 : vector<16xf32> to vector<16x1xf32>
    %cst_45 = arith.constant 3.200000e+01 : f32
    %77 = vector.broadcast %cst_45 : f32 to vector<16x1xf32>
    %78 = arith.divf %76, %77 : vector<16x1xf32>
    %79 = vector.broadcast %78 : vector<16x1xf32> to vector<16x32xf32>
    %80 = arith.subf %1, %79 : vector<16x32xf32>
    %81 = arith.mulf %80, %80 : vector<16x32xf32>
    %cst_46 = arith.constant dense<0.000000e+00> : vector<16xf32>
    %82 = vector.multi_reduction <add>, %81, %cst_46 [1] : vector<16x32xf32> to vector<16xf32>
    %83 = vector.shape_cast %82 : vector<16xf32> to vector<16x1xf32>
    %cst_47 = arith.constant 3.200000e+01 : f32
    %84 = vector.broadcast %cst_47 : f32 to vector<16x1xf32>
    %85 = arith.divf %83, %84 : vector<16x1xf32>
    %86 = vector.broadcast %78 : vector<16x1xf32> to vector<16x32xf32>
    %87 = arith.subf %1, %86 : vector<16x32xf32>
    %cst_48 = arith.constant 9.99999974E-6 : f32
    %88 = vector.broadcast %cst_48 : f32 to vector<16x1xf32>
    %89 = arith.addf %85, %88 : vector<16x1xf32>
    %90 = math.rsqrt %89 : vector<16x1xf32>
    %91 = vector.broadcast %90 : vector<16x1xf32> to vector<16x32xf32>
    %92 = arith.mulf %87, %91 : vector<16x32xf32>
    %93 = vector.broadcast %73 : vector<1x32xf32> to vector<16x32xf32>
    %94 = arith.mulf %92, %93 : vector<16x32xf32>
    %95 = vector.broadcast %74 : vector<1x32xf32> to vector<16x32xf32>
    %96 = arith.addf %94, %95 : vector<16x32xf32>
    %c0_49 = arith.constant 0 : index
    %c0_50 = arith.constant 0 : index
    %97 = vector.load %arg16[%c0_49, %c0_50] : memref<32x32xf32, #tpu.memory_space<vmem>>, vector<32x32xf32>
    %c0_51 = arith.constant 0 : index
    %c0_52 = arith.constant 0 : index
    %98 = vector.load %arg17[%c0_51, %c0_52] : memref<32x32xf32, #tpu.memory_space<vmem>>, vector<32x32xf32>
    %c0_53 = arith.constant 0 : index
    %c0_54 = arith.constant 0 : index
    %99 = vector.load %arg18[%c0_53, %c0_54] : memref<32x32xf32, #tpu.memory_space<vmem>>, vector<32x32xf32>
    %c0_55 = arith.constant 0 : index
    %c0_56 = arith.constant 0 : index
    %100 = vector.load %arg19[%c0_55, %c0_56] : memref<32x32xf32, #tpu.memory_space<vmem>>, vector<32x32xf32>
    %c0_57 = arith.constant 0 : index
    %c0_58 = arith.constant 0 : index
    %101 = vector.load %arg20[%c0_57, %c0_58] : memref<1x32xf32, #tpu.memory_space<vmem>>, vector<1x32xf32>
    %c0_59 = arith.constant 0 : index
    %c0_60 = arith.constant 0 : index
    %102 = vector.load %arg21[%c0_59, %c0_60] : memref<1x32xf32, #tpu.memory_space<vmem>>, vector<1x32xf32>
    %c0_61 = arith.constant 0 : index
    %c0_62 = arith.constant 0 : index
    %103 = vector.load %arg22[%c0_61, %c0_62] : memref<1x32xf32, #tpu.memory_space<vmem>>, vector<1x32xf32>
    %c0_63 = arith.constant 0 : index
    %c0_64 = arith.constant 0 : index
    %104 = vector.load %arg23[%c0_63, %c0_64] : memref<1x32xf32, #tpu.memory_space<vmem>>, vector<1x32xf32>
    %cst_65 = arith.constant dense<0.000000e+00> : vector<16x32xf32>
    %105 = tpu.matmul %72, %97, %cst_65 {dimension_numbers = #tpu.dot_dimension_numbers<[1], [0], [0], [1], [0, 0, 1, 1], [], []>} : vector<16x32xf32>, vector<32x32xf32>, vector<16x32xf32> -> vector<16x32xf32>
    %106 = vector.broadcast %101 : vector<1x32xf32> to vector<16x32xf32>
    %107 = arith.addf %105, %106 : vector<16x32xf32>
    %cst_66 = arith.constant dense<0.000000e+00> : vector<16x32xf32>
    %108 = tpu.matmul %96, %98, %cst_66 {dimension_numbers = #tpu.dot_dimension_numbers<[1], [0], [0], [1], [0, 0, 1, 1], [], []>} : vector<16x32xf32>, vector<32x32xf32>, vector<16x32xf32> -> vector<16x32xf32>
    %109 = vector.broadcast %102 : vector<1x32xf32> to vector<16x32xf32>
    %110 = arith.addf %108, %109 : vector<16x32xf32>
    %cst_67 = arith.constant dense<0.000000e+00> : vector<16x32xf32>
    %111 = tpu.matmul %96, %99, %cst_67 {dimension_numbers = #tpu.dot_dimension_numbers<[1], [0], [0], [1], [0, 0, 1, 1], [], []>} : vector<16x32xf32>, vector<32x32xf32>, vector<16x32xf32> -> vector<16x32xf32>
    %112 = vector.broadcast %103 : vector<1x32xf32> to vector<16x32xf32>
    %113 = arith.addf %111, %112 : vector<16x32xf32>
    %114 = tpu.concatenate %107, %107, %107, %107 in 0 : vector<16x32xf32>, vector<16x32xf32>, vector<16x32xf32>, vector<16x32xf32> -> vector<64x32xf32>
    %115 = arith.mulf %114, %2 : vector<64x32xf32>
    "tpu.trace_start"() <{level = 10 : i32, message = "gd,nd->gn"}> : () -> ()
    %cst_68 = arith.constant dense<0.000000e+00> : vector<64x16xf32>
    %116 = tpu.matmul %115, %110, %cst_68 {dimension_numbers = #tpu.dot_dimension_numbers<[1], [1], [0], [0], [0, 0, 1, 0], [], []>} : vector<64x32xf32>, vector<16x32xf32>, vector<64x16xf32> -> vector<64x16xf32>
    "tpu.trace_stop"() : () -> ()
    %cst_69 = arith.constant 0.353553385 : f32
    %117 = vector.broadcast %cst_69 : f32 to vector<64x16xf32>
    %118 = arith.mulf %116, %117 : vector<64x16xf32>
    %119 = arith.addf %118, %3 : vector<64x16xf32>
    %cst_70 = arith.constant dense<0xFF800000> : vector<64xf32>
    %120 = vector.multi_reduction <maximumf>, %119, %cst_70 [1] : vector<64x16xf32> to vector<64xf32>
    %121 = vector.shape_cast %120 : vector<64xf32> to vector<64x1xf32>
    %122 = vector.broadcast %121 : vector<64x1xf32> to vector<64x16xf32>
    %123 = arith.subf %119, %122 : vector<64x16xf32>
    %124 = math.exp %123 : vector<64x16xf32>
    %cst_71 = arith.constant dense<0.000000e+00> : vector<64xf32>
    %125 = vector.multi_reduction <add>, %124, %cst_71 [1] : vector<64x16xf32> to vector<64xf32>
    %126 = vector.shape_cast %125 : vector<64xf32> to vector<64x1xf32>
    %127 = vector.broadcast %126 : vector<64x1xf32> to vector<64x16xf32>
    %128 = arith.divf %124, %127 : vector<64x16xf32>
    %cst_72 = arith.constant dense<0.000000e+00> : vector<64x32xf32>
    %129 = tpu.matmul %128, %113, %cst_72 {dimension_numbers = #tpu.dot_dimension_numbers<[1], [0], [0], [1], [0, 0, 1, 1], [], []>} : vector<64x16xf32>, vector<16x32xf32>, vector<64x32xf32> -> vector<64x32xf32>
    %130 = arith.mulf %129, %2 : vector<64x32xf32>
    %131 = vector.extract_strided_slice %130 {offsets = [0, 0], sizes = [16, 32], strides = [1, 1]} : vector<64x32xf32> to vector<16x32xf32>
    %132 = vector.extract_strided_slice %130 {offsets = [16, 0], sizes = [16, 32], strides = [1, 1]} : vector<64x32xf32> to vector<16x32xf32>
    %133 = arith.addf %131, %132 : vector<16x32xf32>
    %134 = vector.extract_strided_slice %130 {offsets = [32, 0], sizes = [16, 32], strides = [1, 1]} : vector<64x32xf32> to vector<16x32xf32>
    %135 = arith.addf %133, %134 : vector<16x32xf32>
    %136 = vector.extract_strided_slice %130 {offsets = [48, 0], sizes = [16, 32], strides = [1, 1]} : vector<64x32xf32> to vector<16x32xf32>
    %137 = arith.addf %135, %136 : vector<16x32xf32>
    %cst_73 = arith.constant dense<0.000000e+00> : vector<16x32xf32>
    %138 = tpu.matmul %137, %100, %cst_73 {dimension_numbers = #tpu.dot_dimension_numbers<[1], [0], [0], [1], [0, 0, 1, 1], [], []>} : vector<16x32xf32>, vector<32x32xf32>, vector<16x32xf32> -> vector<16x32xf32>
    %139 = vector.broadcast %104 : vector<1x32xf32> to vector<16x32xf32>
    %140 = arith.addf %138, %139 : vector<16x32xf32>
    %141 = arith.addf %140, %72 : vector<16x32xf32>
    %c0_74 = arith.constant 0 : index
    %c0_75 = arith.constant 0 : index
    %142 = vector.load %arg24[%c0_74, %c0_75] : memref<1x32xf32, #tpu.memory_space<vmem>>, vector<1x32xf32>
    %c0_76 = arith.constant 0 : index
    %c0_77 = arith.constant 0 : index
    %143 = vector.load %arg25[%c0_76, %c0_77] : memref<1x32xf32, #tpu.memory_space<vmem>>, vector<1x32xf32>
    %cst_78 = arith.constant dense<0.000000e+00> : vector<16xf32>
    %144 = vector.multi_reduction <add>, %141, %cst_78 [1] : vector<16x32xf32> to vector<16xf32>
    %145 = vector.shape_cast %144 : vector<16xf32> to vector<16x1xf32>
    %cst_79 = arith.constant 3.200000e+01 : f32
    %146 = vector.broadcast %cst_79 : f32 to vector<16x1xf32>
    %147 = arith.divf %145, %146 : vector<16x1xf32>
    %148 = vector.broadcast %147 : vector<16x1xf32> to vector<16x32xf32>
    %149 = arith.subf %141, %148 : vector<16x32xf32>
    %150 = arith.mulf %149, %149 : vector<16x32xf32>
    %cst_80 = arith.constant dense<0.000000e+00> : vector<16xf32>
    %151 = vector.multi_reduction <add>, %150, %cst_80 [1] : vector<16x32xf32> to vector<16xf32>
    %152 = vector.shape_cast %151 : vector<16xf32> to vector<16x1xf32>
    %cst_81 = arith.constant 3.200000e+01 : f32
    %153 = vector.broadcast %cst_81 : f32 to vector<16x1xf32>
    %154 = arith.divf %152, %153 : vector<16x1xf32>
    %155 = vector.broadcast %147 : vector<16x1xf32> to vector<16x32xf32>
    %156 = arith.subf %141, %155 : vector<16x32xf32>
    %cst_82 = arith.constant 9.99999974E-6 : f32
    %157 = vector.broadcast %cst_82 : f32 to vector<16x1xf32>
    %158 = arith.addf %154, %157 : vector<16x1xf32>
    %159 = math.rsqrt %158 : vector<16x1xf32>
    %160 = vector.broadcast %159 : vector<16x1xf32> to vector<16x32xf32>
    %161 = arith.mulf %156, %160 : vector<16x32xf32>
    %162 = vector.broadcast %142 : vector<1x32xf32> to vector<16x32xf32>
    %163 = arith.mulf %161, %162 : vector<16x32xf32>
    %164 = vector.broadcast %143 : vector<1x32xf32> to vector<16x32xf32>
    %165 = arith.addf %163, %164 : vector<16x32xf32>
    %c0_83 = arith.constant 0 : index
    %c0_84 = arith.constant 0 : index
    %166 = vector.load %arg26[%c0_83, %c0_84] : memref<32x32xf32, #tpu.memory_space<vmem>>, vector<32x32xf32>
    %cst_85 = arith.constant dense<0.000000e+00> : vector<16x32xf32>
    %167 = tpu.matmul %165, %166, %cst_85 {dimension_numbers = #tpu.dot_dimension_numbers<[1], [0], [0], [1], [0, 0, 1, 1], [], []>} : vector<16x32xf32>, vector<32x32xf32>, vector<16x32xf32> -> vector<16x32xf32>
    %c0_86 = arith.constant 0 : index
    %c0_87 = arith.constant 0 : index
    %168 = vector.load %arg27[%c0_86, %c0_87] : memref<1x32xf32, #tpu.memory_space<vmem>>, vector<1x32xf32>
    %169 = vector.broadcast %168 : vector<1x32xf32> to vector<16x32xf32>
    %170 = arith.addf %167, %169 : vector<16x32xf32>
    %cst_88 = arith.constant 0.000000e+00 : f32
    %171 = vector.broadcast %cst_88 : f32 to vector<16x32xf32>
    %172 = arith.maximumf %170, %171 : vector<16x32xf32>
    %c0_89 = arith.constant 0 : index
    %c0_90 = arith.constant 0 : index
    %173 = vector.load %arg28[%c0_89, %c0_90] : memref<32x32xf32, #tpu.memory_space<vmem>>, vector<32x32xf32>
    %cst_91 = arith.constant dense<0.000000e+00> : vector<16x32xf32>
    %174 = tpu.matmul %172, %173, %cst_91 {dimension_numbers = #tpu.dot_dimension_numbers<[1], [0], [0], [1], [0, 0, 1, 1], [], []>} : vector<16x32xf32>, vector<32x32xf32>, vector<16x32xf32> -> vector<16x32xf32>
    %c0_92 = arith.constant 0 : index
    %c0_93 = arith.constant 0 : index
    %175 = vector.load %arg29[%c0_92, %c0_93] : memref<1x32xf32, #tpu.memory_space<vmem>>, vector<1x32xf32>
    %176 = vector.broadcast %175 : vector<1x32xf32> to vector<16x32xf32>
    %177 = arith.addf %174, %176 : vector<16x32xf32>
    %178 = arith.addf %177, %165 : vector<16x32xf32>
    %c0_94 = arith.constant 0 : index
    %c0_95 = arith.constant 0 : index
    %179 = vector.load %arg32[%c0_94, %c0_95] : memref<16x32xf32, #tpu.memory_space<vmem>>, vector<16x32xf32>
    tpu.vector_store %arg32[%c0_94, %c0_95], %178 {strides = array<i32>} : memref<16x32xf32, #tpu.memory_space<vmem>>, vector<16x32xf32>,
    %c0_96 = arith.constant 0 : index
    %c0_97 = arith.constant 0 : index
    %180 = vector.load %arg30[%c0_96, %c0_97] : memref<1x32xf32, #tpu.memory_space<vmem>>, vector<1x32xf32>
    "tpu.trace_start"() <{level = 10 : i32, message = "od,nd->on"}> : () -> ()
    %cst_98 = arith.constant dense<0.000000e+00> : vector<1x16xf32>
    %181 = tpu.matmul %180, %178, %cst_98 {dimension_numbers = #tpu.dot_dimension_numbers<[1], [1], [0], [0], [0, 0, 1, 0], [], []>} : vector<1x32xf32>, vector<16x32xf32>, vector<1x16xf32> -> vector<1x16xf32>
    "tpu.trace_stop"() : () -> ()
    %c0_99 = arith.constant 0 : index
    %c0_100 = arith.constant 0 : index
    %182 = vector.load %arg31[%c0_99, %c0_100] : memref<1x1xf32, #tpu.memory_space<vmem>>, vector<1x1xf32>
    %183 = vector.broadcast %182 : vector<1x1xf32> to vector<1x16xf32>
    %184 = arith.addf %181, %183 : vector<1x16xf32>
    %185 = arith.negf %184 : vector<1x16xf32>
    %186 = math.exp %185 : vector<1x16xf32>
    %cst_101 = arith.constant 1.000000e+00 : f32
    %187 = vector.broadcast %cst_101 : f32 to vector<1x16xf32>
    %188 = arith.addf %187, %186 : vector<1x16xf32>
    %189 = arith.divf %187, %188 : vector<1x16xf32>
    %c0_102 = arith.constant 0 : index
    %c0_103 = arith.constant 0 : index
    %190 = vector.load %arg33[%c0_102, %c0_103] : memref<1x16xf32, #tpu.memory_space<vmem>>, vector<1x16xf32>
    tpu.vector_store %arg33[%c0_102, %c0_103], %189 {strides = array<i32>} : memref<1x16xf32, #tpu.memory_space<vmem>>, vector<1x16xf32>,
    return
  }
}

module attributes {stable_mosaic.version = 11 : i64} {
  func.func @encoder_block_kernel(%arg0: memref<16x32xf32, #tpu.memory_space<vmem>>, %arg1: memref<64x32xf32, #tpu.memory_space<vmem>>, %arg2: memref<64x16xf32, #tpu.memory_space<vmem>>, %arg3: memref<1x32xf32, #tpu.memory_space<vmem>>, %arg4: memref<1x32xf32, #tpu.memory_space<vmem>>, %arg5: memref<32x32xf32, #tpu.memory_space<vmem>>, %arg6: memref<32x32xf32, #tpu.memory_space<vmem>>, %arg7: memref<32x32xf32, #tpu.memory_space<vmem>>, %arg8: memref<32x32xf32, #tpu.memory_space<vmem>>, %arg9: memref<1x32xf32, #tpu.memory_space<vmem>>, %arg10: memref<1x32xf32, #tpu.memory_space<vmem>>, %arg11: memref<1x32xf32, #tpu.memory_space<vmem>>, %arg12: memref<1x32xf32, #tpu.memory_space<vmem>>, %arg13: memref<1x32xf32, #tpu.memory_space<vmem>>, %arg14: memref<1x32xf32, #tpu.memory_space<vmem>>, %arg15: memref<32x32xf32, #tpu.memory_space<vmem>>, %arg16: memref<1x32xf32, #tpu.memory_space<vmem>>, %arg17: memref<32x32xf32, #tpu.memory_space<vmem>>, %arg18: memref<1x32xf32, #tpu.memory_space<vmem>>, %arg19: memref<16x32xf32, #tpu.memory_space<vmem>>) attributes {dimension_semantics = [], scalar_prefetch = 0 : i64, scratch_operands = 0 : i64, tpu.core_type = #tpu.core_type<tc>} {
    %c0 = arith.constant 0 : index
    %c0_0 = arith.constant 0 : index
    %0 = vector.load %arg0[%c0, %c0_0] : memref<16x32xf32, #tpu.memory_space<vmem>>, vector<16x32xf32>
    %c0_1 = arith.constant 0 : index
    %c0_2 = arith.constant 0 : index
    %1 = vector.load %arg1[%c0_1, %c0_2] : memref<64x32xf32, #tpu.memory_space<vmem>>, vector<64x32xf32>
    %c0_3 = arith.constant 0 : index
    %c0_4 = arith.constant 0 : index
    %2 = vector.load %arg2[%c0_3, %c0_4] : memref<64x16xf32, #tpu.memory_space<vmem>>, vector<64x16xf32>
    %c0_5 = arith.constant 0 : index
    %c0_6 = arith.constant 0 : index
    %3 = vector.load %arg3[%c0_5, %c0_6] : memref<1x32xf32, #tpu.memory_space<vmem>>, vector<1x32xf32>
    %c0_7 = arith.constant 0 : index
    %c0_8 = arith.constant 0 : index
    %4 = vector.load %arg4[%c0_7, %c0_8] : memref<1x32xf32, #tpu.memory_space<vmem>>, vector<1x32xf32>
    %cst = arith.constant dense<0.000000e+00> : vector<16xf32>
    %5 = vector.multi_reduction <add>, %0, %cst [1] : vector<16x32xf32> to vector<16xf32>
    %6 = vector.shape_cast %5 : vector<16xf32> to vector<16x1xf32>
    %cst_9 = arith.constant 3.200000e+01 : f32
    %7 = vector.broadcast %cst_9 : f32 to vector<16x1xf32>
    %8 = arith.divf %6, %7 : vector<16x1xf32>
    %9 = vector.broadcast %8 : vector<16x1xf32> to vector<16x32xf32>
    %10 = arith.subf %0, %9 : vector<16x32xf32>
    %11 = arith.mulf %10, %10 : vector<16x32xf32>
    %cst_10 = arith.constant dense<0.000000e+00> : vector<16xf32>
    %12 = vector.multi_reduction <add>, %11, %cst_10 [1] : vector<16x32xf32> to vector<16xf32>
    %13 = vector.shape_cast %12 : vector<16xf32> to vector<16x1xf32>
    %cst_11 = arith.constant 3.200000e+01 : f32
    %14 = vector.broadcast %cst_11 : f32 to vector<16x1xf32>
    %15 = arith.divf %13, %14 : vector<16x1xf32>
    %16 = vector.broadcast %8 : vector<16x1xf32> to vector<16x32xf32>
    %17 = arith.subf %0, %16 : vector<16x32xf32>
    %cst_12 = arith.constant 9.99999974E-6 : f32
    %18 = vector.broadcast %cst_12 : f32 to vector<16x1xf32>
    %19 = arith.addf %15, %18 : vector<16x1xf32>
    %20 = math.rsqrt %19 : vector<16x1xf32>
    %21 = vector.broadcast %20 : vector<16x1xf32> to vector<16x32xf32>
    %22 = arith.mulf %17, %21 : vector<16x32xf32>
    %23 = vector.broadcast %3 : vector<1x32xf32> to vector<16x32xf32>
    %24 = arith.mulf %22, %23 : vector<16x32xf32>
    %25 = vector.broadcast %4 : vector<1x32xf32> to vector<16x32xf32>
    %26 = arith.addf %24, %25 : vector<16x32xf32>
    %c0_13 = arith.constant 0 : index
    %c0_14 = arith.constant 0 : index
    %27 = vector.load %arg5[%c0_13, %c0_14] : memref<32x32xf32, #tpu.memory_space<vmem>>, vector<32x32xf32>
    %c0_15 = arith.constant 0 : index
    %c0_16 = arith.constant 0 : index
    %28 = vector.load %arg6[%c0_15, %c0_16] : memref<32x32xf32, #tpu.memory_space<vmem>>, vector<32x32xf32>
    %c0_17 = arith.constant 0 : index
    %c0_18 = arith.constant 0 : index
    %29 = vector.load %arg7[%c0_17, %c0_18] : memref<32x32xf32, #tpu.memory_space<vmem>>, vector<32x32xf32>
    %c0_19 = arith.constant 0 : index
    %c0_20 = arith.constant 0 : index
    %30 = vector.load %arg8[%c0_19, %c0_20] : memref<32x32xf32, #tpu.memory_space<vmem>>, vector<32x32xf32>
    %c0_21 = arith.constant 0 : index
    %c0_22 = arith.constant 0 : index
    %31 = vector.load %arg9[%c0_21, %c0_22] : memref<1x32xf32, #tpu.memory_space<vmem>>, vector<1x32xf32>
    %c0_23 = arith.constant 0 : index
    %c0_24 = arith.constant 0 : index
    %32 = vector.load %arg10[%c0_23, %c0_24] : memref<1x32xf32, #tpu.memory_space<vmem>>, vector<1x32xf32>
    %c0_25 = arith.constant 0 : index
    %c0_26 = arith.constant 0 : index
    %33 = vector.load %arg11[%c0_25, %c0_26] : memref<1x32xf32, #tpu.memory_space<vmem>>, vector<1x32xf32>
    %c0_27 = arith.constant 0 : index
    %c0_28 = arith.constant 0 : index
    %34 = vector.load %arg12[%c0_27, %c0_28] : memref<1x32xf32, #tpu.memory_space<vmem>>, vector<1x32xf32>
    %cst_29 = arith.constant dense<0.000000e+00> : vector<16x32xf32>
    %35 = tpu.matmul %26, %27, %cst_29 {dimension_numbers = #tpu.dot_dimension_numbers<[1], [0], [0], [1], [0, 0, 1, 1], [], []>} : vector<16x32xf32>, vector<32x32xf32>, vector<16x32xf32> -> vector<16x32xf32>
    %36 = vector.broadcast %31 : vector<1x32xf32> to vector<16x32xf32>
    %37 = arith.addf %35, %36 : vector<16x32xf32>
    %cst_30 = arith.constant dense<0.000000e+00> : vector<16x32xf32>
    %38 = tpu.matmul %26, %28, %cst_30 {dimension_numbers = #tpu.dot_dimension_numbers<[1], [0], [0], [1], [0, 0, 1, 1], [], []>} : vector<16x32xf32>, vector<32x32xf32>, vector<16x32xf32> -> vector<16x32xf32>
    %39 = vector.broadcast %32 : vector<1x32xf32> to vector<16x32xf32>
    %40 = arith.addf %38, %39 : vector<16x32xf32>
    %cst_31 = arith.constant dense<0.000000e+00> : vector<16x32xf32>
    %41 = tpu.matmul %26, %29, %cst_31 {dimension_numbers = #tpu.dot_dimension_numbers<[1], [0], [0], [1], [0, 0, 1, 1], [], []>} : vector<16x32xf32>, vector<32x32xf32>, vector<16x32xf32> -> vector<16x32xf32>
    %42 = vector.broadcast %33 : vector<1x32xf32> to vector<16x32xf32>
    %43 = arith.addf %41, %42 : vector<16x32xf32>
    %44 = tpu.concatenate %37, %37, %37, %37 in 0 : vector<16x32xf32>, vector<16x32xf32>, vector<16x32xf32>, vector<16x32xf32> -> vector<64x32xf32>
    %45 = arith.mulf %44, %1 : vector<64x32xf32>
    "tpu.trace_start"() <{level = 10 : i32, message = "gd,nd->gn"}> : () -> ()
    %cst_32 = arith.constant dense<0.000000e+00> : vector<64x16xf32>
    %46 = tpu.matmul %45, %40, %cst_32 {dimension_numbers = #tpu.dot_dimension_numbers<[1], [1], [0], [0], [0, 0, 1, 0], [], []>} : vector<64x32xf32>, vector<16x32xf32>, vector<64x16xf32> -> vector<64x16xf32>
    "tpu.trace_stop"() : () -> ()
    %cst_33 = arith.constant 0.353553385 : f32
    %47 = vector.broadcast %cst_33 : f32 to vector<64x16xf32>
    %48 = arith.mulf %46, %47 : vector<64x16xf32>
    %49 = arith.addf %48, %2 : vector<64x16xf32>
    %cst_34 = arith.constant dense<0xFF800000> : vector<64xf32>
    %50 = vector.multi_reduction <maximumf>, %49, %cst_34 [1] : vector<64x16xf32> to vector<64xf32>
    %51 = vector.shape_cast %50 : vector<64xf32> to vector<64x1xf32>
    %52 = vector.broadcast %51 : vector<64x1xf32> to vector<64x16xf32>
    %53 = arith.subf %49, %52 : vector<64x16xf32>
    %54 = math.exp %53 : vector<64x16xf32>
    %cst_35 = arith.constant dense<0.000000e+00> : vector<64xf32>
    %55 = vector.multi_reduction <add>, %54, %cst_35 [1] : vector<64x16xf32> to vector<64xf32>
    %56 = vector.shape_cast %55 : vector<64xf32> to vector<64x1xf32>
    %57 = vector.broadcast %56 : vector<64x1xf32> to vector<64x16xf32>
    %58 = arith.divf %54, %57 : vector<64x16xf32>
    %cst_36 = arith.constant dense<0.000000e+00> : vector<64x32xf32>
    %59 = tpu.matmul %58, %43, %cst_36 {dimension_numbers = #tpu.dot_dimension_numbers<[1], [0], [0], [1], [0, 0, 1, 1], [], []>} : vector<64x16xf32>, vector<16x32xf32>, vector<64x32xf32> -> vector<64x32xf32>
    %60 = arith.mulf %59, %1 : vector<64x32xf32>
    %61 = vector.extract_strided_slice %60 {offsets = [0, 0], sizes = [16, 32], strides = [1, 1]} : vector<64x32xf32> to vector<16x32xf32>
    %62 = vector.extract_strided_slice %60 {offsets = [16, 0], sizes = [16, 32], strides = [1, 1]} : vector<64x32xf32> to vector<16x32xf32>
    %63 = arith.addf %61, %62 : vector<16x32xf32>
    %64 = vector.extract_strided_slice %60 {offsets = [32, 0], sizes = [16, 32], strides = [1, 1]} : vector<64x32xf32> to vector<16x32xf32>
    %65 = arith.addf %63, %64 : vector<16x32xf32>
    %66 = vector.extract_strided_slice %60 {offsets = [48, 0], sizes = [16, 32], strides = [1, 1]} : vector<64x32xf32> to vector<16x32xf32>
    %67 = arith.addf %65, %66 : vector<16x32xf32>
    %cst_37 = arith.constant dense<0.000000e+00> : vector<16x32xf32>
    %68 = tpu.matmul %67, %30, %cst_37 {dimension_numbers = #tpu.dot_dimension_numbers<[1], [0], [0], [1], [0, 0, 1, 1], [], []>} : vector<16x32xf32>, vector<32x32xf32>, vector<16x32xf32> -> vector<16x32xf32>
    %69 = vector.broadcast %34 : vector<1x32xf32> to vector<16x32xf32>
    %70 = arith.addf %68, %69 : vector<16x32xf32>
    %71 = arith.addf %70, %26 : vector<16x32xf32>
    %c0_38 = arith.constant 0 : index
    %c0_39 = arith.constant 0 : index
    %72 = vector.load %arg13[%c0_38, %c0_39] : memref<1x32xf32, #tpu.memory_space<vmem>>, vector<1x32xf32>
    %c0_40 = arith.constant 0 : index
    %c0_41 = arith.constant 0 : index
    %73 = vector.load %arg14[%c0_40, %c0_41] : memref<1x32xf32, #tpu.memory_space<vmem>>, vector<1x32xf32>
    %cst_42 = arith.constant dense<0.000000e+00> : vector<16xf32>
    %74 = vector.multi_reduction <add>, %71, %cst_42 [1] : vector<16x32xf32> to vector<16xf32>
    %75 = vector.shape_cast %74 : vector<16xf32> to vector<16x1xf32>
    %cst_43 = arith.constant 3.200000e+01 : f32
    %76 = vector.broadcast %cst_43 : f32 to vector<16x1xf32>
    %77 = arith.divf %75, %76 : vector<16x1xf32>
    %78 = vector.broadcast %77 : vector<16x1xf32> to vector<16x32xf32>
    %79 = arith.subf %71, %78 : vector<16x32xf32>
    %80 = arith.mulf %79, %79 : vector<16x32xf32>
    %cst_44 = arith.constant dense<0.000000e+00> : vector<16xf32>
    %81 = vector.multi_reduction <add>, %80, %cst_44 [1] : vector<16x32xf32> to vector<16xf32>
    %82 = vector.shape_cast %81 : vector<16xf32> to vector<16x1xf32>
    %cst_45 = arith.constant 3.200000e+01 : f32
    %83 = vector.broadcast %cst_45 : f32 to vector<16x1xf32>
    %84 = arith.divf %82, %83 : vector<16x1xf32>
    %85 = vector.broadcast %77 : vector<16x1xf32> to vector<16x32xf32>
    %86 = arith.subf %71, %85 : vector<16x32xf32>
    %cst_46 = arith.constant 9.99999974E-6 : f32
    %87 = vector.broadcast %cst_46 : f32 to vector<16x1xf32>
    %88 = arith.addf %84, %87 : vector<16x1xf32>
    %89 = math.rsqrt %88 : vector<16x1xf32>
    %90 = vector.broadcast %89 : vector<16x1xf32> to vector<16x32xf32>
    %91 = arith.mulf %86, %90 : vector<16x32xf32>
    %92 = vector.broadcast %72 : vector<1x32xf32> to vector<16x32xf32>
    %93 = arith.mulf %91, %92 : vector<16x32xf32>
    %94 = vector.broadcast %73 : vector<1x32xf32> to vector<16x32xf32>
    %95 = arith.addf %93, %94 : vector<16x32xf32>
    %c0_47 = arith.constant 0 : index
    %c0_48 = arith.constant 0 : index
    %96 = vector.load %arg15[%c0_47, %c0_48] : memref<32x32xf32, #tpu.memory_space<vmem>>, vector<32x32xf32>
    %cst_49 = arith.constant dense<0.000000e+00> : vector<16x32xf32>
    %97 = tpu.matmul %95, %96, %cst_49 {dimension_numbers = #tpu.dot_dimension_numbers<[1], [0], [0], [1], [0, 0, 1, 1], [], []>} : vector<16x32xf32>, vector<32x32xf32>, vector<16x32xf32> -> vector<16x32xf32>
    %c0_50 = arith.constant 0 : index
    %c0_51 = arith.constant 0 : index
    %98 = vector.load %arg16[%c0_50, %c0_51] : memref<1x32xf32, #tpu.memory_space<vmem>>, vector<1x32xf32>
    %99 = vector.broadcast %98 : vector<1x32xf32> to vector<16x32xf32>
    %100 = arith.addf %97, %99 : vector<16x32xf32>
    %cst_52 = arith.constant 0.000000e+00 : f32
    %101 = vector.broadcast %cst_52 : f32 to vector<16x32xf32>
    %102 = arith.maximumf %100, %101 : vector<16x32xf32>
    %c0_53 = arith.constant 0 : index
    %c0_54 = arith.constant 0 : index
    %103 = vector.load %arg17[%c0_53, %c0_54] : memref<32x32xf32, #tpu.memory_space<vmem>>, vector<32x32xf32>
    %cst_55 = arith.constant dense<0.000000e+00> : vector<16x32xf32>
    %104 = tpu.matmul %102, %103, %cst_55 {dimension_numbers = #tpu.dot_dimension_numbers<[1], [0], [0], [1], [0, 0, 1, 1], [], []>} : vector<16x32xf32>, vector<32x32xf32>, vector<16x32xf32> -> vector<16x32xf32>
    %c0_56 = arith.constant 0 : index
    %c0_57 = arith.constant 0 : index
    %105 = vector.load %arg18[%c0_56, %c0_57] : memref<1x32xf32, #tpu.memory_space<vmem>>, vector<1x32xf32>
    %106 = vector.broadcast %105 : vector<1x32xf32> to vector<16x32xf32>
    %107 = arith.addf %104, %106 : vector<16x32xf32>
    %108 = arith.addf %107, %95 : vector<16x32xf32>
    %c0_58 = arith.constant 0 : index
    %c0_59 = arith.constant 0 : index
    %109 = vector.load %arg19[%c0_58, %c0_59] : memref<16x32xf32, #tpu.memory_space<vmem>>, vector<16x32xf32>
    tpu.vector_store %arg19[%c0_58, %c0_59], %108 {strides = array<i32>} : memref<16x32xf32, #tpu.memory_space<vmem>>, vector<16x32xf32>,
    return
  }
}

</mosaic_0001>

<bundles_post_ra>
// kernel: saint_forward.2
= control target key start
LH: loop header
LB: loop body
LE: loop exit
PB: predicated region body
PF: predicated region fallthrough
CT: control target
= control target key end

     0   :  { %vm82_vm0 = vcmask 261120   ;;  %v876_v4 = vmov 32.0   ;;  %vm343_vm8 = vcmask 130048   ;;  %s1288_s0 = inlined_call_operand.vmem [shape: f32[16,32], index: 0, kind: input, shape index: {}]   ;;  %s1289_s3 = inlined_call_operand.vmem [shape: f32[1,32], index: 3, kind: input, shape index: {}]   ;;  %s1290_s4 = inlined_call_operand.vmem [shape: f32[1,32], index: 4, kind: input, shape index: {}]   ;;  %s1291_s9 = inlined_call_operand.vmem [shape: f32[1,32], index: 9, kind: input, shape index: {}]   ;;  %s1292_s5 = inlined_call_operand.vmem [shape: f32[32,32], index: 5, kind: input, shape index: {}]   ;;  %s1293_s6 = inlined_call_operand.vmem [shape: f32[32,32], index: 6, kind: input, shape index: {}]   ;;  %s1294_s7 = inlined_call_operand.vmem [shape: f32[32,32], index: 7, kind: input, shape index: {}]   ;;  %s1295_s10 = inlined_call_operand.vmem [shape: f32[1,32], index: 10, kind: input, shape index: {}]   ;;  %s1296_s11 = inlined_call_operand.vmem [shape: f32[1,32], index: 11, kind: input, shape index: {}]   ;;  %s1297_s1 = inlined_call_operand.vmem [shape: f32[64,32], index: 1, kind: input, shape index: {}]   ;;  %s1298_s2 = inlined_call_operand.vmem [shape: f32[64,16], index: 2, kind: input, shape index: {}]   ;;  %s1299_s12 = inlined_call_operand.vmem [shape: f32[1,32], index: 12, kind: input, shape index: {}]   ;;  %s1300_s8 = inlined_call_operand.vmem [shape: f32[32,32], index: 8, kind: input, shape index: {}]   ;;  %s1301_s13 = inlined_call_operand.vmem [shape: f32[1,32], index: 13, kind: input, shape index: {}]   ;;  %s1302_s14 = inlined_call_operand.vmem [shape: f32[1,32], index: 14, kind: input, shape index: {}]   ;;  %s1303_s16 = inlined_call_operand.vmem [shape: f32[1,32], index: 16, kind: input, shape index: {}]   ;;  %s1304_s15 = inlined_call_operand.vmem [shape: f32[32,32], index: 15, kind: input, shape index: {}]   ;;  %s1305_s17 = inlined_call_operand.vmem [shape: f32[32,32], index: 17, kind: input, shape index: {}]   ;;  %s1306_s18 = inlined_call_operand.vmem [shape: f32[1,32], index: 18, kind: input, shape index: {}]   ;;  %s1307_s19 = inlined_call_operand.vmem [shape: f32[16,32], index: 19, kind: output, shape index: {}]  }
   0x1   :  { %1309 = sst [smem:[#allocation2_spill]] %s1288_s0  ;;  %834 = vrcp.f32 %v876_v4  ;;  %v147_v21 = vld [vmem:[%s1292_s5 + $0x18] sm:$0xff]  ;;  %v146_v24 = vld [vmem:[%s1292_s5 + $0x10] sm:$0xff]  ;;  %v145_v27 = vld [vmem:[%s1292_s5 + $0x8] sm:$0xff] }
   0x2   :  { %1310 = sst [smem:[#allocation3_spill]] %s1289_s3  ;;  %v151_v22 = vld [vmem:[%s1293_s6 + $0x18] sm:$0xff]  ;;  %185 = vmatpush.msra.mxu0 %v147_v21  ;;  %v150_v25 = vld [vmem:[%s1293_s6 + $0x10] sm:$0xff]  ;;  %v149_v28 = vld [vmem:[%s1293_s6 + $0x8] sm:$0xff] }
   0x3   :  { %1311 = sst [smem:[#allocation4_spill]] %s1290_s4  ;;  %v155_v23 = vld [vmem:[%s1294_s7 + $0x18] sm:$0xff]  ;;  %211 = vmatpush.msra.mxu1 %v151_v22  ;;  %v154_v26 = vld [vmem:[%s1294_s7 + $0x10] sm:$0xff]  ;;  %v153_v29 = vld [vmem:[%s1294_s7 + $0x8] sm:$0xff] }
   0x4   :  { %1312 = sst [smem:[#allocation5_spill]] %s1291_s9  ;;  %237 = vmatpush.msra.mxu2 %v155_v23  ;;  %186 = vmatpush.msra.mxu0 %v146_v24  ;;  %v144_v30 = vld [vmem:[%s1292_s5] sm:$0xff]  ;;  %v1107_v23 = vld [vmem:[%s1297_s1 + $0x28] sm:$0xff] }
   0x5   :  { %s1313_s20 = sld [smem:[#allocation2_spill]]  ;;  %212 = vmatpush.msra.mxu1 %v150_v25  ;;  %v148_v31 = vld [vmem:[%s1293_s6] sm:$0xff]  ;;  %v1114_v25 = vld [vmem:[%s1297_s1 + $0x30] sm:$0xff] }
   0x6   :  { %238 = vmatpush.msra.mxu2 %v154_v26  ;;  %187 = vmatpush.msra.mxu0 %v145_v27  ;;  %v152_v32 = vld [vmem:[%s1294_s7] sm:$0xff]  ;;  %s1314_s7 = sld [smem:[#allocation3_spill]]  ;;  %v1121_v27 = vld [vmem:[%s1297_s1 + $0x38] sm:$0xff] }
   0x7   :  { %v835_v5 = vpop.eup %834  ;;  %213 = vmatpush.msra.mxu1 %v149_v28  ;;  %s1315_s30 = sld [smem:[#allocation4_spill]]  ;;  %v827_v63 = vld [vmem:[%s1295_s10] ss:$0 sm:$0xff] }
   0x8   :  { %v90_v6 = vmul.f32 32.0, %v835_v5  ;;  %vm94_vm1 = vweird.f32 %v835_v5  ;;  %239 = vmatpush.msra.mxu2 %v153_v29  ;;  %188 = vmatpush.msra.mxu0 %v144_v30  ;;  %s1316_s4 = sld [smem:[#allocation5_spill]]  ;;  %v1100_v21 = vld [vmem:[%s1297_s1 + $0x20] sm:$0xff] }
   0x9   :  { %214 = vmatpush.msra.mxu1 %v148_v31  ;;  %v72_v30 = vld [vmem:[%s1298_s2] sm:$0xff] }
   0xa   :  { %v91_v7 = vsub.f32 1.0, %v90_v6  ;;  %240 = vmatpush.msra.mxu2 %v152_v32 }
   0xb   :  { %v62_v0 = vld [vmem:[%s1313_s20] sm:$0xff]  ;;  %v63_v2 = vld [vmem:[%s1313_s20 + $0x8] sm:$0xff] }
   0xc   :  { %v83_v1 = vsel %vm82_vm0, %v62_v0, 0.0  ;;  %v86_v3 = vsel %vm82_vm0, %v63_v2, 0.0  ;;  %v92_v8 = vmul.f32 %v835_v5, %v91_v7  ;;  %v824_v47 = vld [vmem:[%s1314_s7] ss:$0 sm:$0xff] }
   0xd   :  { %84 = vadd.xlane.f32.xlu0 %v83_v1  ;;  %v825_v51 = vld [vmem:[%s1315_s30] ss:$0 sm:$0xff] }
   0xe   :  { %v93_v9 = vadd.f32 %v835_v5, %v92_v8  ;;  %v828_v8 = vld [vmem:[%s1296_s11] ss:$0 sm:$0xff] }
  0x10   :  { %v985_v10 = vsel %vm94_vm1, %v835_v5, %v93_v9  ;;  %v1070_v9 = vld [vmem:[%s1297_s1] sm:$0xff] }
  0x15   :  { %87 = vadd.xlane.f32.xlu0 %v86_v3 }
  0x80   :  { %v85_v11 = vpop.xlane.xlu0 %84 }
  0x81   :  { %v96_v12 = vmul.f32 %v985_v10, %v85_v11  ;;  %v1075_v11 = vld [vmem:[%s1297_s1 + $0x8] sm:$0xff] }
  0x83   :  { %v98_v13 = vsub.f32 %v62_v0, %v96_v12 }
  0x85   :  { %v100_v14 = vmul.f32 %v98_v13, %v98_v13 }
  0x87   :  { %v102_v15 = vsel %vm82_vm0, %v100_v14, 0.0 }
  0x88   :  { %103 = vadd.xlane.f32.xlu1 %v102_v15  ;;  %v88_v16 = vpop.xlane.xlu0 %87 }
  0x89   :  { %v97_v17 = vmul.f32 %v985_v10, %v88_v16 }
  0x8b   :  { %v990_v18 = vsub.f32 %v63_v2, %v97_v17  ;;  %v826_v2 = vld [vmem:[%s1316_s4] ss:$0 sm:$0xff]  ;;  %v1086_v17 = vld [vmem:[%s1297_s1 + $0x10] sm:$0xff] }
  0x8d   :  { %v101_v19 = vmul.f32 %v990_v18, %v990_v18 }
  0x8f   :  { %v105_v20 = vsel %vm82_vm0, %v101_v19, 0.0  ;;  %v1093_v19 = vld [vmem:[%s1297_s1 + $0x18] sm:$0xff] }
  0x90   :  { %106 = vadd.xlane.f32.xlu1 %v105_v20 }
  0xfb   :  { %v104_v33 = vpop.xlane.xlu1 %103 }
  0xfc   :  { %v108_v34 = vmul.f32 %v104_v33, %v985_v10 }
  0xfe   :  { %v110_v35 = vadd.f32 1e-05, %v108_v34 }
 0x100   :  { %836 = vrsqrt.f32 %v110_v35  ;;  %vm118_vm3 = vweird.f32 %v110_v35 }
 0x103   :  { %v107_v36 = vpop.xlane.xlu1 %106 }
 0x104   :  { %v109_v37 = vmul.f32 %v107_v36, %v985_v10 }
 0x106   :  { %v837_v38 = vpop.eup %836  ;;  %v111_v39 = vadd.f32 1e-05, %v109_v37 }
 0x107   :  { %v113_v40 = vmul.f32 %v837_v38, %v110_v35  ;;  %vm119_vm2 = vweird.f32 %v837_v38  ;;  %v73_v35 = vld [vmem:[%s1298_s2 + $0x8] sm:$0xff] }
 0x108   :  { %838 = vrsqrt.f32 %v111_v39  ;;  %vm120_vm4 = vmor %vm118_vm3, %vm119_vm2  ;;  %vm128_vm6 = vweird.f32 %v111_v39 }
 0x109   :  { %v114_v41 = vmul.f32 %v837_v38, %v113_v40  ;;  %v74_v40 = vld [vmem:[%s1298_s2 + $0x10] sm:$0xff] }
 0x10b   :  { %v115_v42 = vmul.f32 0.5, %v114_v41 }
 0x10d   :  { %v116_v43 = vsub.f32 1.5, %v115_v42 }
 0x10e   :  { %v839_v44 = vpop.eup %838 }
 0x10f   :  { %v117_v45 = vmul.f32 %v837_v38, %v116_v43  ;;  %v123_v46 = vmul.f32 %v839_v44, %v111_v39  ;;  %vm129_vm5 = vweird.f32 %v839_v44 }
 0x110   :  { %vm130_vm7 = vmor %vm128_vm6, %vm129_vm5 }
 0x111   :  { %v121_v48 = vsel %vm120_vm4, %v837_v38, %v117_v45  ;;  %v124_v49 = vmul.f32 %v839_v44, %v123_v46  ;;  %v75_v45 = vld [vmem:[%s1298_s2 + $0x18] sm:$0xff] }
 0x112   :  { %v132_v50 = vmul.f32 %v121_v48, %v98_v13 }
 0x113   :  { %v125_v52 = vmul.f32 0.5, %v124_v49 }
 0x114   :  { %v137_v53 = vmul.f32 %v824_v47, %v132_v50 }
 0x115   :  { %v126_v54 = vsub.f32 1.5, %v125_v52 }
 0x116   :  { %v1039_v55 = vadd.f32 %v825_v51, %v137_v53 }
 0x117   :  { %v127_v56 = vmul.f32 %v839_v44, %v126_v54 }
 0x118   :  { %789 = vmatmul.msk.f32.vlgmr.msra.gmra.mxu0 %vm82_vm0, %v1039_v55  ;;  %791 = vmatmul.msk.f32.vlgmr.msra.gmra.mxu1 %vm82_vm0, %v1039_v55 }
 0x119   :  { %v131_v57 = vsel %vm130_vm7, %v839_v44, %v127_v56  ;;  %793 = vmatmul.msk.f32.vlgmr.msra.gmra.mxu2 %vm82_vm0, %v1039_v55 }
 0x11a   :  { %v133_v58 = vmul.f32 %v131_v57, %v990_v18  ;;  %v76_v57 = vld [vmem:[%s1298_s2 + $0x20] sm:$0xff] }
 0x11c   :  { %v138_v59 = vmul.f32 %v824_v47, %v133_v58 }
 0x11e   :  { %v1048_v60 = vadd.f32 %v825_v51, %v138_v59  ;;  %v77_v51 = vld [vmem:[%s1298_s2 + $0x28] sm:$0xff]  ;;  %v78_v59 = vld [vmem:[%s1298_s2 + $0x30] sm:$0xff] }
 0x120   :  { %790 = vmatmul.msk.f32.gmra.mxu0 %vm82_vm0, %v1048_v60  ;;  %792 = vmatmul.msk.f32.gmra.mxu1 %vm82_vm0, %v1048_v60 }
 0x121   :  { %794 = vmatmul.msk.f32.gmra.mxu2 %vm82_vm0, %v1048_v60 }
 0x195   :  { %v190_v61 = vpop.f32.mrf.mxu0  ;;  %v216_v62 = vpop.f32.mrf.mxu1 }
 0x196   :  { %v191_v5 = vadd.f32 %v826_v2, %v190_v61  ;;  %v217_v6 = vadd.f32 %v827_v63, %v216_v62 }
 0x198   :  { %v248_v14 = vmul.f32 %v191_v5, %v1070_v9  ;;  %v250_v18 = vmul.f32 %v191_v5, %v1086_v17  ;;  %v252_v22 = vmul.f32 %v191_v5, %v1100_v21  ;;  %v254_v26 = vmul.f32 %v191_v5, %v1114_v25 }
 0x19c   :  { %v242_v0 = vpop.f32.mrf.mxu2 }
 0x19d   :  { %v219_v1 = vpop.f32.mrf.mxu1  ;;  %v193_v4 = vpop.f32.mrf.mxu0  ;;  %v243_v16 = vadd.f32 %v828_v8, %v242_v0 }
 0x19e   :  { %v220_v3 = vadd.f32 %v827_v63, %v219_v1  ;;  %v194_v7 = vadd.f32 %v826_v2, %v193_v4  ;;  %v79_v2 = vld [vmem:[%s1298_s2 + $0x38] sm:$0xff] }
 0x1a0   :  { %795 = vmatpush.xpose.msk.msrb.mxu1 %vm82_vm0, %v220_v3  ;;  %819 = vmatpush.xpose.msk.msra.mxu3 %vm82_vm0, %v220_v3  ;;  %v249_v15 = vmul.f32 %v194_v7, %v1075_v11  ;;  %v251_v20 = vmul.f32 %v194_v7, %v1093_v19  ;;  %v253_v24 = vmul.f32 %v194_v7, %v1107_v23 }
 0x1a1   :  { %v255_v28 = vmul.f32 %v194_v7, %v1121_v27 }
 0x1a4   :  { %v245_v12 = vpop.f32.mrf.mxu2  ;;  %796 = vmatpush.xpose.msk.msrb.mxu1 %vm82_vm0, %v217_v6  ;;  %820 = vmatpush.xpose.msk.msra.mxu3 %vm82_vm0, %v217_v6 }
 0x1a5   :  { %v246_v13 = vadd.f32 %v828_v8, %v245_v12 }
 0x1a7   :  { %574 = vmatpush.msrb.mxu0 %v246_v13  ;;  %821 = vmatpush.msrb.mxu2 %v246_v13 }
 0x1a8   :  { %797 = vmatmul.msk.f32.vlgmr.msrb.gmra.mxu1 %vm82_vm0, %v248_v14  ;;  %798 = vmatmul.msk.f32.vlgmr.msra.gmra.mxu3 %vm82_vm0, %v249_v15 }
 0x1a9   :  { %575 = vmatpush.msrb.mxu0 %v243_v16  ;;  %822 = vmatpush.msrb.mxu2 %v243_v16 }
 0x1b0   :  { %799 = vmatmul.msk.f32.gmra.mxu3 %vm82_vm0, %v250_v18 }
 0x1b8   :  { %800 = vmatmul.msk.f32.gmra.mxu3 %vm82_vm0, %v251_v20 }
 0x1c0   :  { %801 = vmatmul.msk.f32.gmra.mxu3 %vm82_vm0, %v252_v22 }
 0x1c8   :  { %802 = vmatmul.msk.f32.gmra.mxu3 %vm82_vm0, %v253_v24 }
 0x1d0   :  { %803 = vmatmul.msk.f32.gmra.mxu3 %vm82_vm0, %v254_v26 }
 0x1d8   :  { %804 = vmatmul.msk.f32.gmra.mxu3 %vm82_vm0, %v255_v28 }
 0x225   :  { %v303_v29 = vpop.f32.mrf.mxu1 }
 0x226   :  { %v327_v31 = vmul.f32 0.35355338, %v303_v29 }
 0x228   :  { %v335_v32 = vadd.f32 %v327_v31, %v72_v30 }
 0x22a   :  { %v344_v33 = vsel %vm343_vm8, %v335_v32, -inf }
 0x22b   :  { %345 = vmax.xlane.f32.xlu2 %v344_v33  ;;  %v306_v34 = vpop.f32.mrf.mxu3 }
 0x22c   :  { %v328_v36 = vmul.f32 0.35355338, %v306_v34 }
 0x22e   :  { %v336_v37 = vadd.f32 %v328_v36, %v73_v35 }
 0x230   :  { %v347_v38 = vsel %vm343_vm8, %v336_v37, -inf }
 0x233   :  { %348 = vmax.xlane.f32.xlu2 %v347_v38  ;;  %v309_v39 = vpop.f32.mrf.mxu3 }
 0x234   :  { %v329_v41 = vmul.f32 0.35355338, %v309_v39 }
 0x236   :  { %v337_v42 = vadd.f32 %v329_v41, %v74_v40 }
 0x238   :  { %v350_v43 = vsel %vm343_vm8, %v337_v42, -inf }
 0x239   :  { %351 = vmax.xlane.f32.xlu0 %v350_v43 }
 0x23b   :  { %v312_v44 = vpop.f32.mrf.mxu3 }
 0x23c   :  { %v330_v46 = vmul.f32 0.35355338, %v312_v44 }
 0x23e   :  { %v338_v47 = vadd.f32 %v330_v46, %v75_v45 }
 0x240   :  { %v353_v48 = vsel %vm343_vm8, %v338_v47, -inf }
 0x241   :  { %354 = vmax.xlane.f32.xlu2 %v353_v48 }
 0x243   :  { %v315_v49 = vpop.f32.mrf.mxu3 }
 0x244   :  { %v331_v54 = vmul.f32 0.35355338, %v315_v49 }
 0x246   :  { %v339_v62 = vadd.f32 %v331_v54, %v76_v57 }
 0x248   :  { %v356_v0 = vsel %vm343_vm8, %v339_v62, -inf }
 0x24b   :  { %v318_v50 = vpop.f32.mrf.mxu3 }
 0x24c   :  { %v332_v52 = vmul.f32 0.35355338, %v318_v50 }
 0x24e   :  { %v340_v53 = vadd.f32 %v332_v52, %v77_v51 }
 0x250   :  { %v359_v56 = vsel %vm343_vm8, %v340_v53, -inf }
 0x251   :  { %360 = vmax.xlane.f32.xlu1 %v359_v56 }
 0x253   :  { %v321_v58 = vpop.f32.mrf.mxu3 }
 0x254   :  { %v333_v61 = vmul.f32 0.35355338, %v321_v58 }
 0x256   :  { %v341_v63 = vadd.f32 %v333_v61, %v78_v59 }
 0x258   :  { %v362_v1 = vsel %vm343_vm8, %v341_v63, -inf }
 0x259   :  { %357 = vmax.xlane.f32.xlu1 %v356_v0  ;;  %363 = vmax.xlane.f32.xlu0 %v362_v1 }
 0x25b   :  { %v324_v3 = vpop.f32.mrf.mxu3 }
 0x25c   :  { %v334_v4 = vmul.f32 0.35355338, %v324_v3 }
 0x25e   :  { %v342_v5 = vadd.f32 %v334_v4, %v79_v2 }
 0x260   :  { %v365_v6 = vsel %vm343_vm8, %v342_v5, -inf }
 0x261   :  { %366 = vmax.xlane.f32.xlu2 %v365_v6 }
 0x29e   :  { %v346_v7 = vpop.xlane.xlu2 %345 }
 0x29f   :  { %v368_v8 = vsub.f32 %v335_v32, %v346_v7 }
 0x2a1   :  { %v376_v12 = vmul.f32 1.442695, %v368_v8 }
 0x2a3   :  { %840 = vpow2.f32 %v376_v12 }
 0x2a6   :  { %v349_v13 = vpop.xlane.xlu2 %348 }
 0x2a7   :  { %v369_v14 = vsub.f32 %v336_v37, %v349_v13 }
 0x2a9   :  { %v1157_v15 = vpop.eup %840  ;;  %v378_v16 = vmul.f32 1.442695, %v369_v14 }
 0x2aa   :  { %v392_v18 = vsel %vm343_vm8, %v1157_v15, 0.0 }
 0x2ab   :  { %842 = vpow2.f32 %v378_v16  ;;  %393 = vadd.xlane.f32.xlu0 %v392_v18 }
 0x2ac   :  { %v352_v20 = vpop.xlane.xlu0 %351 }
 0x2ad   :  { %v370_v22 = vsub.f32 %v337_v42, %v352_v20 }
 0x2af   :  { %v380_v24 = vmul.f32 1.442695, %v370_v22 }
 0x2b1   :  { %v1161_v26 = vpop.eup %842  ;;  %844 = vpow2.f32 %v380_v24 }
 0x2b2   :  { %v395_v28 = vsel %vm343_vm8, %v1161_v26, 0.0 }
 0x2b3   :  { %396 = vadd.xlane.f32.xlu1 %v395_v28 }
 0x2b4   :  { %v355_v29 = vpop.xlane.xlu2 %354 }
 0x2b5   :  { %v371_v30 = vsub.f32 %v338_v47, %v355_v29 }
 0x2b7   :  { %v1165_v31 = vpop.eup %844  ;;  %v382_v32 = vmul.f32 1.442695, %v371_v30 }
 0x2b8   :  { %v398_v33 = vsel %vm343_vm8, %v1165_v31, 0.0 }
 0x2b9   :  { %846 = vpow2.f32 %v382_v32  ;;  %399 = vadd.xlane.f32.xlu2 %v398_v33 }
 0x2bf   :  { %v1169_v34 = vpop.eup %846 }
 0x2c0   :  { %v401_v35 = vsel %vm343_vm8, %v1169_v34, 0.0 }
 0x2c1   :  { %402 = vadd.xlane.f32.xlu1 %v401_v35 }
 0x2c4   :  { %v361_v36 = vpop.xlane.xlu1 %360 }
 0x2c5   :  { %v373_v37 = vsub.f32 %v340_v53, %v361_v36 }
 0x2c7   :  { %v386_v38 = vmul.f32 1.442695, %v373_v37 }
 0x2c9   :  { %848 = vpow2.f32 %v386_v38 }
 0x2cc   :  { %v358_v39 = vpop.xlane.xlu1 %357  ;;  %v364_v40 = vpop.xlane.xlu0 %363 }
 0x2cd   :  { %v372_v41 = vsub.f32 %v339_v62, %v358_v39  ;;  %v374_v42 = vsub.f32 %v341_v63, %v364_v40 }
 0x2cf   :  { %v1173_v43 = vpop.eup %848  ;;  %v384_v44 = vmul.f32 1.442695, %v372_v41  ;;  %v388_v45 = vmul.f32 1.442695, %v374_v42 }
 0x2d0   :  { %v407_v46 = vsel %vm343_vm8, %v1173_v43, 0.0 }
 0x2d1   :  { %850 = vpow2.f32 %v384_v44  ;;  %408 = vadd.xlane.f32.xlu0 %v407_v46 }
 0x2d2   :  { %852 = vpow2.f32 %v388_v45 }
 0x2d4   :  { %v367_v47 = vpop.xlane.xlu2 %366 }
 0x2d5   :  { %v375_v48 = vsub.f32 %v342_v5, %v367_v47 }
 0x2d7   :  { %v1177_v49 = vpop.eup %850  ;;  %v390_v50 = vmul.f32 1.442695, %v375_v48 }
 0x2d8   :  { %v1179_v51 = vpop.eup %852  ;;  %v404_v52 = vsel %vm343_vm8, %v1177_v49, 0.0 }
 0x2d9   :  { %854 = vpow2.f32 %v390_v50  ;;  %405 = vadd.xlane.f32.xlu0 %v404_v52  ;;  %v410_v53 = vsel %vm343_vm8, %v1179_v51, 0.0 }
 0x2da   :  { %411 = vadd.xlane.f32.xlu2 %v410_v53 }
 0x2df   :  { %v1185_v54 = vpop.eup %854 }
 0x2e0   :  { %v413_v56 = vsel %vm343_vm8, %v1185_v54, 0.0 }
 0x2e1   :  { %414 = vadd.xlane.f32.xlu1 %v413_v56 }
 0x31e   :  { %v394_v57 = vpop.xlane.xlu0 %393 }
 0x31f   :  { %856 = vrcp.f32 %v394_v57  ;;  %v427_v63 = vand.u32 2147483648, %v394_v57  ;;  %v425_v1 = vand.u32 2147483647, %v394_v57  ;;  %vm421_vm10 = vweird.f32 %v394_v57 }
 0x321   :  { %v428_v5 = vor.u32 1.1754944e-38, %v427_v63  ;;  %vm426_vm12 = vcmp.eq.f32.partialorder %v425_v1, 8.507059e+37 }
 0x325   :  { %v857_v58 = vpop.eup %856 }
 0x326   :  { %v417_v59 = vmul.f32 %v857_v58, %v394_v57  ;;  %v397_v61 = vpop.xlane.xlu1 %396  ;;  %vm422_vm9 = vweird.f32 %v857_v58 }
 0x327   :  { %858 = vrcp.f32 %v397_v61  ;;  %vm423_vm11 = vmor %vm421_vm10, %vm422_vm9  ;;  %v442_v14 = vand.u32 2147483648, %v397_v61  ;;  %v440_v18 = vand.u32 2147483647, %v397_v61  ;;  %vm436_vm14 = vweird.f32 %v397_v61 }
 0x328   :  { %v418_v62 = vsub.f32 1.0, %v417_v59 }
 0x329   :  { %v443_v29 = vor.u32 1.1754944e-38, %v442_v14  ;;  %vm441_vm1 = vcmp.eq.f32.partialorder %v440_v18, 8.507059e+37 }
 0x32a   :  { %v419_v0 = vmul.f32 %v857_v58, %v418_v62 }
 0x32c   :  { %v420_v2 = vadd.f32 %v857_v58, %v419_v0  ;;  %v400_v3 = vpop.xlane.xlu2 %399 }
 0x32d   :  { %v859_v4 = vpop.eup %858  ;;  %860 = vrcp.f32 %v400_v3  ;;  %v457_v33 = vand.u32 2147483648, %v400_v3  ;;  %v455_v37 = vand.u32 2147483647, %v400_v3  ;;  %vm451_vm3 = vweird.f32 %v400_v3 }
 0x32e   :  { %v432_v6 = vmul.f32 %v859_v4, %v397_v61  ;;  %v424_v7 = vsel %vm423_vm11, %v857_v58, %v420_v2  ;;  %vm437_vm13 = vweird.f32 %v859_v4 }
 0x32f   :  { %v429_v8 = vsel %vm426_vm12, %v428_v5, %v424_v7  ;;  %vm438_vm15 = vmor %vm436_vm14, %vm437_vm13  ;;  %v458_v40 = vor.u32 1.1754944e-38, %v457_v33  ;;  %vm456_vm5 = vcmp.eq.f32.partialorder %v455_v37, 8.507059e+37 }
 0x330   :  { %v433_v12 = vsub.f32 1.0, %v432_v6  ;;  %v430_v13 = vmul.f32 %v1157_v15, %v429_v8 }
 0x332   :  { %v434_v16 = vmul.f32 %v859_v4, %v433_v12  ;;  %805 = vmatmul.msk.f32.vlgmr.msrb.gmra.mxu0 %vm343_vm8, %v430_v13 }
 0x333   :  { %v861_v20 = vpop.eup %860 }
 0x334   :  { %v447_v22 = vmul.f32 %v861_v20, %v400_v3  ;;  %v403_v24 = vpop.xlane.xlu1 %402  ;;  %v435_v28 = vadd.f32 %v859_v4, %v434_v16  ;;  %vm452_vm2 = vweird.f32 %v861_v20 }
 0x335   :  { %862 = vrcp.f32 %v403_v24  ;;  %vm453_vm4 = vmor %vm451_vm3, %vm452_vm2  ;;  %v472_v47 = vand.u32 2147483648, %v403_v24  ;;  %vm466_vm7 = vweird.f32 %v403_v24 }
 0x336   :  { %v448_v30 = vsub.f32 1.0, %v447_v22  ;;  %v439_v32 = vsel %vm438_vm15, %v859_v4, %v435_v28 }
 0x337   :  { %v444_v35 = vsel %vm441_vm1, %v443_v29, %v439_v32  ;;  %v473_v52 = vor.u32 1.1754944e-38, %v472_v47 }
 0x338   :  { %v449_v15 = vmul.f32 %v861_v20, %v448_v30  ;;  %v445_v36 = vmul.f32 %v1161_v26, %v444_v35  ;;  %v470_v26 = vand.u32 2147483647, %v403_v24 }
 0x33a   :  { %806 = vmatmul.msk.f32.gmra.mxu0 %vm343_vm8, %v445_v36  ;;  %v450_v38 = vadd.f32 %v861_v20, %v449_v15  ;;  %vm471_vm10 = vcmp.eq.f32.partialorder %v470_v26, 8.507059e+37 }
 0x33b   :  { %v863_v39 = vpop.eup %862 }
 0x33c   :  { %v462_v41 = vmul.f32 %v863_v39, %v403_v24  ;;  %v454_v42 = vsel %vm453_vm4, %v861_v20, %v450_v38  ;;  %vm467_vm6 = vweird.f32 %v863_v39 }
 0x33d   :  { %v459_v44 = vsel %vm456_vm5, %v458_v40, %v454_v42  ;;  %vm468_vm9 = vmor %vm466_vm7, %vm467_vm6 }
 0x33e   :  { %v463_v45 = vsub.f32 1.0, %v462_v41  ;;  %v460_v48 = vmul.f32 %v1165_v31, %v459_v44 }
 0x340   :  { %v464_v46 = vmul.f32 %v863_v39, %v463_v45 }
 0x342   :  { %807 = vmatmul.msk.f32.gmra.mxu0 %vm343_vm8, %v460_v48  ;;  %v465_v50 = vadd.f32 %v863_v39, %v464_v46 }
 0x344   :  { %v409_v53 = vpop.xlane.xlu0 %408  ;;  %v469_v56 = vsel %vm468_vm9, %v863_v39, %v465_v50 }
 0x345   :  { %864 = vrcp.f32 %v409_v53  ;;  %v474_v57 = vsel %vm471_vm10, %v473_v52, %v469_v56  ;;  %v502_v1 = vand.u32 2147483648, %v409_v53  ;;  %v500_v2 = vand.u32 2147483647, %v409_v53  ;;  %v158_v56 = vld [vmem:[%s1300_s8 + $0x10] sm:$0xff] }
 0x346   :  { %v475_v58 = vmul.f32 %v1169_v34, %v474_v57  ;;  %vm496_vm12 = vweird.f32 %v409_v53 }
 0x347   :  { %v503_v6 = vor.u32 1.1754944e-38, %v502_v1  ;;  %vm501_vm14 = vcmp.eq.f32.partialorder %v500_v2, 8.507059e+37 }
 0x34a   :  { %808 = vmatmul.msk.f32.gmra.mxu0 %vm343_vm8, %v475_v58  ;;  %v157_v58 = vld [vmem:[%s1300_s8 + $0x8] sm:$0xff] }
 0x34b   :  { %v865_v59 = vpop.eup %864 }
 0x34c   :  { %v492_v61 = vmul.f32 %v865_v59, %v409_v53  ;;  %v406_v31 = vpop.xlane.xlu0 %405  ;;  %vm497_vm11 = vweird.f32 %v865_v59 }
 0x34d   :  { %866 = vrcp.f32 %v406_v31  ;;  %v412_v62 = vpop.xlane.xlu2 %411  ;;  %vm498_vm13 = vmor %vm496_vm12, %vm497_vm11  ;;  %v487_v16 = vand.u32 2147483648, %v406_v31  ;;  %v485_v28 = vand.u32 2147483647, %v406_v31  ;;  %vm481_vm2 = vweird.f32 %v406_v31 }
 0x34e   :  { %v493_v63 = vsub.f32 1.0, %v492_v61  ;;  %868 = vrcp.f32 %v412_v62  ;;  %v517_v24 = vand.u32 2147483648, %v412_v62  ;;  %v515_v30 = vand.u32 2147483647, %v412_v62 }
 0x34f   :  { %v488_v35 = vor.u32 1.1754944e-38, %v487_v16  ;;  %vm511_vm3 = vweird.f32 %v412_v62  ;;  %vm486_vm5 = vcmp.eq.f32.partialorder %v485_v28, 8.507059e+37 }
 0x350   :  { %v494_v0 = vmul.f32 %v865_v59, %v493_v63  ;;  %v518_v36 = vor.u32 1.1754944e-38, %v517_v24  ;;  %vm516_vm7 = vcmp.eq.f32.partialorder %v515_v30, 8.507059e+37 }
 0x352   :  { %v495_v3 = vadd.f32 %v865_v59, %v494_v0 }
 0x353   :  { %v867_v4 = vpop.eup %866 }
 0x354   :  { %v869_v5 = vpop.eup %868  ;;  %v477_v34 = vmul.f32 %v867_v4, %v406_v31  ;;  %v415_v7 = vpop.xlane.xlu1 %414  ;;  %v499_v8 = vsel %vm498_vm13, %v865_v59, %v495_v3  ;;  %vm482_vm15 = vweird.f32 %v867_v4 }
 0x355   :  { %v507_v12 = vmul.f32 %v869_v5, %v412_v62  ;;  %870 = vrcp.f32 %v415_v7  ;;  %v504_v14 = vsel %vm501_vm14, %v503_v6, %v499_v8  ;;  %vm512_vm1 = vweird.f32 %v869_v5  ;;  %vm483_vm4 = vmor %vm481_vm2, %vm482_vm15 }
 0x356   :  { %v478_v13 = vsub.f32 1.0, %v477_v34  ;;  %v505_v20 = vmul.f32 %v1173_v43, %v504_v14  ;;  %vm513_vm6 = vmor %vm511_vm3, %vm512_vm1  ;;  %v532_v44 = vand.u32 2147483648, %v415_v7  ;;  %v530_v47 = vand.u32 2147483647, %v415_v7 }
 0x357   :  { %v508_v18 = vsub.f32 1.0, %v507_v12  ;;  %vm526_vm10 = vweird.f32 %v415_v7 }
 0x358   :  { %v479_v22 = vmul.f32 %v867_v4, %v478_v13  ;;  %810 = vmatmul.msk.f32.vlgmr.msrb.gmra.mxu2 %vm343_vm8, %v505_v20  ;;  %v533_v26 = vor.u32 1.1754944e-38, %v532_v44  ;;  %vm531_vm12 = vcmp.eq.f32.partialorder %v530_v47, 8.507059e+37  ;;  %v745_v44 = vld [vmem:[%s1305_s17 + $0x8] sm:$0xff] }
 0x359   :  { %v509_v29 = vmul.f32 %v869_v5, %v508_v18 }
 0x35a   :  { %v480_v32 = vadd.f32 %v867_v4, %v479_v22 }
 0x35b   :  { %v871_v33 = vpop.eup %870  ;;  %v510_v15 = vadd.f32 %v869_v5, %v509_v29 }
 0x35c   :  { %v522_v37 = vmul.f32 %v871_v33, %v415_v7  ;;  %v484_v38 = vsel %vm483_vm4, %v867_v4, %v480_v32  ;;  %vm527_vm9 = vweird.f32 %v871_v33 }
 0x35d   :  { %v489_v43 = vsel %vm486_vm5, %v488_v35, %v484_v38  ;;  %v514_v39 = vsel %vm513_vm6, %v869_v5, %v510_v15  ;;  %vm528_vm11 = vmor %vm526_vm10, %vm527_vm9  ;;  %v705_v38 = vld [vmem:[%s1304_s15] sm:$0xff] }
 0x35e   :  { %v523_v40 = vsub.f32 1.0, %v522_v37  ;;  %v490_v41 = vmul.f32 %v1177_v49, %v489_v43  ;;  %v519_v42 = vsel %vm516_vm7, %v518_v36, %v514_v39  ;;  %v707_v36 = vld [vmem:[%s1304_s15 + $0x10] sm:$0xff]  ;;  %v706_v37 = vld [vmem:[%s1304_s15 + $0x8] sm:$0xff] }
 0x35f   :  { %v520_v45 = vmul.f32 %v1179_v51, %v519_v42  ;;  %v159_v51 = vld [vmem:[%s1300_s8 + $0x18] sm:$0xff]  ;;  %v746_v42 = vld [vmem:[%s1305_s17 + $0x10] sm:$0xff] }
 0x360   :  { %v524_v46 = vmul.f32 %v871_v33, %v523_v40  ;;  %809 = vmatmul.msk.f32.gmra.mxu0 %vm343_vm8, %v490_v41  ;;  %636 = vmatpush.msra.mxu1 %v159_v51  ;;  %v747_v41 = vld [vmem:[%s1305_s17 + $0x18] sm:$0xff] }
 0x361   :  { %811 = vmatmul.msk.f32.gmra.mxu2 %vm343_vm8, %v520_v45 }
 0x362   :  { %v525_v48 = vadd.f32 %v871_v33, %v524_v46  ;;  %637 = vmatpush.msra.mxu1 %v158_v56 }
 0x364   :  { %v529_v50 = vsel %vm528_vm11, %v871_v33, %v525_v48  ;;  %638 = vmatpush.msra.mxu1 %v157_v58 }
 0x365   :  { %v534_v52 = vsel %vm531_vm12, %v533_v26, %v529_v50 }
 0x366   :  { %v535_v49 = vmul.f32 %v1185_v54, %v534_v52  ;;  %v156_v54 = vld [vmem:[%s1300_s8] sm:$0xff] }
 0x367   :  { %639 = vmatpush.msra.mxu1 %v156_v54 }
 0x369   :  { %812 = vmatmul.msk.f32.gmra.mxu2 %vm343_vm8, %v535_v49  ;;  %770 = vmatpush.msrb.mxu1 %v747_v41 }
 0x36b   :  { %771 = vmatpush.msrb.mxu1 %v746_v42 }
 0x36d   :  { %772 = vmatpush.msrb.mxu1 %v745_v44 }
 0x3af   :  { %v577_v53 = vpop.f32.mrf.mxu0 }
 0x3b0   :  { %v601_v0 = vmul.f32 %v577_v53, %v1070_v9 }
 0x3b7   :  { %v580_v57 = vpop.f32.mrf.mxu0 }
 0x3b8   :  { %v602_v7 = vmul.f32 %v580_v57, %v1075_v11  ;;  %v830_v57 = vld [vmem:[%s1301_s13] ss:$0 sm:$0xff] }
 0x3bf   :  { %v583_v59 = vpop.f32.mrf.mxu0 }
 0x3c0   :  { %v603_v63 = vmul.f32 %v583_v59, %v1086_v17  ;;  %v831_v59 = vld [vmem:[%s1302_s14] ss:$0 sm:$0xff] }
 0x3c2   :  { %v609_v2 = vadd.f32 %v603_v63, %v601_v0 }
 0x3c7   :  { %v586_v61 = vpop.f32.mrf.mxu0 }
 0x3c8   :  { %v604_v6 = vmul.f32 %v586_v61, %v1093_v19 }
 0x3ca   :  { %v610_v12 = vadd.f32 %v604_v6, %v602_v7  ;;  %v832_v6 = vld [vmem:[%s1303_s16] ss:$0 sm:$0xff] }
 0x3db   :  { %v592_v31 = vpop.f32.mrf.mxu2 }
 0x3dc   :  { %v606_v8 = vmul.f32 %v592_v31, %v1107_v23 }
 0x3dd   :  { %v589_v62 = vpop.f32.mrf.mxu0 }
 0x3de   :  { %v605_v1 = vmul.f32 %v589_v62, %v1100_v21  ;;  %v612_v13 = vadd.f32 %v610_v12, %v606_v8 }
 0x3e0   :  { %v611_v4 = vadd.f32 %v609_v2, %v605_v1 }
 0x3e4   :  { %v595_v3 = vpop.f32.mrf.mxu2 }
 0x3e5   :  { %v607_v5 = vmul.f32 %v595_v3, %v1114_v25  ;;  %v829_v25 = vld [vmem:[%s1299_s12] ss:$0 sm:$0xff] }
 0x3e7   :  { %v613_v34 = vadd.f32 %v611_v4, %v607_v5  ;;  %v744_v5 = vld [vmem:[%s1305_s17] sm:$0xff] }
 0x3e8   :  { %773 = vmatpush.msrb.mxu1 %v744_v5 }
 0x3e9   :  { %813 = vmatmul.msk.f32.vlgmr.msra.gmra.mxu1 %vm82_vm0, %v613_v34 }
 0x3ec   :  { %v598_v17 = vpop.f32.mrf.mxu2 }
 0x3ed   :  { %v608_v9 = vmul.f32 %v598_v17, %v1121_v27 }
 0x3ef   :  { %v614_v21 = vadd.f32 %v612_v13, %v608_v9  ;;  %v833_v9 = vld [vmem:[%s1306_s18] ss:$0 sm:$0xff] }
 0x3f1   :  { %814 = vmatmul.msk.f32.gmra.mxu1 %vm82_vm0, %v614_v21 }
 0x466   :  { %v641_v19 = vpop.f32.mrf.mxu1 }
 0x467   :  { %v642_v14 = vadd.f32 %v829_v25, %v641_v19 }
 0x469   :  { %v647_v11 = vadd.f32 %v642_v14, %v1039_v55 }
 0x46b   :  { %v651_v23 = vsel %vm82_vm0, %v647_v11, 0.0 }
 0x46c   :  { %652 = vadd.xlane.f32.xlu2 %v651_v23 }
 0x46e   :  { %v644_v16 = vpop.f32.mrf.mxu1 }
 0x46f   :  { %v645_v18 = vadd.f32 %v829_v25, %v644_v16 }
 0x471   :  { %v648_v20 = vadd.f32 %v645_v18, %v1048_v60  ;;  %v708_v60 = vld [vmem:[%s1304_s15 + $0x18] sm:$0xff] }
 0x472   :  { %731 = vmatpush.msra.mxu2 %v708_v60 }
 0x473   :  { %v654_v27 = vsel %vm82_vm0, %v648_v20, 0.0 }
 0x474   :  { %655 = vadd.xlane.f32.xlu0 %v654_v27  ;;  %732 = vmatpush.msra.mxu2 %v707_v36 }
 0x476   :  { %733 = vmatpush.msra.mxu2 %v706_v37 }
 0x478   :  { %734 = vmatpush.msra.mxu2 %v705_v38 }
 0x4df   :  { %v653_v22 = vpop.xlane.xlu2 %652 }
 0x4e0   :  { %v657_v24 = vmul.f32 %v653_v22, %v985_v10 }
 0x4e2   :  { %v659_v28 = vsub.f32 %v647_v11, %v657_v24 }
 0x4e4   :  { %v661_v29 = vmul.f32 %v659_v28, %v659_v28 }
 0x4e6   :  { %v663_v30 = vsel %vm82_vm0, %v661_v29, 0.0 }
 0x4e7   :  { %664 = vadd.xlane.f32.xlu1 %v663_v30  ;;  %v656_v32 = vpop.xlane.xlu0 %655 }
 0x4e8   :  { %v658_v55 = vmul.f32 %v656_v32, %v985_v10 }
 0x4ea   :  { %v660_v33 = vsub.f32 %v648_v20, %v658_v55 }
 0x4ec   :  { %v662_v35 = vmul.f32 %v660_v33, %v660_v33 }
 0x4ee   :  { %v666_v15 = vsel %vm82_vm0, %v662_v35, 0.0 }
 0x4ef   :  { %667 = vadd.xlane.f32.xlu2 %v666_v15 }
 0x55a   :  { %v665_v43 = vpop.xlane.xlu1 %664 }
 0x55b   :  { %v669_v39 = vmul.f32 %v665_v43, %v985_v10 }
 0x55d   :  { %v671_v40 = vadd.f32 1e-05, %v669_v39 }
 0x55f   :  { %872 = vrsqrt.f32 %v671_v40  ;;  %vm679_vm13 = vweird.f32 %v671_v40 }
 0x562   :  { %v668_v45 = vpop.xlane.xlu2 %667 }
 0x563   :  { %v670_v46 = vmul.f32 %v668_v45, %v985_v10 }
 0x565   :  { %v873_v47 = vpop.eup %872  ;;  %v672_v48 = vadd.f32 1e-05, %v670_v46 }
 0x566   :  { %v674_v26 = vmul.f32 %v873_v47, %v671_v40  ;;  %vm680_vm8 = vweird.f32 %v873_v47 }
 0x567   :  { %874 = vrsqrt.f32 %v672_v48  ;;  %vm681_vm14 = vmor %vm679_vm13, %vm680_vm8  ;;  %vm689_vm1 = vweird.f32 %v672_v48 }
 0x568   :  { %v675_v50 = vmul.f32 %v873_v47, %v674_v26 }
 0x56a   :  { %v676_v52 = vmul.f32 0.5, %v675_v50 }
 0x56c   :  { %v677_v49 = vsub.f32 1.5, %v676_v52 }
 0x56d   :  { %v875_v53 = vpop.eup %874 }
 0x56e   :  { %v678_v51 = vmul.f32 %v873_v47, %v677_v49  ;;  %v684_v56 = vmul.f32 %v875_v53, %v672_v48  ;;  %vm690_vm15 = vweird.f32 %v875_v53 }
 0x56f   :  { %vm691_vm2 = vmor %vm689_vm1, %vm690_vm15 }
 0x570   :  { %v682_v58 = vsel %vm681_vm14, %v873_v47, %v678_v51  ;;  %v685_v10 = vmul.f32 %v875_v53, %v684_v56 }
 0x571   :  { %v693_v54 = vmul.f32 %v682_v58, %v659_v28 }
 0x572   :  { %v686_v61 = vmul.f32 0.5, %v685_v10 }
 0x573   :  { %v698_v31 = vmul.f32 %v830_v57, %v693_v54 }
 0x574   :  { %v687_v62 = vsub.f32 1.5, %v686_v61 }
 0x575   :  { %v703_v63 = vadd.f32 %v831_v59, %v698_v31 }
 0x576   :  { %v688_v0 = vmul.f32 %v875_v53, %v687_v62 }
 0x577   :  { %815 = vmatmul.msk.f32.vlgmr.msra.gmra.mxu2 %vm82_vm0, %v703_v63 }
 0x578   :  { %v692_v1 = vsel %vm691_vm2, %v875_v53, %v688_v0 }
 0x579   :  { %v694_v2 = vmul.f32 %v692_v1, %v660_v33 }
 0x57b   :  { %v699_v3 = vmul.f32 %v830_v57, %v694_v2 }
 0x57d   :  { %v704_v4 = vadd.f32 %v831_v59, %v699_v3 }
 0x57f   :  { %816 = vmatmul.msk.f32.gmra.mxu2 %vm82_vm0, %v704_v4 }
 0x5fa   :  { %v736_v34 = vpop.f32.mrf.mxu2 }
 0x5fb   :  { %v737_v7 = vadd.f32 %v832_v6, %v736_v34 }
 0x5fd   :  { %v742_v8 = vmax.f32 %v737_v7, 0.0 }
 0x5ff   :  { %817 = vmatmul.msk.f32.vlgmr.msrb.gmra.mxu1 %vm82_vm0, %v742_v8 }
 0x602   :  { %v739_v12 = vpop.f32.mrf.mxu2 }
 0x603   :  { %v740_v17 = vadd.f32 %v832_v6, %v739_v12 }
 0x605   :  { %v743_v13 = vmax.f32 %v740_v17, 0.0 }
 0x607   :  { %818 = vmatmul.msk.f32.gmra.mxu1 %vm82_vm0, %v743_v13 }
 0x67c   :  { %v775_v21 = vpop.f32.mrf.mxu1 }
 0x67d   :  { %v776_v25 = vadd.f32 %v833_v9, %v775_v21 }
 0x67f   :  { %v781_v19 = vadd.f32 %v776_v25, %v703_v63 }
 0x681   :  { %783 = vst.msk [vmem:[%s1307_s19] sm:$0xff] %vm82_vm0, %v781_v19 }
 0x684   :  { %v778_v14 = vpop.f32.mrf.mxu1 }
 0x685   :  { %v779_v11 = vadd.f32 %v833_v9, %v778_v14 }
 0x687   :  { %v782_v23 = vadd.f32 %v779_v11, %v704_v4 }
 0x689   :  { %784 = vst.msk [vmem:[%s1307_s19 + $0x8] sm:$0xff] %vm82_vm0, %v782_v23 }

// kernel: saint_forward.3
= control target key start
LH: loop header
LB: loop body
LE: loop exit
PB: predicated region body
PF: predicated region fallthrough
CT: control target
= control target key end

     0   :  { %s1780_s6 = smov 1   ;;  %s1781_s10 = smov 2   ;;  %s2378_s0 = inlined_call_operand.smem [shape: u32[34], index: -1, kind: input, shape index: {}] }
   0x1   :  { %s1826_s5 = sld [smem:[%s2378_s0]]   ;;  %s1782_s14 = smov 3  }
   0x2   :  { %s1831_s9 = sld [smem:[%s2378_s0 + %s1780_s6]]   ;;  %s1783_s18 = smov 4  }
   0x3   :  { %s1836_s13 = sld [smem:[%s2378_s0 + %s1781_s10]]   ;;  %s1784_s22 = smov 5  }
   0x4   :  { %s1841_s17 = sld [smem:[%s2378_s0 + %s1782_s14]]   ;;  %s1785_s26 = smov 6  }
   0x5   :  { %s1846_s21 = sld [smem:[%s2378_s0 + %s1783_s18]]   ;;  %s1786_s30 = smov 7  }
   0x6   :  { %s1851_s25 = sld [smem:[%s2378_s0 + %s1784_s22]]   ;;  %s1787_s4 = smov 8  }
   0x7   :  { %s1856_s29 = sld [smem:[%s2378_s0 + %s1785_s26]]   ;;  %s1788_s10 = smov 9  }
   0x8   :  { %s1861_s3 = sld [smem:[%s2378_s0 + %s1786_s30]]   ;;  %s1789_s15 = smov 10  }
   0x9   :  { %s1866_s8 = sld [smem:[%s2378_s0 + %s1787_s4]]   ;;  %s1790_s20 = smov 11  }
   0xa   :  { %s1871_s14 = sld [smem:[%s2378_s0 + %s1788_s10]]   ;;  %s1791_s26 = smov 12  }
   0xb   :  { %s1876_s19 = sld [smem:[%s2378_s0 + %s1789_s15]]   ;;  %s1792_s1 = smov 13  }
   0xc   :  { %s1881_s24 = sld [smem:[%s2378_s0 + %s1790_s20]]   ;;  %s1793_s7 = smov 14  }
   0xd   :  { %s1886_s30 = sld [smem:[%s2378_s0 + %s1791_s26]]   ;;  %s1794_s15 = smov 15  }
   0xe   :  { %s1891_s6 = sld [smem:[%s2378_s0 + %s1792_s1]]   ;;  %s1795_s22 = smov 16  }
   0xf   :  { %s1896_s12 = sld [smem:[%s2378_s0 + %s1793_s7]]   ;;  %s1796_s28 = smov 17  }
  0x10   :  { %s1901_s20 = sld [smem:[%s2378_s0 + %s1794_s15]]   ;;  %s1797_s7 = smov 18  }
  0x11   :  { %s1906_s27 = sld [smem:[%s2378_s0 + %s1795_s22]]   ;;  %s1798_s15 = smov 19  }
  0x12   :  { %s1911_s4 = sld [smem:[%s2378_s0 + %s1796_s28]]   ;;  %s1799_s22 = smov 20  }
  0x13   :  { %s1800_s28 = smov 21   ;;  %s1811_s23 = smov 32  }
  0x14   :  { %2384 = sst [smem:[#allocation6_spill]] %s1891_s6  ;;  %s1812_s1 = smov 33  }
  0x15   :  { %2385 = sst [smem:[#allocation7_spill]] %s1896_s12 }
  0x16   :  { %2386 = sst [smem:[#allocation8_spill]] %s1901_s20 }
  0x17   :  { %2387 = sst [smem:[#allocation9_spill]] %s1906_s27 }
  0x18   :  { %s1916_s6 = sld [smem:[%s2378_s0 + %s1797_s7]]   ;;  %s1801_s7 = smov 22  }
  0x19   :  { %s1921_s20 = sld [smem:[%s2378_s0 + %s1798_s15]]   ;;  %s1802_s15 = smov 23  }
  0x1a   :  { %s1926_s12 = sld [smem:[%s2378_s0 + %s1799_s22]]   ;;  %s1803_s22 = smov 24  }
  0x1b   :  { %s1931_s27 = sld [smem:[%s2378_s0 + %s1800_s28]]   ;;  %s1804_s28 = smov 25  }
  0x1e   :  { %2388 = sst [smem:[#allocation10_spill]] %s1916_s6 }
  0x1f   :  { %2389 = sst [smem:[#allocation11_spill]] %s1921_s20 }
  0x20   :  { %2390 = sst [smem:[#allocation12_spill]] %s1926_s12 }
  0x21   :  { %2391 = sst [smem:[#allocation13_spill]] %s1931_s27 }
  0x22   :  { %s1936_s6 = sld [smem:[%s2378_s0 + %s1801_s7]]   ;;  %s1805_s7 = smov 26  }
  0x23   :  { %s1941_s20 = sld [smem:[%s2378_s0 + %s1802_s15]]   ;;  %s1806_s15 = smov 27  }
  0x24   :  { %s1946_s12 = sld [smem:[%s2378_s0 + %s1803_s22]]   ;;  %s1807_s22 = smov 28  }
  0x25   :  { %s1951_s27 = sld [smem:[%s2378_s0 + %s1804_s28]]   ;;  %s1808_s28 = smov 29  }
  0x28   :  { %2392 = sst [smem:[#allocation14_spill]] %s1936_s6 }
  0x29   :  { %2393 = sst [smem:[#allocation15_spill]] %s1941_s20 }
  0x2a   :  { %2394 = sst [smem:[#allocation16_spill]] %s1946_s12 }
  0x2b   :  { %2395 = sst [smem:[#allocation17_spill]] %s1951_s27 }
  0x2c   :  { %s1956_s6 = sld [smem:[%s2378_s0 + %s1805_s7]]   ;;  %s1809_s7 = smov 30  }
  0x2d   :  { %s1961_s20 = sld [smem:[%s2378_s0 + %s1806_s15]]   ;;  %s1810_s15 = smov 31  }
  0x2e   :  { %s1966_s12 = sld [smem:[%s2378_s0 + %s1807_s22]]  }
  0x2f   :  { %s1971_s27 = sld [smem:[%s2378_s0 + %s1808_s28]]  }
  0x32   :  { %2396 = sst [smem:[#allocation18_spill]] %s1956_s6 }
  0x33   :  { %2397 = sst [smem:[#allocation19_spill]] %s1961_s20 }
  0x34   :  { %2398 = sst [smem:[#allocation20_spill]] %s1966_s12 }
  0x35   :  { %2399 = sst [smem:[#allocation21_spill]] %s1971_s27 }
  0x36   :  { %s1976_s6 = sld [smem:[%s2378_s0 + %s1809_s7]]  }
  0x37   :  { %s1541_s20 = sld [smem:[%s2378_s0 + %s1810_s15]]  }
  0x38   :  { %s1984_s12 = sld [smem:[%s2378_s0 + %s1811_s23]]  }
  0x39   :  { %s1989_s27 = sld [smem:[%s2378_s0 + %s1812_s1]]  }
  0x3d   :  { %v73_v0 = vstv %s1541_s20 }
  0x3e   :  { %74 = vst [vmem:[#allocation2] sm:$0x1] %v73_v0 }
  0x3f   :  { %v141_v1 = vld [vmem:[%s1826_s5 + $0x8] sm:$0xff]  ;;  %vm162_vm0 = vcmask 261120   ;;  %v140_v3 = vld [vmem:[%s1826_s5] sm:$0xff] }
  0x40   :  { %v166_v2 = vsel %vm162_vm0, %v141_v1, 0.0 }
  0x41   :  { %167 = vadd.xlane.f32.xlu0 %v166_v2 }
  0x42   :  { %75 = vsyncpa [#allocation4], 0  ;;  %v163_v4 = vsel %vm162_vm0, %v140_v3, 0.0  ;;  %v1813_v5 = vmov 32.0   ;;  %v231_v22 = vld [vmem:[%s1861_s3 + $0x18] sm:$0xff]  ;;  %v230_v23 = vld [vmem:[%s1861_s3 + $0x10] sm:$0xff] }
  0x43   :  { %1664 = vrcp.f32 %v1813_v5  ;;  %1604 = vmatpush.msra.mxu3 %v231_v22  ;;  %291 = vmatpush.msra.mxu1 %v231_v22  ;;  %v229_v24 = vld [vmem:[%s1861_s3 + $0x8] sm:$0xff]  ;;  %v228_v25 = vld [vmem:[%s1861_s3] sm:$0xff]  ;;  %v227_v26 = vld [vmem:[%s1856_s29 + $0x18] sm:$0xff]  ;;  %vm423_vm8 = vcmask 130048   ;;  %s2400_s0 = sld [smem:[#allocation9_spill]]  ;;  %s1815_s7 = smov [#allocation3]  }
  0x44   :  { %v235_v27 = vld [vmem:[%s1866_s8 + $0x18] sm:$0xff]  ;;  %265 = vmatpush.msra.mxu0 %v227_v26  ;;  %v226_v28 = vld [vmem:[%s1856_s29 + $0x10] sm:$0xff]  ;;  %v225_v30 = vld [vmem:[%s1856_s29 + $0x8] sm:$0xff]  ;;  %s2401_s5 = sld [smem:[#allocation7_spill]]  ;;  %s1493_s10 = sshll.u32 %s1815_s7, 4  ;;  %s1494_s10 = int_to_ptr.vmem [resolvable:$true] %s1493_s10 }
  0x45   :  { %1605 = vmatpush.msra.mxu3 %v230_v23  ;;  %292 = vmatpush.msra.mxu1 %v230_v23  ;;  %v234_v29 = vld [vmem:[%s1866_s8 + $0x10] sm:$0xff]  ;;  %v233_v32 = vld [vmem:[%s1866_s8 + $0x8] sm:$0xff]  ;;  %v224_v34 = vld [vmem:[%s1856_s29] sm:$0xff]  ;;  %s2406_s29 = sld [smem:[#allocation12_spill]]  ;;  %s1495_s11 = sshll.u32 %s1984_s12, 4  ;;  %s1496_s11 = int_to_ptr.hbm [resolvable:$true] %s1495_s11 }
  0x46   :  { %317 = vmatpush.msra.mxu2 %v235_v27  ;;  %266 = vmatpush.msra.mxu0 %v226_v28  ;;  %v232_v35 = vld [vmem:[%s1866_s8] sm:$0xff]  ;;  %v2074_v26 = vld [vmem:[%s1836_s13 + $0x30] sm:$0xff]  ;;  %v2079_v28 = vld [vmem:[%s1836_s13 + $0x38] sm:$0xff]  ;;  %s2407_s3 = sld [smem:[#allocation14_spill]]  ;;  %s1766_s15 = sshra.s32 %s1496_s11, 4  ;;  %s1767_s15 = int_to_ptr.hbm [resolvable:$true] %s1766_s15 }
  0x47   :  { %1606 = vmatpush.msra.mxu3 %v229_v24  ;;  %293 = vmatpush.msra.mxu1 %v229_v24  ;;  %v1648_v48 = vld [vmem:[%s1846_s21] ss:$0 sm:$0xff]  ;;  %v2069_v24 = vld [vmem:[%s1836_s13 + $0x28] sm:$0xff]  ;;  %s2404_s21 = sld [smem:[#allocation6_spill]]  ;;  %s1768_s16 = scalar_lea.hbm %s1767_s15, 16 }
  0x48   :  { %318 = vmatpush.msra.mxu2 %v234_v29  ;;  %267 = vmatpush.msra.mxu0 %v225_v30  ;;  %v1649_v52 = vld [vmem:[%s1851_s25] ss:$0 sm:$0xff]  ;;  %s2405_s25 = sld [smem:[#allocation13_spill]]  ;;  %p1769_p0 = scmp.ne.s32.totalorder %s1767_s15, %s1768_s16 }
  0x49   :  { %164 = vadd.xlane.f32.xlu0 %v163_v4  ;;  %v1665_v6 = vpop.eup %1664  ;;  %1607 = vmatpush.msra.mxu3 %v228_v25  ;;  %v1650_v62 = vld [vmem:[%s1881_s24] ss:$0 sm:$0xff]  ;;  %s2408_s8 = sld [smem:[#allocation11_spill]]  ;;  %s1770_s18 = scalar_lea.hbm %s1984_s12, 16 }
  0x4a   :  { %v170_v7 = vmul.f32 32.0, %v1665_v6  ;;  %vm174_vm1 = vweird.f32 %v1665_v6  ;;  %294 = vmatpush.msra.mxu1 %v228_v25  ;;  %319 = vmatpush.msra.mxu2 %v233_v32  ;;  %v1651_v0 = vld [vmem:[%s1876_s19] ss:$0 sm:$0xff]  ;;  %s2410_s19 = sld [smem:[#allocation18_spill]]  ;;  %p1771_p1 = scmp.lt.s32.totalorder %s1767_s15, %s1984_s12 }
  0x4b   :  { %268 = vmatpush.msra.mxu0 %v224_v34  ;;  %v2064_v22 = vld [vmem:[%s1836_s13 + $0x20] sm:$0xff]  ;;  %s2412_s24 = sld [smem:[#allocation16_spill]]  ;;  %p1772_p2 = scmp.lt.s32.totalorder %s1770_s18, %s1768_s16 }
  0x4c   :  { %v171_v8 = vsub.f32 1.0, %v170_v7  ;;  %320 = vmatpush.msra.mxu2 %v232_v35  ;;  %s2414_s20 = sld [smem:[#allocation19_spill]] }
  0x4d   :  { %p1773_p3 = por %p1772_p2, %p1771_p1 }
  0x4e   :  { %v172_v9 = vmul.f32 %v1665_v6, %v171_v8 }
  0x4f   :  { %p1774_p4 = pnand %p1773_p3, %p1769_p0 }
  0x50   :  { %v173_v10 = vadd.f32 %v1665_v6, %v172_v9 }
  0x52   :  { %v1995_v11 = vsel %vm174_vm1, %v1665_v6, %v173_v10  ;;  %v2042_v6 = vld [vmem:[%s1836_s13] sm:$0xff] }
  0xb4   :  { %v168_v12 = vpop.xlane.xlu0 %167 }
  0xb5   :  { %v177_v13 = vmul.f32 %v1995_v11, %v168_v12  ;;  %v2048_v12 = vld [vmem:[%s1836_s13 + $0x8] sm:$0xff] }
  0xb7   :  { %v179_v14 = vsub.f32 %v141_v1, %v177_v13  ;;  %v1652_v13 = vld [vmem:[%s1886_s30] ss:$0 sm:$0xff]  ;;  %s2413_s30 = sld [smem:[#allocation17_spill]] }
  0xb9   :  { %v181_v15 = vmul.f32 %v179_v14, %v179_v14 }
  0xbb   :  { %v185_v16 = vsel %vm162_vm0, %v181_v15, 0.0 }
  0xbc   :  { %186 = vadd.xlane.f32.xlu1 %v185_v16  ;;  %v165_v17 = vpop.xlane.xlu0 %164 }
  0xbd   :  { %v176_v18 = vmul.f32 %v1995_v11, %v165_v17 }
  0xbf   :  { %v2000_v19 = vsub.f32 %v140_v3, %v176_v18  ;;  %v2054_v18 = vld [vmem:[%s1836_s13 + $0x10] sm:$0xff] }
  0xc1   :  { %v180_v20 = vmul.f32 %v2000_v19, %v2000_v19 }
  0xc3   :  { %v182_v21 = vsel %vm162_vm0, %v180_v20, 0.0  ;;  %v2059_v20 = vld [vmem:[%s1836_s13 + $0x18] sm:$0xff] }
  0xc4   :  { %183 = vadd.xlane.f32.xlu1 %v182_v21 }
 0x12f   :  { %v187_v31 = vpop.xlane.xlu1 %186 }
 0x130   :  { %v189_v33 = vmul.f32 %v187_v31, %v1995_v11  ;;  %v2084_v31 = vld [vmem:[%s1841_s17] sm:$0xff] }
 0x132   :  { %v191_v36 = vadd.f32 1e-05, %v189_v33 }
 0x134   :  { %1666 = vrsqrt.f32 %v191_v36  ;;  %vm208_vm3 = vweird.f32 %v191_v36 }
 0x137   :  { %v184_v37 = vpop.xlane.xlu1 %183 }
 0x138   :  { %v188_v38 = vmul.f32 %v184_v37, %v1995_v11 }
 0x13a   :  { %v1667_v39 = vpop.eup %1666  ;;  %v190_v40 = vadd.f32 1e-05, %v188_v38 }
 0x13b   :  { %v203_v41 = vmul.f32 %v1667_v39, %v191_v36  ;;  %vm209_vm2 = vweird.f32 %v1667_v39  ;;  %v2089_v36 = vld [vmem:[%s1841_s17 + $0x8] sm:$0xff] }
 0x13c   :  { %1668 = vrsqrt.f32 %v190_v40  ;;  %vm210_vm4 = vmor %vm208_vm3, %vm209_vm2  ;;  %vm198_vm6 = vweird.f32 %v190_v40 }
 0x13d   :  { %v204_v42 = vmul.f32 %v1667_v39, %v203_v41  ;;  %v2094_v41 = vld [vmem:[%s1841_s17 + $0x10] sm:$0xff] }
 0x13f   :  { %v205_v43 = vmul.f32 0.5, %v204_v42 }
 0x141   :  { %v206_v44 = vsub.f32 1.5, %v205_v43 }
 0x142   :  { %v1669_v45 = vpop.eup %1668 }
 0x143   :  { %v207_v46 = vmul.f32 %v1667_v39, %v206_v44  ;;  %v193_v47 = vmul.f32 %v1669_v45, %v190_v40  ;;  %vm199_vm5 = vweird.f32 %v1669_v45 }
 0x144   :  { %vm200_vm7 = vmor %vm198_vm6, %vm199_vm5 }
 0x145   :  { %v211_v49 = vsel %vm210_vm4, %v1667_v39, %v207_v46  ;;  %v194_v50 = vmul.f32 %v1669_v45, %v193_v47  ;;  %v2099_v46 = vld [vmem:[%s1841_s17 + $0x18] sm:$0xff] }
 0x146   :  { %v213_v51 = vmul.f32 %v211_v49, %v179_v14 }
 0x147   :  { %v195_v53 = vmul.f32 0.5, %v194_v50 }
 0x148   :  { %v218_v54 = vmul.f32 %v1648_v48, %v213_v51  ;;  %v2104_v51 = vld [vmem:[%s1841_s17 + $0x20] sm:$0xff] }
 0x149   :  { %v196_v55 = vsub.f32 1.5, %v195_v53 }
 0x14a   :  { %v2021_v56 = vadd.f32 %v1649_v52, %v218_v54 }
 0x14b   :  { %v197_v57 = vmul.f32 %v1669_v45, %v196_v55 }
 0x14c   :  { %1547 = vmatmul.msk.f32.vlgmr.msra.gmra.mxu3 %vm162_vm0, %v2021_v56 }
 0x14d   :  { %v201_v58 = vsel %vm200_vm7, %v1669_v45, %v197_v57  ;;  %v2109_v57 = vld [vmem:[%s1841_s17 + $0x28] sm:$0xff] }
 0x14e   :  { %v212_v59 = vmul.f32 %v201_v58, %v2000_v19 }
 0x150   :  { %v217_v60 = vmul.f32 %v1648_v48, %v212_v59 }
 0x152   :  { %v2026_v61 = vadd.f32 %v1649_v52, %v217_v60 }
 0x154   :  { %1544 = vmatmul.msk.f32.vlgmr.msra.gmra.mxu0 %vm162_vm0, %v2026_v61  ;;  %1546 = vmatmul.msk.f32.vlgmr.msra.gmra.mxu1 %vm162_vm0, %v2026_v61 }
 0x155   :  { %1548 = vmatmul.msk.f32.vlgmr.msra.gmra.mxu2 %vm162_vm0, %v2026_v61 }
 0x15c   :  { %1545 = vmatmul.msk.f32.gmra.mxu0 %vm162_vm0, %v2021_v56 }
 0x15d   :  { %1549 = vmatmul.msk.f32.gmra.mxu2 %vm162_vm0, %v2021_v56 }
 0x1cf   :  { %v299_v63 = vpop.f32.mrf.mxu3 }
 0x1d0   :  { %v300_v1 = vadd.f32 %v1650_v62, %v299_v63  ;;  %v2114_v63 = vld [vmem:[%s1841_s17 + $0x30] sm:$0xff] }
 0x1d1   :  { %v270_v2 = vpop.f32.mrf.mxu0  ;;  %v296_v3 = vpop.f32.mrf.mxu1 }
 0x1d2   :  { %1550 = vmatpush.xpose.msk.msrb.mxu3 %vm162_vm0, %v300_v1  ;;  %v271_v4 = vadd.f32 %v1651_v0, %v270_v2  ;;  %v297_v5 = vadd.f32 %v1650_v62, %v296_v3 }
 0x1d4   :  { %v328_v7 = vmul.f32 %v271_v4, %v2042_v6  ;;  %v330_v19 = vmul.f32 %v271_v4, %v2054_v18  ;;  %v332_v23 = vmul.f32 %v271_v4, %v2064_v22  ;;  %v334_v27 = vmul.f32 %v271_v4, %v2074_v26  ;;  %v2119_v4 = vld [vmem:[%s1841_s17 + $0x38] sm:$0xff]  ;;  %s2403_s17 = sld [smem:[#allocation10_spill]] }
 0x1d6   :  { %1551 = vmatpush.xpose.msk.msrb.mxu3 %vm162_vm0, %v297_v5 }
 0x1d8   :  { %v322_v8 = vpop.f32.mrf.mxu2 }
 0x1d9   :  { %v273_v9 = vpop.f32.mrf.mxu0  ;;  %1552 = vmatmul.msk.f32.vlgmr.msrb.gmra.mxu3 %vm162_vm0, %v328_v7  ;;  %v323_v17 = vadd.f32 %v1652_v13, %v322_v8 }
 0x1da   :  { %v274_v10 = vadd.f32 %v1651_v0, %v273_v9 }
 0x1dc   :  { %v329_v14 = vmul.f32 %v274_v10, %v2048_v12  ;;  %v331_v21 = vmul.f32 %v274_v10, %v2059_v20  ;;  %v333_v25 = vmul.f32 %v274_v10, %v2069_v24  ;;  %v335_v29 = vmul.f32 %v274_v10, %v2079_v28 }
 0x1e0   :  { %v325_v15 = vpop.f32.mrf.mxu2 }
 0x1e1   :  { %v326_v16 = vadd.f32 %v1652_v13, %v325_v15  ;;  %1553 = vmatmul.msk.f32.gmra.mxu3 %vm162_vm0, %v329_v14 }
 0x1e3   :  { %654 = vmatpush.msrb.mxu0 %v326_v16 }
 0x1e5   :  { %655 = vmatpush.msrb.mxu0 %v323_v17 }
 0x1e9   :  { %1554 = vmatmul.msk.f32.gmra.mxu3 %vm162_vm0, %v330_v19 }
 0x1f1   :  { %1555 = vmatmul.msk.f32.gmra.mxu3 %vm162_vm0, %v331_v21 }
 0x1f9   :  { %1556 = vmatmul.msk.f32.gmra.mxu3 %vm162_vm0, %v332_v23 }
 0x201   :  { %1557 = vmatmul.msk.f32.gmra.mxu3 %vm162_vm0, %v333_v25 }
 0x209   :  { %1558 = vmatmul.msk.f32.gmra.mxu3 %vm162_vm0, %v334_v27 }
 0x211   :  { %1559 = vmatmul.msk.f32.gmra.mxu3 %vm162_vm0, %v335_v29 }
 0x25c   :  { %v383_v30 = vpop.f32.mrf.mxu3 }
 0x25d   :  { %v407_v32 = vmul.f32 0.35355338, %v383_v30 }
 0x25f   :  { %v415_v33 = vadd.f32 %v407_v32, %v2084_v31 }
 0x261   :  { %v424_v34 = vsel %vm423_vm8, %v415_v33, -inf }
 0x262   :  { %425 = vmax.xlane.f32.xlu2 %v424_v34 }
 0x264   :  { %v386_v35 = vpop.f32.mrf.mxu3 }
 0x265   :  { %v408_v37 = vmul.f32 0.35355338, %v386_v35 }
 0x267   :  { %v416_v38 = vadd.f32 %v408_v37, %v2089_v36 }
 0x269   :  { %v427_v39 = vsel %vm423_vm8, %v416_v38, -inf }
 0x26a   :  { %428 = vmax.xlane.f32.xlu2 %v427_v39 }
 0x26c   :  { %v389_v40 = vpop.f32.mrf.mxu3 }
 0x26d   :  { %v409_v42 = vmul.f32 0.35355338, %v389_v40 }
 0x26f   :  { %v417_v43 = vadd.f32 %v409_v42, %v2094_v41 }
 0x271   :  { %v430_v44 = vsel %vm423_vm8, %v417_v43, -inf }
 0x272   :  { %431 = vmax.xlane.f32.xlu0 %v430_v44 }
 0x274   :  { %v392_v45 = vpop.f32.mrf.mxu3 }
 0x275   :  { %v410_v47 = vmul.f32 0.35355338, %v392_v45 }
 0x277   :  { %v418_v48 = vadd.f32 %v410_v47, %v2099_v46 }
 0x279   :  { %v433_v49 = vsel %vm423_vm8, %v418_v48, -inf }
 0x27a   :  { %434 = vmax.xlane.f32.xlu1 %v433_v49 }
 0x27c   :  { %v395_v50 = vpop.f32.mrf.mxu3 }
 0x27d   :  { %v411_v52 = vmul.f32 0.35355338, %v395_v50 }
 0x27f   :  { %v419_v53 = vadd.f32 %v411_v52, %v2104_v51 }
 0x281   :  { %v436_v54 = vsel %vm423_vm8, %v419_v53, -inf }
 0x282   :  { %437 = vmax.xlane.f32.xlu2 %v436_v54 }
 0x284   :  { %v398_v55 = vpop.f32.mrf.mxu3 }
 0x285   :  { %v412_v58 = vmul.f32 0.35355338, %v398_v55  ;;  %v2148_v55 = vld [vmem:[%s1831_s9] sm:$0xff] }
 0x287   :  { %v420_v59 = vadd.f32 %v412_v58, %v2109_v57 }
 0x289   :  { %v439_v60 = vsel %vm423_vm8, %v420_v59, -inf }
 0x28a   :  { %440 = vmax.xlane.f32.xlu0 %v439_v60  ;;  %v731_v60 = vsel %vm162_vm0, %v2148_v55, 0.0 }
 0x28c   :  { %v401_v62 = vpop.f32.mrf.mxu3 }
 0x28d   :  { %v413_v0 = vmul.f32 0.35355338, %v401_v62 }
 0x28f   :  { %v421_v1 = vadd.f32 %v413_v0, %v2114_v63 }
 0x291   :  { %v442_v2 = vsel %vm423_vm8, %v421_v1, -inf }
 0x292   :  { %443 = vmax.xlane.f32.xlu1 %v442_v2  ;;  %v2157_v2 = vld [vmem:[%s1831_s9 + $0x8] sm:$0xff]  ;;  %s2402_s9 = sld [smem:[#allocation8_spill]] }
 0x294   :  { %v404_v3 = vpop.f32.mrf.mxu3 }
 0x295   :  { %v414_v5 = vmul.f32 0.35355338, %v404_v3  ;;  %v734_v3 = vsel %vm162_vm0, %v2157_v2, 0.0 }
 0x297   :  { %v422_v7 = vadd.f32 %v414_v5, %v2119_v4 }
 0x299   :  { %v445_v8 = vsel %vm423_vm8, %v422_v7, -inf }
 0x29a   :  { %446 = vmax.xlane.f32.xlu0 %v445_v8 }
 0x2d5   :  { %v426_v9 = vpop.xlane.xlu2 %425 }
 0x2d6   :  { %v448_v10 = vsub.f32 %v415_v33, %v426_v9 }
 0x2d8   :  { %v456_v13 = vmul.f32 1.442695, %v448_v10 }
 0x2da   :  { %1670 = vpow2.f32 %v456_v13 }
 0x2dd   :  { %v429_v14 = vpop.xlane.xlu2 %428 }
 0x2de   :  { %v449_v15 = vsub.f32 %v416_v38, %v429_v14 }
 0x2e0   :  { %v2123_v16 = vpop.eup %1670  ;;  %v458_v17 = vmul.f32 1.442695, %v449_v15 }
 0x2e1   :  { %v472_v19 = vsel %vm423_vm8, %v2123_v16, 0.0 }
 0x2e2   :  { %1672 = vpow2.f32 %v458_v17  ;;  %473 = vadd.xlane.f32.xlu2 %v472_v19 }
 0x2e5   :  { %v432_v21 = vpop.xlane.xlu0 %431 }
 0x2e6   :  { %v450_v23 = vsub.f32 %v417_v43, %v432_v21 }
 0x2e8   :  { %v2127_v25 = vpop.eup %1672  ;;  %v460_v27 = vmul.f32 1.442695, %v450_v23 }
 0x2e9   :  { %v475_v29 = vsel %vm423_vm8, %v2127_v25, 0.0 }
 0x2ea   :  { %1674 = vpow2.f32 %v460_v27  ;;  %476 = vadd.xlane.f32.xlu1 %v475_v29 }
 0x2ed   :  { %v435_v30 = vpop.xlane.xlu1 %434 }
 0x2ee   :  { %v451_v32 = vsub.f32 %v418_v48, %v435_v30 }
 0x2f0   :  { %v2131_v33 = vpop.eup %1674  ;;  %v462_v34 = vmul.f32 1.442695, %v451_v32 }
 0x2f1   :  { %v478_v35 = vsel %vm423_vm8, %v2131_v33, 0.0 }
 0x2f2   :  { %1676 = vpow2.f32 %v462_v34  ;;  %479 = vadd.xlane.f32.xlu2 %v478_v35 }
 0x2f5   :  { %v438_v37 = vpop.xlane.xlu2 %437 }
 0x2f6   :  { %v452_v38 = vsub.f32 %v419_v53, %v438_v37 }
 0x2f8   :  { %v2135_v39 = vpop.eup %1676  ;;  %v464_v40 = vmul.f32 1.442695, %v452_v38 }
 0x2f9   :  { %v481_v42 = vsel %vm423_vm8, %v2135_v39, 0.0 }
 0x2fa   :  { %1678 = vpow2.f32 %v464_v40  ;;  %482 = vadd.xlane.f32.xlu0 %v481_v42 }
 0x2fd   :  { %v441_v43 = vpop.xlane.xlu0 %440 }
 0x2fe   :  { %v453_v44 = vsub.f32 %v420_v59, %v441_v43 }
 0x300   :  { %v2139_v45 = vpop.eup %1678  ;;  %v466_v47 = vmul.f32 1.442695, %v453_v44 }
 0x301   :  { %v484_v48 = vsel %vm423_vm8, %v2139_v45, 0.0 }
 0x302   :  { %1680 = vpow2.f32 %v466_v47  ;;  %485 = vadd.xlane.f32.xlu1 %v484_v48 }
 0x305   :  { %v444_v49 = vpop.xlane.xlu1 %443 }
 0x306   :  { %v454_v50 = vsub.f32 %v421_v1, %v444_v49 }
 0x308   :  { %v2143_v52 = vpop.eup %1680  ;;  %v468_v53 = vmul.f32 1.442695, %v454_v50 }
 0x309   :  { %v487_v54 = vsel %vm423_vm8, %v2143_v52, 0.0 }
 0x30a   :  { %1682 = vpow2.f32 %v468_v53  ;;  %488 = vadd.xlane.f32.xlu2 %v487_v54 }
 0x30d   :  { %v447_v58 = vpop.xlane.xlu0 %446 }
 0x30e   :  { %v455_v59 = vsub.f32 %v422_v7, %v447_v58 }
 0x310   :  { %v2152_v62 = vpop.eup %1682  ;;  %v470_v0 = vmul.f32 1.442695, %v455_v59 }
 0x311   :  { %v490_v1 = vsel %vm423_vm8, %v2152_v62, 0.0 }
 0x312   :  { %1684 = vpow2.f32 %v470_v0  ;;  %732 = vadd.xlane.f32.xlu2 %v731_v60  ;;  %491 = vadd.xlane.f32.xlu0 %v490_v1 }
 0x318   :  { %v2161_v5 = vpop.eup %1684 }
 0x319   :  { %v493_v7 = vsel %vm423_vm8, %v2161_v5, 0.0 }
 0x31a   :  { %735 = vadd.xlane.f32.xlu0 %v734_v3  ;;  %494 = vadd.xlane.f32.xlu1 %v493_v7 }
 0x355   :  { %v474_v8 = vpop.xlane.xlu2 %473 }
 0x356   :  { %1686 = vrcp.f32 %v474_v8  ;;  %v507_v15 = vand.u32 2147483648, %v474_v8  ;;  %v505_v19 = vand.u32 2147483647, %v474_v8  ;;  %vm501_vm10 = vweird.f32 %v474_v8 }
 0x358   :  { %v508_v27 = vor.u32 1.1754944e-38, %v507_v15  ;;  %vm506_vm12 = vcmp.eq.f32.partialorder %v505_v19, 8.507059e+37 }
 0x35c   :  { %v1687_v9 = vpop.eup %1686 }
 0x35d   :  { %v497_v10 = vmul.f32 %v1687_v9, %v474_v8  ;;  %v477_v13 = vpop.xlane.xlu1 %476  ;;  %vm502_vm9 = vweird.f32 %v1687_v9 }
 0x35e   :  { %1688 = vrcp.f32 %v477_v13  ;;  %vm503_vm11 = vmor %vm501_vm10, %vm502_vm9  ;;  %v522_v38 = vand.u32 2147483648, %v477_v13  ;;  %v520_v42 = vand.u32 2147483647, %v477_v13  ;;  %vm516_vm14 = vweird.f32 %v477_v13 }
 0x35f   :  { %v498_v14 = vsub.f32 1.0, %v497_v10 }
 0x360   :  { %v523_v47 = vor.u32 1.1754944e-38, %v522_v38  ;;  %vm521_vm1 = vcmp.eq.f32.partialorder %v520_v42, 8.507059e+37 }
 0x361   :  { %v499_v17 = vmul.f32 %v1687_v9, %v498_v14 }
 0x363   :  { %v500_v21 = vadd.f32 %v1687_v9, %v499_v17 }
 0x364   :  { %v1689_v23 = vpop.eup %1688 }
 0x365   :  { %v512_v29 = vmul.f32 %v1689_v23, %v477_v13  ;;  %v480_v30 = vpop.xlane.xlu2 %479  ;;  %v504_v32 = vsel %vm503_vm11, %v1687_v9, %v500_v21  ;;  %vm517_vm13 = vweird.f32 %v1689_v23 }
 0x366   :  { %1690 = vrcp.f32 %v480_v30  ;;  %v509_v34 = vsel %vm506_vm12, %v508_v27, %v504_v32  ;;  %vm518_vm15 = vmor %vm516_vm14, %vm517_vm13  ;;  %v537_v58 = vand.u32 2147483648, %v480_v30  ;;  %v535_v60 = vand.u32 2147483647, %v480_v30 }
 0x367   :  { %v513_v35 = vsub.f32 1.0, %v512_v29  ;;  %v510_v37 = vmul.f32 %v2123_v16, %v509_v34  ;;  %vm531_vm3 = vweird.f32 %v480_v30 }
 0x368   :  { %v538_v3 = vor.u32 1.1754944e-38, %v537_v58  ;;  %vm536_vm5 = vcmp.eq.f32.partialorder %v535_v60, 8.507059e+37 }
 0x369   :  { %v514_v40 = vmul.f32 %v1689_v23, %v513_v35  ;;  %1560 = vmatmul.msk.f32.vlgmr.msrb.gmra.mxu0 %vm423_vm8, %v510_v37 }
 0x36b   :  { %v515_v43 = vadd.f32 %v1689_v23, %v514_v40 }
 0x36c   :  { %v1691_v44 = vpop.eup %1690 }
 0x36d   :  { %v527_v48 = vmul.f32 %v1691_v44, %v480_v30  ;;  %v483_v49 = vpop.xlane.xlu0 %482  ;;  %v519_v50 = vsel %vm518_vm15, %v1689_v23, %v515_v43  ;;  %vm532_vm2 = vweird.f32 %v1691_v44 }
 0x36e   :  { %1692 = vrcp.f32 %v483_v49  ;;  %v524_v53 = vsel %vm521_vm1, %v523_v47, %v519_v50  ;;  %vm533_vm4 = vmor %vm531_vm3, %vm532_vm2  ;;  %v552_v14 = vand.u32 2147483648, %v483_v49  ;;  %v550_v17 = vand.u32 2147483647, %v483_v49 }
 0x36f   :  { %v528_v54 = vsub.f32 1.0, %v527_v48  ;;  %v525_v16 = vmul.f32 %v2127_v25, %v524_v53  ;;  %vm546_vm7 = vweird.f32 %v483_v49 }
 0x370   :  { %v553_v23 = vor.u32 1.1754944e-38, %v552_v14  ;;  %vm551_vm10 = vcmp.eq.f32.partialorder %v550_v17, 8.507059e+37 }
 0x371   :  { %v529_v59 = vmul.f32 %v1691_v44, %v528_v54  ;;  %1561 = vmatmul.msk.f32.gmra.mxu0 %vm423_vm8, %v525_v16 }
 0x373   :  { %v530_v0 = vadd.f32 %v1691_v44, %v529_v59 }
 0x374   :  { %v1693_v1 = vpop.eup %1692 }
 0x375   :  { %v542_v7 = vmul.f32 %v1693_v1, %v483_v49  ;;  %v486_v8 = vpop.xlane.xlu1 %485  ;;  %v534_v9 = vsel %vm533_vm4, %v1691_v44, %v530_v0  ;;  %vm547_vm6 = vweird.f32 %v1693_v1 }
 0x376   :  { %1694 = vrcp.f32 %v486_v8  ;;  %v539_v10 = vsel %vm536_vm5, %v538_v3, %v534_v9  ;;  %vm548_vm9 = vmor %vm546_vm7, %vm547_vm6  ;;  %v567_v37 = vand.u32 2147483648, %v486_v8  ;;  %v565_v38 = vand.u32 2147483647, %v486_v8 }
 0x377   :  { %v543_v13 = vsub.f32 1.0, %v542_v7  ;;  %v540_v25 = vmul.f32 %v2131_v33, %v539_v10  ;;  %vm561_vm12 = vweird.f32 %v486_v8 }
 0x378   :  { %v568_v43 = vor.u32 1.1754944e-38, %v567_v37  ;;  %vm566_vm14 = vcmp.eq.f32.partialorder %v565_v38, 8.507059e+37 }
 0x379   :  { %v544_v15 = vmul.f32 %v1693_v1, %v543_v13  ;;  %1562 = vmatmul.msk.f32.gmra.mxu0 %vm423_vm8, %v540_v25 }
 0x37b   :  { %v545_v19 = vadd.f32 %v1693_v1, %v544_v15 }
 0x37c   :  { %v1695_v21 = vpop.eup %1694 }
 0x37d   :  { %v557_v27 = vmul.f32 %v1695_v21, %v486_v8  ;;  %v489_v29 = vpop.xlane.xlu2 %488  ;;  %v549_v30 = vsel %vm548_vm9, %v1693_v1, %v545_v19  ;;  %vm562_vm11 = vweird.f32 %v1695_v21 }
 0x37e   :  { %1696 = vrcp.f32 %v489_v29  ;;  %v554_v32 = vsel %vm551_vm10, %v553_v23, %v549_v30  ;;  %vm563_vm13 = vmor %vm561_vm12, %vm562_vm11  ;;  %v582_v59 = vand.u32 2147483648, %v489_v29  ;;  %v580_v0 = vand.u32 2147483647, %v489_v29 }
 0x37f   :  { %v558_v34 = vsub.f32 1.0, %v557_v27  ;;  %v555_v33 = vmul.f32 %v2135_v39, %v554_v32  ;;  %vm576_vm1 = vweird.f32 %v489_v29 }
 0x380   :  { %v583_v8 = vor.u32 1.1754944e-38, %v582_v59  ;;  %vm581_vm3 = vcmp.eq.f32.partialorder %v580_v0, 8.507059e+37  ;;  %v236_v59 = vld [vmem:[%s1871_s14] sm:$0xff] }
 0x381   :  { %v559_v35 = vmul.f32 %v1695_v21, %v558_v34  ;;  %1563 = vmatmul.msk.f32.gmra.mxu0 %vm423_vm8, %v555_v33 }
 0x383   :  { %v560_v40 = vadd.f32 %v1695_v21, %v559_v35 }
 0x384   :  { %v1697_v42 = vpop.eup %1696 }
 0x385   :  { %v572_v44 = vmul.f32 %v1697_v42, %v489_v29  ;;  %v733_v47 = vpop.xlane.xlu2 %732  ;;  %v492_v48 = vpop.xlane.xlu0 %491  ;;  %v564_v49 = vsel %vm563_vm13, %v1695_v21, %v560_v40  ;;  %vm577_vm15 = vweird.f32 %v1697_v42 }
 0x386   :  { %v737_v50 = vmul.f32 %v733_v47, %v1995_v11  ;;  %1698 = vrcp.f32 %v492_v48  ;;  %v569_v53 = vsel %vm566_vm14, %v568_v43, %v564_v49  ;;  %vm578_vm2 = vmor %vm576_vm1, %vm577_vm15  ;;  %v597_v15 = vand.u32 2147483648, %v492_v48 }
 0x387   :  { %v573_v39 = vsub.f32 1.0, %v572_v44  ;;  %v570_v16 = vmul.f32 %v2139_v45, %v569_v53  ;;  %v595_v23 = vand.u32 2147483647, %v492_v48  ;;  %vm591_vm5 = vweird.f32 %v492_v48 }
 0x388   :  { %v2175_v54 = vsub.f32 %v2148_v55, %v737_v50  ;;  %v598_v32 = vor.u32 1.1754944e-38, %v597_v15 }
 0x389   :  { %v574_v58 = vmul.f32 %v1697_v42, %v573_v39  ;;  %1564 = vmatmul.msk.f32.gmra.mxu0 %vm423_vm8, %v570_v16  ;;  %vm596_vm7 = vcmp.eq.f32.partialorder %v595_v23, 8.507059e+37  ;;  %v239_v39 = vld [vmem:[%s1871_s14 + $0x18] sm:$0xff]  ;;  %v238_v16 = vld [vmem:[%s1871_s14 + $0x10] sm:$0xff] }
 0x38a   :  { %v741_v60 = vmul.f32 %v2175_v54, %v2175_v54  ;;  %716 = vmatpush.msrb.mxu1 %v239_v39 }
 0x38b   :  { %v575_v1 = vadd.f32 %v1697_v42, %v574_v58  ;;  %v237_v58 = vld [vmem:[%s1871_s14 + $0x8] sm:$0xff]  ;;  %s2409_s14 = sld [smem:[#allocation15_spill]] }
 0x38c   :  { %v1699_v3 = vpop.eup %1698  ;;  %v743_v7 = vsel %vm162_vm0, %v741_v60, 0.0  ;;  %717 = vmatpush.msrb.mxu1 %v238_v16 }
 0x38d   :  { %v587_v55 = vmul.f32 %v1699_v3, %v492_v48  ;;  %744 = vadd.xlane.f32.xlu1 %v743_v7  ;;  %v495_v9 = vpop.xlane.xlu1 %494  ;;  %v736_v45 = vpop.xlane.xlu0 %735  ;;  %v579_v10 = vsel %vm578_vm2, %v1697_v42, %v575_v1  ;;  %vm592_vm4 = vweird.f32 %v1699_v3  ;;  %v791_v7 = vld [vmem:[%s1911_s4 + $0x10] sm:$0xff] }
 0x38e   :  { %1700 = vrcp.f32 %v495_v9  ;;  %v738_v13 = vmul.f32 %v736_v45, %v1995_v11  ;;  %v584_v14 = vsel %vm581_vm3, %v583_v8, %v579_v10  ;;  %vm593_vm6 = vmor %vm591_vm5, %vm592_vm4  ;;  %v612_v38 = vand.u32 2147483648, %v495_v9  ;;  %718 = vmatpush.msrb.mxu1 %v237_v58  ;;  %v790_v8 = vld [vmem:[%s1911_s4 + $0x8] sm:$0xff]  ;;  %v789_v45 = vld [vmem:[%s1911_s4] sm:$0xff] }
 0x38f   :  { %v588_v25 = vsub.f32 1.0, %v587_v55  ;;  %v585_v19 = vmul.f32 %v2143_v52, %v584_v14  ;;  %v610_v42 = vand.u32 2147483647, %v495_v9  ;;  %vm606_vm10 = vweird.f32 %v495_v9 }
 0x390   :  { %v2184_v17 = vsub.f32 %v2157_v2, %v738_v13  ;;  %v613_v44 = vor.u32 1.1754944e-38, %v612_v38  ;;  %719 = vmatpush.msrb.mxu1 %v236_v59  ;;  %v1653_v59 = vld [vmem:[%s2401_s5] ss:$0 sm:$0xff] }
 0x391   :  { %v589_v21 = vmul.f32 %v1699_v3, %v588_v25  ;;  %1565 = vmatmul.msk.f32.gmra.mxu0 %vm423_vm8, %v585_v19  ;;  %vm611_vm12 = vcmp.eq.f32.partialorder %v610_v42, 8.507059e+37 }
 0x392   :  { %v742_v27 = vmul.f32 %v2184_v17, %v2184_v17 }
 0x393   :  { %v590_v29 = vadd.f32 %v1699_v3, %v589_v21 }
 0x394   :  { %v1701_v30 = vpop.eup %1700  ;;  %v746_v34 = vsel %vm162_vm0, %v742_v27, 0.0 }
 0x395   :  { %v602_v33 = vmul.f32 %v1701_v30, %v495_v9  ;;  %747 = vadd.xlane.f32.xlu2 %v746_v34  ;;  %v594_v2 = vsel %vm593_vm6, %v1699_v3, %v590_v29  ;;  %vm607_vm9 = vweird.f32 %v1701_v30  ;;  %v792_v3 = vld [vmem:[%s1911_s4 + $0x18] sm:$0xff]  ;;  %s2415_s4 = sld [smem:[#allocation21_spill]] }
 0x396   :  { %v599_v52 = vsel %vm596_vm7, %v598_v32, %v594_v2  ;;  %vm608_vm11 = vmor %vm606_vm10, %vm607_vm9  ;;  %858 = vmatpush.msra.mxu1 %v792_v3  ;;  %v788_v34 = vld [vmem:[%s2400_s0 + $0x18] sm:$0xff] }
 0x397   :  { %v603_v35 = vsub.f32 1.0, %v602_v33  ;;  %v600_v37 = vmul.f32 %v2152_v62, %v599_v52  ;;  %826 = vmatpush.msrb.mxu2 %v788_v34  ;;  %v1656_v34 = vld [vmem:[%s2405_s25] ss:$0 sm:$0xff] }
 0x398   :  { %859 = vmatpush.msra.mxu1 %v791_v7 }
 0x399   :  { %v604_v40 = vmul.f32 %v1701_v30, %v603_v35  ;;  %1566 = vmatmul.msk.f32.gmra.mxu0 %vm423_vm8, %v600_v37 }
 0x39a   :  { %860 = vmatpush.msra.mxu1 %v790_v8 }
 0x39b   :  { %v605_v43 = vadd.f32 %v1701_v30, %v604_v40 }
 0x39c   :  { %861 = vmatpush.msra.mxu1 %v789_v45  ;;  %v786_v45 = vld [vmem:[%s2400_s0 + $0x8] sm:$0xff] }
 0x39d   :  { %v609_v47 = vsel %vm608_vm11, %v1701_v30, %v605_v43 }
 0x39e   :  { %v614_v48 = vsel %vm611_vm12, %v613_v44, %v609_v47 }
 0x39f   :  { %v615_v49 = vmul.f32 %v2161_v5, %v614_v48 }
 0x3a1   :  { %1567 = vmatmul.msk.f32.gmra.mxu0 %vm423_vm8, %v615_v49 }
 0x3e6   :  { %v657_v62 = vpop.f32.mrf.mxu0 }
 0x3e7   :  { %v681_v29 = vmul.f32 %v657_v62, %v2042_v6 }
 0x3ee   :  { %v660_v50 = vpop.f32.mrf.mxu0 }
 0x3ef   :  { %v682_v47 = vmul.f32 %v660_v50, %v2048_v12 }
 0x3f6   :  { %v663_v53 = vpop.f32.mrf.mxu0 }
 0x3f7   :  { %v683_v21 = vmul.f32 %v663_v53, %v2054_v18 }
 0x3f9   :  { %v689_v33 = vadd.f32 %v683_v21, %v681_v29 }
 0x3fe   :  { %v666_v60 = vpop.f32.mrf.mxu0 }
 0x3ff   :  { %v684_v40 = vmul.f32 %v666_v60, %v2059_v20 }
 0x400   :  { %v745_v0 = vpop.xlane.xlu1 %744 }
 0x401   :  { %v749_v5 = vmul.f32 %v745_v0, %v1995_v11  ;;  %v690_v49 = vadd.f32 %v684_v40, %v682_v47  ;;  %v1658_v47 = vld [vmem:[%s2407_s3] ss:$0 sm:$0xff] }
 0x403   :  { %v751_v1 = vadd.f32 1e-05, %v749_v5 }
 0x405   :  { %1702 = vrsqrt.f32 %v751_v1  ;;  %vm759_vm13 = vweird.f32 %v751_v1 }
 0x406   :  { %v669_v55 = vpop.f32.mrf.mxu0 }
 0x407   :  { %v685_v30 = vmul.f32 %v669_v55, %v2064_v22 }
 0x408   :  { %v748_v9 = vpop.xlane.xlu2 %747 }
 0x409   :  { %v750_v10 = vmul.f32 %v748_v9, %v1995_v11  ;;  %v691_v37 = vadd.f32 %v689_v33, %v685_v30  ;;  %v787_v9 = vld [vmem:[%s2400_s0 + $0x10] sm:$0xff] }
 0x40a   :  { %827 = vmatpush.msrb.mxu2 %v787_v9 }
 0x40b   :  { %v1703_v13 = vpop.eup %1702  ;;  %v752_v25 = vadd.f32 1e-05, %v750_v10  ;;  %v785_v10 = vld [vmem:[%s2400_s0] sm:$0xff] }
 0x40c   :  { %v754_v14 = vmul.f32 %v1703_v13, %v751_v1  ;;  %vm760_vm14 = vweird.f32 %v1703_v13  ;;  %v1654_v1 = vld [vmem:[%s2402_s9] ss:$0 sm:$0xff]  ;;  %828 = vmatpush.msrb.mxu2 %v786_v45 }
 0x40d   :  { %1704 = vrsqrt.f32 %v752_v25  ;;  %vm761_vm15 = vmor %vm759_vm13, %vm760_vm14  ;;  %vm769_vm1 = vweird.f32 %v752_v25 }
 0x40e   :  { %v755_v15 = vmul.f32 %v1703_v13, %v754_v14  ;;  %v672_v19 = vpop.f32.mrf.mxu0  ;;  %829 = vmatpush.msrb.mxu2 %v785_v10  ;;  %v793_v14 = vld [vmem:[%s2403_s17] sm:$0xff] }
 0x40f   :  { %v686_v48 = vmul.f32 %v672_v19, %v2069_v24 }
 0x410   :  { %v756_v27 = vmul.f32 0.5, %v755_v15  ;;  %v1655_v15 = vld [vmem:[%s2404_s21] ss:$0 sm:$0xff] }
 0x411   :  { %v692_v16 = vadd.f32 %v690_v49, %v686_v48 }
 0x412   :  { %v757_v2 = vsub.f32 1.5, %v756_v27 }
 0x413   :  { %v1705_v23 = vpop.eup %1704 }
 0x414   :  { %v764_v32 = vmul.f32 %v1705_v23, %v752_v25  ;;  %v758_v43 = vmul.f32 %v1703_v13, %v757_v2  ;;  %vm770_vm2 = vweird.f32 %v1705_v23  ;;  %v795_v25 = vld [vmem:[%s2403_s17 + $0x10] sm:$0xff] }
 0x415   :  { %vm771_vm3 = vmor %vm769_vm1, %vm770_vm2 }
 0x416   :  { %v765_v52 = vmul.f32 %v1705_v23, %v764_v32  ;;  %v675_v35 = vpop.f32.mrf.mxu0  ;;  %v762_v62 = vsel %vm761_vm15, %v1703_v13, %v758_v43  ;;  %v796_v13 = vld [vmem:[%s2403_s17 + $0x18] sm:$0xff] }
 0x417   :  { %v687_v38 = vmul.f32 %v675_v35, %v2074_v26  ;;  %v773_v60 = vmul.f32 %v762_v62, %v2175_v54  ;;  %884 = vmatpush.msra.mxu2 %v796_v13 }
 0x418   :  { %v766_v44 = vmul.f32 0.5, %v765_v52  ;;  %v1657_v52 = vld [vmem:[%s2406_s29] ss:$0 sm:$0xff] }
 0x419   :  { %v693_v42 = vadd.f32 %v691_v37, %v687_v38  ;;  %v778_v5 = vmul.f32 %v1653_v59, %v773_v60  ;;  %885 = vmatpush.msra.mxu2 %v795_v25 }
 0x41a   :  { %v767_v39 = vsub.f32 1.5, %v766_v44 }
 0x41b   :  { %1568 = vmatmul.msk.f32.vlgmr.msrb.gmra.mxu1 %vm162_vm0, %v693_v42  ;;  %v783_v7 = vadd.f32 %v1654_v1, %v778_v5 }
 0x41c   :  { %v768_v0 = vmul.f32 %v1705_v23, %v767_v39 }
 0x41e   :  { %v678_v53 = vpop.f32.mrf.mxu0  ;;  %v772_v3 = vsel %vm771_vm3, %v1705_v23, %v768_v0 }
 0x41f   :  { %v688_v58 = vmul.f32 %v678_v53, %v2079_v28  ;;  %v774_v8 = vmul.f32 %v772_v3, %v2184_v17  ;;  %v794_v17 = vld [vmem:[%s2403_s17 + $0x8] sm:$0xff] }
 0x420   :  { %886 = vmatpush.msra.mxu2 %v794_v17 }
 0x421   :  { %v694_v50 = vadd.f32 %v692_v16, %v688_v58  ;;  %v779_v54 = vmul.f32 %v1653_v59, %v774_v8 }
 0x422   :  { %887 = vmatpush.msra.mxu2 %v793_v14 }
 0x423   :  { %1569 = vmatmul.msk.f32.gmra.mxu1 %vm162_vm0, %v694_v50  ;;  %v784_v55 = vadd.f32 %v1654_v1, %v779_v54 }
 0x42b   :  { %1572 = vmatmul.msk.f32.vlgmr.msra.gmra.mxu1 %vm162_vm0, %v783_v7 }
 0x433   :  { %1573 = vmatmul.msk.f32.gmra.mxu1 %vm162_vm0, %v784_v55 }
 0x498   :  { %v721_v19 = vpop.f32.mrf.mxu1 }
 0x499   :  { %v722_v21 = vadd.f32 %v1655_v15, %v721_v19 }
 0x49b   :  { %v2231_v23 = vadd.f32 %v722_v21, %v2026_v61 }
 0x49d   :  { %1570 = vmatmul.msk.f32.vlgmr.msrb.gmra.mxu2 %vm162_vm0, %v2231_v23 }
 0x4a0   :  { %v724_v27 = vpop.f32.mrf.mxu1 }
 0x4a1   :  { %v725_v29 = vadd.f32 %v1655_v15, %v724_v27 }
 0x4a3   :  { %v2236_v30 = vadd.f32 %v725_v29, %v2021_v56 }
 0x4a5   :  { %1571 = vmatmul.msk.f32.gmra.mxu2 %vm162_vm0, %v2236_v30 }
 0x4a8   :  { %v863_v32 = vpop.f32.mrf.mxu1 }
 0x4a9   :  { %v864_v61 = vadd.f32 %v1656_v34, %v863_v32 }
 0x4ad   :  { %1574 = vmatmul.msk.f32.vlgmr.msra.gmra.mxu2 %vm162_vm0, %v783_v7 }
 0x4b0   :  { %v866_v33 = vpop.f32.mrf.mxu1 }
 0x4b1   :  { %v867_v2 = vadd.f32 %v1656_v34, %v866_v33 }
 0x4b3   :  { %1576 = vmatpush.xpose.msk.msrb.mxu1 %vm162_vm0, %v867_v2 }
 0x4b5   :  { %1575 = vmatmul.msk.f32.gmra.mxu2 %vm162_vm0, %v784_v55 }
 0x4b7   :  { %1577 = vmatpush.xpose.msk.msrb.mxu1 %vm162_vm0, %v864_v61 }
 0x520   :  { %v831_v56 = vpop.f32.mrf.mxu2 }
 0x521   :  { %v832_v35 = vadd.f32 %v1657_v52, %v831_v56 }
 0x523   :  { %v895_v37 = vmul.f32 %v832_v35, %v2042_v6  ;;  %v897_v44 = vmul.f32 %v832_v35, %v2054_v18  ;;  %v899_v39 = vmul.f32 %v832_v35, %v2064_v22  ;;  %v901_v18 = vmul.f32 %v832_v35, %v2074_v26 }
 0x525   :  { %1578 = vmatmul.msk.f32.vlgmr.msrb.gmra.mxu1 %vm162_vm0, %v895_v37 }
 0x528   :  { %v834_v38 = vpop.f32.mrf.mxu2 }
 0x529   :  { %v835_v40 = vadd.f32 %v1657_v52, %v834_v38 }
 0x52b   :  { %v896_v42 = vmul.f32 %v835_v40, %v2048_v12  ;;  %v898_v6 = vmul.f32 %v835_v40, %v2059_v20  ;;  %v900_v12 = vmul.f32 %v835_v40, %v2069_v24  ;;  %v902_v53 = vmul.f32 %v835_v40, %v2079_v28 }
 0x52d   :  { %1579 = vmatmul.msk.f32.gmra.mxu1 %vm162_vm0, %v896_v42 }
 0x530   :  { %v889_v43 = vpop.f32.mrf.mxu2 }
 0x531   :  { %v890_v62 = vadd.f32 %v1658_v47, %v889_v43 }
 0x535   :  { %1580 = vmatmul.msk.f32.gmra.mxu1 %vm162_vm0, %v897_v44 }
 0x538   :  { %v892_v48 = vpop.f32.mrf.mxu2 }
 0x539   :  { %v893_v49 = vadd.f32 %v1658_v47, %v892_v48 }
 0x53b   :  { %1220 = vmatpush.msrb.mxu2 %v893_v49 }
 0x53d   :  { %1581 = vmatmul.msk.f32.gmra.mxu1 %vm162_vm0, %v898_v6  ;;  %1221 = vmatpush.msrb.mxu2 %v890_v62 }
 0x545   :  { %1582 = vmatmul.msk.f32.gmra.mxu1 %vm162_vm0, %v899_v39 }
 0x54d   :  { %1583 = vmatmul.msk.f32.gmra.mxu1 %vm162_vm0, %v900_v12 }
 0x555   :  { %1584 = vmatmul.msk.f32.gmra.mxu1 %vm162_vm0, %v901_v18 }
 0x55d   :  { %1585 = vmatmul.msk.f32.gmra.mxu1 %vm162_vm0, %v902_v53 }
 0x5a2   :  { %v950_v20 = vpop.f32.mrf.mxu1 }
 0x5a3   :  { %v974_v16 = vmul.f32 0.35355338, %v950_v20 }
 0x5a5   :  { %v982_v58 = vadd.f32 %v974_v16, %v2084_v31 }
 0x5a7   :  { %v990_v22 = vsel %vm423_vm8, %v982_v58, -inf }
 0x5a8   :  { %991 = vmax.xlane.f32.xlu0 %v990_v22 }
 0x5aa   :  { %v953_v59 = vpop.f32.mrf.mxu1 }
 0x5ab   :  { %v975_v60 = vmul.f32 0.35355338, %v953_v59 }
 0x5ad   :  { %v983_v24 = vadd.f32 %v975_v60, %v2089_v36 }
 0x5af   :  { %v993_v50 = vsel %vm423_vm8, %v983_v24, -inf }
 0x5b0   :  { %994 = vmax.xlane.f32.xlu1 %v993_v50 }
 0x5b2   :  { %v956_v26 = vpop.f32.mrf.mxu1 }
 0x5b3   :  { %v976_v0 = vmul.f32 0.35355338, %v956_v26 }
 0x5b5   :  { %v984_v28 = vadd.f32 %v976_v0, %v2094_v41 }
 0x5b7   :  { %v996_v5 = vsel %vm423_vm8, %v984_v28, -inf }
 0x5b8   :  { %997 = vmax.xlane.f32.xlu2 %v996_v5 }
 0x5ba   :  { %v959_v1 = vpop.f32.mrf.mxu1 }
 0x5bb   :  { %v977_v3 = vmul.f32 0.35355338, %v959_v1 }
 0x5bd   :  { %v985_v31 = vadd.f32 %v977_v3, %v2099_v46 }
 0x5bf   :  { %v999_v7 = vsel %vm423_vm8, %v985_v31, -inf }
 0x5c0   :  { %1000 = vmax.xlane.f32.xlu0 %v999_v7 }
 0x5c2   :  { %v962_v8 = vpop.f32.mrf.mxu1 }
 0x5c3   :  { %v978_v54 = vmul.f32 0.35355338, %v962_v8 }
 0x5c5   :  { %v986_v36 = vadd.f32 %v978_v54, %v2104_v51 }
 0x5c7   :  { %v1002_v55 = vsel %vm423_vm8, %v986_v36, -inf }
 0x5c8   :  { %1003 = vmax.xlane.f32.xlu1 %v1002_v55 }
 0x5ca   :  { %v965_v9 = vpop.f32.mrf.mxu1 }
 0x5cb   :  { %v979_v45 = vmul.f32 0.35355338, %v965_v9 }
 0x5cd   :  { %v987_v41 = vadd.f32 %v979_v45, %v2109_v57 }
 0x5cf   :  { %v1005_v10 = vsel %vm423_vm8, %v987_v41, -inf }
 0x5d0   :  { %1006 = vmax.xlane.f32.xlu2 %v1005_v10 }
 0x5d2   :  { %v968_v13 = vpop.f32.mrf.mxu1 }
 0x5d3   :  { %v980_v25 = vmul.f32 0.35355338, %v968_v13 }
 0x5d5   :  { %v988_v46 = vadd.f32 %v980_v25, %v2114_v63 }
 0x5d7   :  { %v1008_v17 = vsel %vm423_vm8, %v988_v46, -inf }
 0x5d8   :  { %1009 = vmax.xlane.f32.xlu0 %v1008_v17 }
 0x5da   :  { %v971_v14 = vpop.f32.mrf.mxu1 }
 0x5db   :  { %v981_v15 = vmul.f32 0.35355338, %v971_v14 }
 0x5dd   :  { %v989_v51 = vadd.f32 %v981_v15, %v2119_v4 }
 0x5df   :  { %v1011_v19 = vsel %vm423_vm8, %v989_v51, -inf }
 0x5e0   :  { %1012 = vmax.xlane.f32.xlu2 %v1011_v19 }
 0x61b   :  { %v992_v21 = vpop.xlane.xlu0 %991 }
 0x61c   :  { %v1014_v27 = vsub.f32 %v982_v58, %v992_v21 }
 0x61e   :  { %v1022_v57 = vmul.f32 1.442695, %v1014_v27 }
 0x620   :  { %1706 = vpow2.f32 %v1022_v57 }
 0x623   :  { %v995_v29 = vpop.xlane.xlu1 %994 }
 0x624   :  { %v1015_v32 = vsub.f32 %v983_v24, %v995_v29 }
 0x626   :  { %v2279_v34 = vpop.eup %1706  ;;  %v1024_v33 = vmul.f32 1.442695, %v1015_v32 }
 0x627   :  { %v1038_v63 = vsel %vm423_vm8, %v2279_v34, 0.0 }
 0x628   :  { %1708 = vpow2.f32 %v1024_v33  ;;  %1039 = vadd.xlane.f32.xlu1 %v1038_v63 }
 0x62b   :  { %v998_v2 = vpop.xlane.xlu2 %997 }
 0x62c   :  { %v1016_v61 = vsub.f32 %v984_v28, %v998_v2 }
 0x62e   :  { %v2283_v4 = vpop.eup %1708  ;;  %v1026_v52 = vmul.f32 1.442695, %v1016_v61 }
 0x62f   :  { %v1041_v56 = vsel %vm423_vm8, %v2283_v4, 0.0 }
 0x630   :  { %1710 = vpow2.f32 %v1026_v52  ;;  %1042 = vadd.xlane.f32.xlu0 %v1041_v56 }
 0x633   :  { %v1001_v35 = vpop.xlane.xlu0 %1000 }
 0x634   :  { %v1017_v37 = vsub.f32 %v985_v31, %v1001_v35 }
 0x636   :  { %v2287_v38 = vpop.eup %1710  ;;  %v1028_v40 = vmul.f32 1.442695, %v1017_v37 }
 0x637   :  { %v1044_v42 = vsel %vm423_vm8, %v2287_v38, 0.0 }
 0x638   :  { %1712 = vpow2.f32 %v1028_v40  ;;  %1045 = vadd.xlane.f32.xlu1 %v1044_v42 }
 0x63b   :  { %v1004_v43 = vpop.xlane.xlu1 %1003 }
 0x63c   :  { %v1018_v44 = vsub.f32 %v986_v36, %v1004_v43 }
 0x63e   :  { %v2291_v47 = vpop.eup %1712  ;;  %v1030_v48 = vmul.f32 1.442695, %v1018_v44 }
 0x63f   :  { %v1047_v49 = vsel %vm423_vm8, %v2291_v47, 0.0 }
 0x640   :  { %1714 = vpow2.f32 %v1030_v48  ;;  %1048 = vadd.xlane.f32.xlu2 %v1047_v49 }
 0x643   :  { %v1007_v62 = vpop.xlane.xlu2 %1006 }
 0x644   :  { %v1019_v6 = vsub.f32 %v987_v41, %v1007_v62 }
 0x646   :  { %v2295_v39 = vpop.eup %1714  ;;  %v1032_v12 = vmul.f32 1.442695, %v1019_v6 }
 0x647   :  { %v1050_v18 = vsel %vm423_vm8, %v2295_v39, 0.0 }
 0x648   :  { %1716 = vpow2.f32 %v1032_v12  ;;  %1051 = vadd.xlane.f32.xlu0 %v1050_v18 }
 0x64b   :  { %v1010_v53 = vpop.xlane.xlu0 %1009 }
 0x64c   :  { %v1020_v20 = vsub.f32 %v988_v46, %v1010_v53 }
 0x64e   :  { %v2299_v16 = vpop.eup %1716  ;;  %v1034_v58 = vmul.f32 1.442695, %v1020_v20 }
 0x64f   :  { %v1053_v22 = vsel %vm423_vm8, %v2299_v16, 0.0 }
 0x650   :  { %1718 = vpow2.f32 %v1034_v58  ;;  %1054 = vadd.xlane.f32.xlu1 %v1053_v22 }
 0x653   :  { %v1013_v59 = vpop.xlane.xlu2 %1012 }
 0x654   :  { %v1021_v60 = vsub.f32 %v989_v51, %v1013_v59 }
 0x656   :  { %v2303_v24 = vpop.eup %1718  ;;  %v1036_v50 = vmul.f32 1.442695, %v1021_v60 }
 0x657   :  { %v1056_v26 = vsel %vm423_vm8, %v2303_v24, 0.0 }
 0x658   :  { %1720 = vpow2.f32 %v1036_v50  ;;  %1057 = vadd.xlane.f32.xlu2 %v1056_v26 }
 0x65e   :  { %v2307_v0 = vpop.eup %1720 }
 0x65f   :  { %v1059_v28 = vsel %vm423_vm8, %v2307_v0, 0.0 }
 0x660   :  { %1060 = vadd.xlane.f32.xlu0 %v1059_v28 }
 0x69b   :  { %v1040_v5 = vpop.xlane.xlu1 %1039 }
 0x69c   :  { %1722 = vrcp.f32 %v1040_v5  ;;  %v1073_v8 = vand.u32 2147483648, %v1040_v5  ;;  %v1071_v36 = vand.u32 2147483647, %v1040_v5  ;;  %vm1067_vm5 = vweird.f32 %v1040_v5 }
 0x69e   :  { %v1074_v45 = vor.u32 1.1754944e-38, %v1073_v8  ;;  %vm1072_vm7 = vcmp.eq.f32.partialorder %v1071_v36, 8.507059e+37 }
 0x6a2   :  { %v1723_v1 = vpop.eup %1722 }
 0x6a3   :  { %v1063_v3 = vmul.f32 %v1723_v1, %v1040_v5  ;;  %v1043_v31 = vpop.xlane.xlu0 %1042  ;;  %vm1068_vm4 = vweird.f32 %v1723_v1  ;;  %v800_v5 = vld [vmem:[%s2408_s8 + $0x18] sm:$0xff] }
 0x6a4   :  { %1724 = vrcp.f32 %v1043_v31  ;;  %vm1069_vm6 = vmor %vm1067_vm5, %vm1068_vm4  ;;  %v1088_v14 = vand.u32 2147483648, %v1043_v31  ;;  %v1086_v51 = vand.u32 2147483647, %v1043_v31  ;;  %vm1082_vm10 = vweird.f32 %v1043_v31  ;;  %1282 = vmatpush.msra.mxu3 %v800_v5  ;;  %v1750_v5 = vld [vmem:[%s1836_s13 + $0x18] sm:$0xff] }
 0x6a5   :  { %v1064_v7 = vsub.f32 1.0, %v1063_v3 }
 0x6a6   :  { %v1089_v27 = vor.u32 1.1754944e-38, %v1088_v14  ;;  %vm1087_vm12 = vcmp.eq.f32.partialorder %v1086_v51, 8.507059e+37 }
 0x6a7   :  { %v1065_v54 = vmul.f32 %v1723_v1, %v1064_v7 }
 0x6a9   :  { %v1066_v55 = vadd.f32 %v1723_v1, %v1065_v54 }
 0x6aa   :  { %v1725_v9 = vpop.eup %1724 }
 0x6ab   :  { %v1070_v41 = vsel %vm1069_vm6, %v1723_v1, %v1066_v55  ;;  %v1078_v10 = vmul.f32 %v1725_v9, %v1043_v31  ;;  %v1046_v13 = vpop.xlane.xlu1 %1045  ;;  %vm1083_vm9 = vweird.f32 %v1725_v9 }
 0x6ac   :  { %v1075_v25 = vsel %vm1072_vm7, %v1074_v45, %v1070_v41  ;;  %1726 = vrcp.f32 %v1046_v13  ;;  %vm1084_vm11 = vmor %vm1082_vm10, %vm1083_vm9  ;;  %v1103_v2 = vand.u32 2147483648, %v1046_v13  ;;  %v1101_v52 = vand.u32 2147483647, %v1046_v13 }
 0x6ad   :  { %v1079_v46 = vsub.f32 1.0, %v1078_v10  ;;  %v1076_v17 = vmul.f32 %v2279_v34, %v1075_v25  ;;  %vm1097_vm14 = vweird.f32 %v1046_v13 }
 0x6ae   :  { %v1104_v37 = vor.u32 1.1754944e-38, %v1103_v2  ;;  %vm1102_vm1 = vcmp.eq.f32.partialorder %v1101_v52, 8.507059e+37 }
 0x6af   :  { %v1080_v15 = vmul.f32 %v1725_v9, %v1079_v46  ;;  %1586 = vmatmul.msk.f32.vlgmr.msrb.gmra.mxu2 %vm423_vm8, %v1076_v17 }
 0x6b1   :  { %v1081_v19 = vadd.f32 %v1725_v9, %v1080_v15 }
 0x6b2   :  { %v1727_v21 = vpop.eup %1726 }
 0x6b3   :  { %v1093_v57 = vmul.f32 %v1727_v21, %v1046_v13  ;;  %v1049_v29 = vpop.xlane.xlu2 %1048  ;;  %v1085_v32 = vsel %vm1084_vm11, %v1725_v9, %v1081_v19  ;;  %vm1098_vm13 = vweird.f32 %v1727_v21 }
 0x6b4   :  { %1728 = vrcp.f32 %v1049_v29  ;;  %v1090_v33 = vsel %vm1087_vm12, %v1089_v27, %v1085_v32  ;;  %vm1099_vm15 = vmor %vm1097_vm14, %vm1098_vm13  ;;  %v1118_v49 = vand.u32 2147483648, %v1049_v29  ;;  %v1116_v6 = vand.u32 2147483647, %v1049_v29 }
 0x6b5   :  { %v1094_v63 = vsub.f32 1.0, %v1093_v57  ;;  %v1091_v34 = vmul.f32 %v2283_v4, %v1090_v33  ;;  %vm1112_vm3 = vweird.f32 %v1049_v29 }
 0x6b6   :  { %v1119_v53 = vor.u32 1.1754944e-38, %v1118_v49  ;;  %vm1117_vm5 = vcmp.eq.f32.partialorder %v1116_v6, 8.507059e+37  ;;  %v797_v49 = vld [vmem:[%s2408_s8] sm:$0xff] }
 0x6b7   :  { %v1095_v61 = vmul.f32 %v1727_v21, %v1094_v63  ;;  %1587 = vmatmul.msk.f32.gmra.mxu2 %vm423_vm8, %v1091_v34 }
 0x6b9   :  { %v1096_v56 = vadd.f32 %v1727_v21, %v1095_v61 }
 0x6ba   :  { %v1729_v35 = vpop.eup %1728 }
 0x6bb   :  { %v1108_v40 = vmul.f32 %v1729_v35, %v1049_v29  ;;  %v1052_v42 = vpop.xlane.xlu0 %1051  ;;  %v1100_v43 = vsel %vm1099_vm15, %v1727_v21, %v1096_v56  ;;  %vm1113_vm2 = vweird.f32 %v1729_v35 }
 0x6bc   :  { %1730 = vrcp.f32 %v1052_v42  ;;  %v1105_v44 = vsel %vm1102_vm1, %v1104_v37, %v1100_v43  ;;  %vm1114_vm4 = vmor %vm1112_vm3, %vm1113_vm2  ;;  %v1133_v50 = vand.u32 2147483648, %v1052_v42  ;;  %v1131_v28 = vand.u32 2147483647, %v1052_v42 }
 0x6bd   :  { %v1109_v48 = vsub.f32 1.0, %v1108_v40  ;;  %v1106_v4 = vmul.f32 %v2287_v38, %v1105_v44  ;;  %vm1127_vm7 = vweird.f32 %v1052_v42  ;;  %v798_v44 = vld [vmem:[%s2408_s8 + $0x8] sm:$0xff] }
 0x6be   :  { %v1134_v31 = vor.u32 1.1754944e-38, %v1133_v50  ;;  %vm1132_vm10 = vcmp.eq.f32.partialorder %v1131_v28, 8.507059e+37 }
 0x6bf   :  { %v1110_v62 = vmul.f32 %v1729_v35, %v1109_v48  ;;  %1588 = vmatmul.msk.f32.gmra.mxu2 %vm423_vm8, %v1106_v4 }
 0x6c1   :  { %v1111_v12 = vadd.f32 %v1729_v35, %v1110_v62 }
 0x6c2   :  { %v1731_v18 = vpop.eup %1730 }
 0x6c3   :  { %v1123_v20 = vmul.f32 %v1731_v18, %v1052_v42  ;;  %v1055_v58 = vpop.xlane.xlu1 %1054  ;;  %v1115_v22 = vsel %vm1114_vm4, %v1729_v35, %v1111_v12  ;;  %vm1128_vm6 = vweird.f32 %v1731_v18 }
 0x6c4   :  { %1732 = vrcp.f32 %v1055_v58  ;;  %v1120_v59 = vsel %vm1117_vm5, %v1119_v53, %v1115_v22  ;;  %vm1129_vm9 = vmor %vm1127_vm7, %vm1128_vm6  ;;  %v1148_v9 = vand.u32 2147483648, %v1055_v58  ;;  %v1146_v41 = vand.u32 2147483647, %v1055_v58  ;;  %v1748_v22 = vld [vmem:[%s1836_s13 + $0x20] sm:$0xff] }
 0x6c5   :  { %v1124_v60 = vsub.f32 1.0, %v1123_v20  ;;  %v1121_v38 = vmul.f32 %v2291_v47, %v1120_v59  ;;  %vm1142_vm12 = vweird.f32 %v1055_v58  ;;  %v1747_v20 = vld [vmem:[%s1836_s13] sm:$0xff] }
 0x6c6   :  { %v1149_v25 = vor.u32 1.1754944e-38, %v1148_v9  ;;  %vm1147_vm14 = vcmp.eq.f32.partialorder %v1146_v41, 8.507059e+37  ;;  %v1753_v9 = vld [vmem:[%s1836_s13 + $0x38] sm:$0xff] }
 0x6c7   :  { %v1125_v26 = vmul.f32 %v1731_v18, %v1124_v60  ;;  %1589 = vmatmul.msk.f32.gmra.mxu2 %vm423_vm8, %v1121_v38 }
 0x6c9   :  { %v1126_v1 = vadd.f32 %v1731_v18, %v1125_v26  ;;  %v1749_v26 = vld [vmem:[%s1836_s13 + $0x30] sm:$0xff] }
 0x6ca   :  { %v1733_v3 = vpop.eup %1732 }
 0x6cb   :  { %v1138_v7 = vmul.f32 %v1733_v3, %v1055_v58  ;;  %v1058_v8 = vpop.xlane.xlu2 %1057  ;;  %v1130_v54 = vsel %vm1129_vm9, %v1731_v18, %v1126_v1  ;;  %vm1143_vm11 = vweird.f32 %v1733_v3 }
 0x6cc   :  { %1734 = vrcp.f32 %v1058_v8  ;;  %v1135_v36 = vsel %vm1132_vm10, %v1134_v31, %v1130_v54  ;;  %vm1144_vm13 = vmor %vm1142_vm12, %vm1143_vm11  ;;  %v1163_v19 = vand.u32 2147483648, %v1058_v8  ;;  %v1161_v27 = vand.u32 2147483647, %v1058_v8  ;;  %v1751_v31 = vld [vmem:[%s1836_s13 + $0x8] sm:$0xff] }
 0x6cd   :  { %v1139_v47 = vsub.f32 1.0, %v1138_v7  ;;  %v1136_v55 = vmul.f32 %v2295_v39, %v1135_v36  ;;  %vm1157_vm1 = vweird.f32 %v1058_v8 }
 0x6ce   :  { %v1164_v32 = vor.u32 1.1754944e-38, %v1163_v19  ;;  %vm1162_vm3 = vcmp.eq.f32.partialorder %v1161_v27, 8.507059e+37  ;;  %v1354_v19 = vld [vmem:[%s2410_s19 + $0x18] sm:$0xff] }
 0x6cf   :  { %v1140_v45 = vmul.f32 %v1733_v3, %v1139_v47  ;;  %1590 = vmatmul.msk.f32.gmra.mxu2 %vm423_vm8, %v1136_v55  ;;  %1377 = vmatpush.msra.mxu0 %v1354_v19 }
 0x6d1   :  { %v1141_v10 = vadd.f32 %v1733_v3, %v1140_v45 }
 0x6d2   :  { %v1735_v13 = vpop.eup %1734 }
 0x6d3   :  { %v1153_v46 = vmul.f32 %v1735_v13, %v1058_v8  ;;  %v1061_v17 = vpop.xlane.xlu0 %1060  ;;  %v1145_v14 = vsel %vm1144_vm13, %v1733_v3, %v1141_v10  ;;  %vm1158_vm15 = vweird.f32 %v1735_v13  ;;  %v1752_v8 = vld [vmem:[%s1836_s13 + $0x28] sm:$0xff]  ;;  %v1659_v10 = vld [vmem:[%s2409_s14] ss:$0 sm:$0xff] }
 0x6d4   :  { %1736 = vrcp.f32 %v1061_v17  ;;  %v1150_v15 = vsel %vm1147_vm14, %v1149_v25, %v1145_v14  ;;  %vm1159_vm2 = vmor %vm1157_vm1, %vm1158_vm15  ;;  %v1176_v56 = vand.u32 2147483647, %v1061_v17  ;;  %vm1172_vm5 = vweird.f32 %v1061_v17 }
 0x6d5   :  { %v1154_v51 = vsub.f32 1.0, %v1153_v46  ;;  %v1151_v39 = vmul.f32 %v2299_v16, %v1150_v15  ;;  %v1178_v16 = vand.u32 2147483648, %v1061_v17 }
 0x6d6   :  { %vm1177_vm7 = vcmp.eq.f32.partialorder %v1176_v56, 8.507059e+37 }
 0x6d7   :  { %v1155_v21 = vmul.f32 %v1735_v13, %v1154_v51  ;;  %1591 = vmatmul.msk.f32.gmra.mxu2 %vm423_vm8, %v1151_v39  ;;  %v1179_v37 = vor.u32 1.1754944e-38, %v1178_v16  ;;  %v1351_v16 = vld [vmem:[%s2410_s19] sm:$0xff] }
 0x6d9   :  { %v1156_v57 = vadd.f32 %v1735_v13, %v1155_v21  ;;  %v1353_v21 = vld [vmem:[%s2410_s19 + $0x10] sm:$0xff] }
 0x6da   :  { %v1737_v29 = vpop.eup %1736  ;;  %1378 = vmatpush.msra.mxu0 %v1353_v21 }
 0x6db   :  { %v1168_v33 = vmul.f32 %v1737_v29, %v1061_v17  ;;  %v1160_v63 = vsel %vm1159_vm2, %v1735_v13, %v1156_v57  ;;  %vm1173_vm4 = vweird.f32 %v1737_v29 }
 0x6dc   :  { %v1165_v34 = vsel %vm1162_vm3, %v1164_v32, %v1160_v63  ;;  %vm1174_vm6 = vmor %vm1172_vm5, %vm1173_vm4 }
 0x6dd   :  { %v1169_v2 = vsub.f32 1.0, %v1168_v33  ;;  %v1166_v61 = vmul.f32 %v2303_v24, %v1165_v34  ;;  %v799_v24 = vld [vmem:[%s2408_s8 + $0x10] sm:$0xff] }
 0x6de   :  { %1283 = vmatpush.msra.mxu3 %v799_v24 }
 0x6df   :  { %v1170_v52 = vmul.f32 %v1737_v29, %v1169_v2  ;;  %1592 = vmatmul.msk.f32.gmra.mxu2 %vm423_vm8, %v1166_v61  ;;  %v1352_v61 = vld [vmem:[%s2410_s19 + $0x8] sm:$0xff] }
 0x6e0   :  { %1284 = vmatpush.msra.mxu3 %v798_v44  ;;  %1379 = vmatpush.msra.mxu0 %v1352_v61 }
 0x6e1   :  { %v1171_v35 = vadd.f32 %v1737_v29, %v1170_v52 }
 0x6e2   :  { %1285 = vmatpush.msra.mxu3 %v797_v49  ;;  %1380 = vmatpush.msra.mxu0 %v1351_v16 }
 0x6e3   :  { %v1175_v40 = vsel %vm1174_vm6, %v1737_v29, %v1171_v35 }
 0x6e4   :  { %v1180_v42 = vsel %vm1177_vm7, %v1179_v37, %v1175_v40 }
 0x6e5   :  { %v1181_v43 = vmul.f32 %v2307_v0, %v1180_v42  ;;  %v1746_v0 = vld [vmem:[%s1836_s13 + $0x10] sm:$0xff]  ;;  %s2411_s13 = sld [smem:[#allocation20_spill]] }
 0x6e7   :  { %1593 = vmatmul.msk.f32.gmra.mxu2 %vm423_vm8, %v1181_v43 }
 0x6eb   :  { %v1393_v37 = vld [vmem:[%s2411_s13 + $0x18] sm:$0xff] }
 0x6ec   :  { %1416 = vmatpush.msrb.mxu3 %v1393_v37 }
 0x732   :  { %v1223_v48 = vpop.f32.mrf.mxu2 }
 0x733   :  { %v1247_v58 = vmul.f32 %v1747_v20, %v1223_v48 }
 0x73a   :  { %v1226_v4 = vpop.f32.mrf.mxu2 }
 0x73b   :  { %v1248_v7 = vmul.f32 %v1751_v31, %v1226_v4  ;;  %v1390_v31 = vld [vmem:[%s2411_s13] sm:$0xff] }
 0x742   :  { %v1229_v62 = vpop.f32.mrf.mxu2 }
 0x743   :  { %v1249_v53 = vmul.f32 %v1746_v0, %v1229_v62 }
 0x745   :  { %v1255_v60 = vadd.f32 %v1249_v53, %v1247_v58 }
 0x74a   :  { %v1232_v6 = vpop.f32.mrf.mxu2 }
 0x74b   :  { %v1250_v1 = vmul.f32 %v1750_v5, %v1232_v6 }
 0x74d   :  { %v1256_v36 = vadd.f32 %v1250_v1, %v1248_v7  ;;  %v1392_v1 = vld [vmem:[%s2411_s13 + $0x10] sm:$0xff]  ;;  %v1662_v7 = vld [vmem:[%s2414_s20] ss:$0 sm:$0xff] }
 0x74e   :  { %1417 = vmatpush.msrb.mxu3 %v1392_v1 }
 0x752   :  { %v1235_v12 = vpop.f32.mrf.mxu2 }
 0x753   :  { %v1251_v59 = vmul.f32 %v1748_v22, %v1235_v12 }
 0x755   :  { %v1257_v50 = vadd.f32 %v1255_v60, %v1251_v59 }
 0x75a   :  { %v1238_v18 = vpop.f32.mrf.mxu2 }
 0x75b   :  { %v1252_v54 = vmul.f32 %v1752_v8, %v1238_v18  ;;  %v1660_v18 = vld [vmem:[%s2412_s24] ss:$0 sm:$0xff] }
 0x75d   :  { %v1258_v55 = vadd.f32 %v1256_v36, %v1252_v54 }
 0x762   :  { %v1241_v38 = vpop.f32.mrf.mxu2 }
 0x763   :  { %v1253_v28 = vmul.f32 %v1749_v26, %v1241_v38 }
 0x765   :  { %v1259_v3 = vadd.f32 %v1257_v50, %v1253_v28 }
 0x767   :  { %1594 = vmatmul.msk.f32.vlgmr.msra.gmra.mxu3 %vm162_vm0, %v1259_v3  ;;  %v1391_v3 = vld [vmem:[%s2411_s13 + $0x8] sm:$0xff] }
 0x768   :  { %1418 = vmatpush.msrb.mxu3 %v1391_v3 }
 0x76a   :  { %v1244_v47 = vpop.f32.mrf.mxu2  ;;  %1419 = vmatpush.msrb.mxu3 %v1390_v31 }
 0x76b   :  { %v1254_v45 = vmul.f32 %v1753_v9, %v1244_v47 }
 0x76d   :  { %v1260_v41 = vadd.f32 %v1258_v55, %v1254_v45  ;;  %v1432_v45 = vld [vmem:[#allocation2] sm:$0x1] }
 0x76f   :  { %1595 = vmatmul.msk.f32.gmra.mxu3 %vm162_vm0, %v1260_v41  ;;  %v1814_v41 = vmov 0  }
 0x770   :  { %1646 = vset.pattern.permute.xlu2 %v1814_v41  ;;  %1647 = vset.pattern.permute.xlu0 %v1814_v41 }
 0x7ea   :  { %v1287_v13 = vpop.f32.mrf.mxu3 }
 0x7eb   :  { %v1288_v25 = vadd.f32 %v1659_v10, %v1287_v13 }
 0x7ed   :  { %v1293_v46 = vadd.f32 %v1288_v25, %v2231_v23 }
 0x7ef   :  { %v1297_v17 = vsel %vm162_vm0, %v1293_v46, 0.0 }
 0x7f0   :  { %1298 = vadd.xlane.f32.xlu1 %v1297_v17 }
 0x7f2   :  { %v1290_v14 = vpop.f32.mrf.mxu3 }
 0x7f3   :  { %v1291_v15 = vadd.f32 %v1659_v10, %v1290_v14  ;;  %v1663_v10 = vld [vmem:[%s2415_s4] ss:$0 sm:$0xff] }
 0x7f5   :  { %v1294_v51 = vadd.f32 %v1291_v15, %v2236_v30 }
 0x7f7   :  { %v1300_v39 = vsel %vm162_vm0, %v1294_v51, 0.0 }
 0x7f8   :  { %1301 = vadd.xlane.f32.xlu2 %v1300_v39 }
 0x810   :  { %1435 = vperm.xlu2 %1646, %v1432_v45  }
 0x863   :  { %v1299_v27 = vpop.xlane.xlu1 %1298 }
 0x864   :  { %v1303_v57 = vmul.f32 %v1299_v27, %v1995_v11 }
 0x866   :  { %v1305_v23 = vsub.f32 %v1293_v46, %v1303_v57 }
 0x868   :  { %v1307_v29 = vmul.f32 %v1305_v23, %v1305_v23 }
 0x86a   :  { %v1309_v32 = vsel %vm162_vm0, %v1307_v29, 0.0 }
 0x86b   :  { %1310 = vadd.xlane.f32.xlu0 %v1309_v32  ;;  %v1302_v33 = vpop.xlane.xlu2 %1301 }
 0x86c   :  { %v1304_v30 = vmul.f32 %v1302_v33, %v1995_v11 }
 0x86e   :  { %v1306_v63 = vsub.f32 %v1294_v51, %v1304_v30  ;;  %v1431_v51 = vld [vmem:[%s1976_s6] sm:$0x1] }
 0x870   :  { %v1308_v34 = vmul.f32 %v1306_v63, %v1306_v63 }
 0x872   :  { %v1312_v2 = vsel %vm162_vm0, %v1308_v34, 0.0 }
 0x873   :  { %1313 = vadd.xlane.f32.xlu1 %v1312_v2 }
 0x8de   :  { %v1311_v52 = vpop.xlane.xlu0 %1310 }
 0x8df   :  { %v1315_v56 = vmul.f32 %v1311_v52, %v1995_v11 }
 0x8e1   :  { %v1317_v35 = vadd.f32 1e-05, %v1315_v56 }
 0x8e3   :  { %1738 = vrsqrt.f32 %v1317_v35  ;;  %vm1325_vm9 = vweird.f32 %v1317_v35 }
 0x8e6   :  { %v1314_v40 = vpop.xlane.xlu1 %1313 }
 0x8e7   :  { %v1316_v42 = vmul.f32 %v1314_v40, %v1995_v11  ;;  %v1661_v11 = vld [vmem:[%s2413_s30] ss:$0 sm:$0xff] }
 0x8e9   :  { %v1739_v43 = vpop.eup %1738  ;;  %v1318_v24 = vadd.f32 1e-05, %v1316_v42 }
 0x8ea   :  { %v1320_v44 = vmul.f32 %v1739_v43, %v1317_v35  ;;  %vm1326_vm8 = vweird.f32 %v1739_v43 }
 0x8eb   :  { %1740 = vrsqrt.f32 %v1318_v24  ;;  %vm1327_vm10 = vmor %vm1325_vm9, %vm1326_vm8  ;;  %vm1335_vm12 = vweird.f32 %v1318_v24 }
 0x8ec   :  { %v1321_v48 = vmul.f32 %v1739_v43, %v1320_v44 }
 0x8ee   :  { %v1322_v4 = vmul.f32 0.5, %v1321_v48 }
 0x8f0   :  { %v1323_v49 = vsub.f32 1.5, %v1322_v4 }
 0x8f1   :  { %v1741_v62 = vpop.eup %1740 }
 0x8f2   :  { %v1324_v6 = vmul.f32 %v1739_v43, %v1323_v49  ;;  %v1330_v12 = vmul.f32 %v1741_v62, %v1318_v24  ;;  %vm1336_vm11 = vweird.f32 %v1741_v62 }
 0x8f3   :  { %vm1337_vm13 = vmor %vm1335_vm12, %vm1336_vm11 }
 0x8f4   :  { %v1328_v0 = vsel %vm1327_vm10, %v1739_v43, %v1324_v6  ;;  %v1331_v53 = vmul.f32 %v1741_v62, %v1330_v12 }
 0x8f5   :  { %v1339_v20 = vmul.f32 %v1328_v0, %v1305_v23 }
 0x8f6   :  { %v1332_v58 = vmul.f32 0.5, %v1331_v53 }
 0x8f7   :  { %v1344_v22 = vmul.f32 %v1660_v18, %v1339_v20 }
 0x8f8   :  { %v1333_v59 = vsub.f32 1.5, %v1332_v58 }
 0x8f9   :  { %v1349_v60 = vadd.f32 %v1661_v11, %v1344_v22 }
 0x8fa   :  { %v1334_v38 = vmul.f32 %v1741_v62, %v1333_v59 }
 0x8fb   :  { %1596 = vmatmul.msk.f32.vlgmr.msra.gmra.mxu0 %vm162_vm0, %v1349_v60 }
 0x8fc   :  { %v1338_v50 = vsel %vm1337_vm13, %v1741_v62, %v1334_v38 }
 0x8fd   :  { %v1340_v26 = vmul.f32 %v1338_v50, %v1306_v63 }
 0x8ff   :  { %v1345_v28 = vmul.f32 %v1660_v18, %v1340_v26 }
 0x901   :  { %v1350_v5 = vadd.f32 %v1661_v11, %v1345_v28 }
 0x903   :  { %1597 = vmatmul.msk.f32.gmra.mxu0 %vm162_vm0, %v1350_v5 }
 0x978   :  { %v1382_v8 = vpop.f32.mrf.mxu0 }
 0x979   :  { %v1383_v54 = vadd.f32 %v1662_v7, %v1382_v8 }
 0x97b   :  { %v1388_v36 = vmax.f32 %v1383_v54, 0.0 }
 0x97d   :  { %1598 = vmatmul.msk.f32.vlgmr.msrb.gmra.mxu3 %vm162_vm0, %v1388_v36 }
 0x980   :  { %v1385_v47 = vpop.f32.mrf.mxu0 }
 0x981   :  { %v1386_v55 = vadd.f32 %v1662_v7, %v1385_v47 }
 0x983   :  { %v1389_v9 = vmax.f32 %v1386_v55, 0.0 }
 0x985   :  { %1599 = vmatmul.msk.f32.gmra.mxu3 %vm162_vm0, %v1389_v9 }
 0xa00   :  { %v1421_v13 = vpop.f32.mrf.mxu3 }
 0xa01   :  { %v1422_v25 = vadd.f32 %v1663_v10, %v1421_v13 }
 0xa03   :  { %v1427_v46 = vadd.f32 %v1422_v25, %v1349_v60 }
 0xa05   :  { %1429 = vst.msk [vmem:[#allocation3] sm:$0xff] %vm162_vm0, %v1427_v46 }
 0xa08   :  { %v1424_v17 = vpop.f32.mrf.mxu3 }
 0xa09   :  { %v1425_v14 = vadd.f32 %v1663_v10, %v1424_v17 }
 0xa0b   :  { %v1428_v15 = vadd.f32 %v1425_v14, %v1350_v5 }
 0xa0d   :  { %1430 = vst.msk [vmem:[#allocation3 + $0x8] sm:$0xff] %vm162_vm0, %v1428_v15  ;;  %1600 = vmatpush.xpose.msk.msrb.mxu0 %vm162_vm0, %v1428_v15 }
 0xa11   :  { %1601 = vmatpush.xpose.msk.msrb.mxu0 %vm162_vm0, %v1427_v46 }
 0xa14   :  { %1602 = vmatmul.msk.f32.vlgmr.msrb.gmra.mxu0 %vm162_vm0, %v1431_v51 }
 0xa15   :  { %1777 = shalt.err (!%p1774_p4)
}
 0xa16   :  { %s1816_s23 = smov 128   ;;  %s1817_s22 = smov 8   ;;  %v1436_v39 = vpop.permute.xlu2 %1435  ;;  %vm1487_vm1 = vcmask 122880  }
 0xa17   :  { %1501 = dma.vmem_to_hbm [thread:$0]  %s1494_s10, 256, %s1496_s11, [#allocation4], %s1816_s23, %s1816_s23, %s1817_s22   ;;  %v1438_v19 = vperm.slane %v1436_v39, 0 }
 0xa91   :  { %v1465_v21 = vpop.f32.mrf.mxu0 }
 0xa92   :  { %v1466_v27 = vadd.f32 %v1465_v21, %v1438_v19 }
 0xa94   :  { %v1603_v57 = vmul.f32 -1.442695, %v1466_v27 }
 0xa96   :  { %1742 = vpow2.f32 %v1603_v57 }
 0xa9c   :  { %v1743_v23 = vpop.eup %1742 }
 0xa9d   :  { %v1471_v29 = vadd.f32 1.0, %v1743_v23 }
 0xa9f   :  { %1744 = vrcp.f32 %v1471_v29  ;;  %v1483_v63 = vand.u32 2147483648, %v1471_v29  ;;  %v1481_v2 = vand.u32 2147483647, %v1471_v29  ;;  %vm1477_vm14 = vweird.f32 %v1471_v29 }
 0xaa1   :  { %v1484_v16 = vor.u32 1.1754944e-38, %v1483_v63  ;;  %vm1482_vm2 = vcmp.eq.f32.partialorder %v1481_v2, 8.507059e+37 }
 0xaa5   :  { %v1745_v32 = vpop.eup %1744 }
 0xaa6   :  { %v1473_v33 = vmul.f32 %v1745_v32, %v1471_v29  ;;  %vm1478_vm0 = vweird.f32 %v1745_v32 }
 0xaa7   :  { %vm1479_vm15 = vmor %vm1477_vm14, %vm1478_vm0 }
 0xaa8   :  { %v1474_v30 = vsub.f32 1.0, %v1473_v33 }
 0xaaa   :  { %v1475_v34 = vmul.f32 %v1745_v32, %v1474_v30 }
 0xaac   :  { %v1476_v61 = vadd.f32 %v1745_v32, %v1475_v34 }
 0xaae   :  { %v1480_v52 = vsel %vm1479_vm15, %v1745_v32, %v1476_v61 }
 0xaaf   :  { %v1485_v56 = vsel %vm1482_vm2, %v1484_v16, %v1480_v52 }
 0xab0   :  { %1488 = vst.msk [vmem:[%s1989_s27] sm:$0x1] %vm1487_vm1, %v1485_v56 }
 0xab1   :  { %1778 = dma.done.wait [#allocation4], 256  }
 0xab2   :  { %1779 = vsyncadd [#allocation4], 4294967040 }
 0xab3   :  { %1510 = vsyncpa [#allocation4], 1 }

</bundles_post_ra>
